<compile_context>
chip_gen: v7x
topology: tpu7x:2x2x1
jax: 0.10.0
libtpu: 0.0.40
codegen_flags: <defaults>
</compile_context>

<pallas_src>
import jax
import jax.numpy as jnp
from jax.experimental import pallas as pl
from jax.experimental.pallas import tpu as pltpu

EPS = 1e-5


def _bn_add_conv_bn_kernel(x1_ref, x2_ref, w_ref, g1_ref, b1_ref, g2_ref,
                           b2_ref, o_ref):
    # x1_ref, x2_ref : (Cin, P)    fp32   channel-major activations
    # w_ref          : (Cout, Cin) fp32   1x1 conv weight (as-is, no transpose)
    # g1/b1          : (Cin, 1)    BN1 affine
    # g2/b2          : (Cout, 1)   BN2 affine
    # o_ref          : (Cout, P)
    x1 = x1_ref[...]
    inv_p = 1.0 / x1.shape[1]

    # --- BatchNorm2d(72), training mode, fused to per-channel scale/bias ---
    # one-pass statistics over the lane axis (sum + sum of squares)
    mean1 = jnp.sum(x1, axis=-1, keepdims=True) * inv_p
    ex2 = jnp.sum(x1 * x1, axis=-1, keepdims=True) * inv_p
    var1 = ex2 - mean1 * mean1
    scale1 = g1_ref[...] * jax.lax.rsqrt(var1 + EPS)
    bias1 = b1_ref[...] - mean1 * scale1

    # --- BN1 + residual add in one sweep over x1/x2 ---
    h = x1 * scale1 + bias1 + x2_ref[...]

    # --- center h (cheap pass over (Cin,P)); by linearity of the 1x1 conv,
    #     y = W @ h_c is then zero-mean per output channel, so BN2 needs no
    #     separate mean pass over the big (Cout,P) intermediate. ---
    mean_h = jnp.mean(h, axis=-1, keepdims=True)
    h_c = h - mean_h

    # --- Conv2d(72, 432, kernel_size=1, bias=False) == channel matmul ---
    y = jnp.dot(w_ref[...], h_c, preferred_element_type=jnp.float32)

    # --- BatchNorm2d(432), training mode: single sum-of-squares pass ---
    var2 = jnp.mean(y * y, axis=-1, keepdims=True)
    scale2 = g2_ref[...] * jax.lax.rsqrt(var2 + EPS)
    o_ref[...] = y * scale2 + b2_ref[...]


def bn_add_conv_bn(x101, x94, conv_w, g1, b1, g2, b2):
    """x101, x94: NCHW float32.  conv_w: (Cout, Cin) for a 1x1 conv."""
    N, C_in, H, W = x101.shape
    C_out = conv_w.shape[0]
    P = N * H * W

    # NCHW -> channel-major (C, N*H*W).  For N == 1 this is a pure reshape
    # (zero data movement); only N > 1 needs a real transpose.
    if N == 1:
        x1_cm = x101.reshape(C_in, P)
        x2_cm = x94.reshape(C_in, P)
    else:
        x1_cm = jnp.transpose(x101.reshape(N, C_in, H * W),
                              (1, 0, 2)).reshape(C_in, P)
        x2_cm = jnp.transpose(x94.reshape(N, C_in, H * W),
                              (1, 0, 2)).reshape(C_in, P)

    g1c = g1.reshape(C_in, 1)
    b1c = b1.reshape(C_in, 1)
    g2c = g2.reshape(C_out, 1)
    b2c = b2.reshape(C_out, 1)

    full = lambda shape: pl.BlockSpec(shape, lambda: tuple(0 for _ in shape))

    bytes_accessed = 4 * (2 * P * C_in + C_in * C_out + P * C_out
                          + 2 * C_in + 2 * C_out)
    cost = pl.CostEstimate(flops=2 * P * C_in * C_out,
                           transcendentals=0,
                           bytes_accessed=bytes_accessed)

    out_cm = pl.pallas_call(
        _bn_add_conv_bn_kernel,
        out_shape=jax.ShapeDtypeStruct((C_out, P), jnp.float32),
        in_specs=[
            full((C_in, P)),
            full((C_in, P)),
            full((C_out, C_in)),
            full((C_in, 1)),
            full((C_in, 1)),
            full((C_out, 1)),
            full((C_out, 1)),
        ],
        out_specs=full((C_out, P)),
        cost_estimate=cost,
    )(x1_cm, x2_cm, conv_w, g1c, b1c, g2c, b2c)

    # (Cout, N*H*W) -> NCHW (pure reshape when N == 1)
    if N == 1:
        return out_cm.reshape(1, C_out, H, W)
    return jnp.transpose(out_cm.reshape(C_out, N, H, W), (1, 0, 2, 3))

    # TODO(synk): running_mean/running_var updates (track_running_stats) are not
    # emitted; this kernel produces the training-mode forward output only.


if __name__ == "__main__":
    # Shapes implied by the module: 72 in-channels, 432 out-channels, 1x1 conv.
    N, C_IN, H, W = 1, 72, 14, 14
    C_OUT = 432

    key = jax.random.PRNGKey(0)
    k1, k2, k3, k4, k5, k6, k7 = jax.random.split(key, 7)

    x101 = jax.random.normal(k1, (N, C_IN, H, W), dtype=jnp.float32)
    x94 = jax.random.normal(k2, (N, C_IN, H, W), dtype=jnp.float32)

    # Deterministic synthetic parameters (shapes from the module __init__).
    conv_w = jax.random.normal(k3, (C_OUT, C_IN), dtype=jnp.float32) * 0.05
    g1 = 1.0 + 0.1 * jax.random.normal(k4, (C_IN,), dtype=jnp.float32)
    b1 = 0.1 * jax.random.normal(k5, (C_IN,), dtype=jnp.float32)
    g2 = 1.0 + 0.1 * jax.random.normal(k6, (C_OUT,), dtype=jnp.float32)
    b2 = 0.1 * jax.random.normal(k7, (C_OUT,), dtype=jnp.float32)

    out = bn_add_conv_bn(x101, x94, conv_w, g1, b1, g2, b2)
    jax.block_until_ready(out)

    # Pure-JAX reference check (training-mode BN == batch statistics).
    def ref(x1, x2):
        m1 = jnp.mean(x1, axis=(0, 2, 3), keepdims=True)
        v1 = jnp.var(x1, axis=(0, 2, 3), keepdims=True)
        xn = (x1 - m1) / jnp.sqrt(v1 + EPS) * g1[None, :, None, None] + \
            b1[None, :, None, None]
        h = xn + x2
        y = jnp.einsum('nchw,oc->nohw', h, conv_w)
        m2 = jnp.mean(y, axis=(0, 2, 3), keepdims=True)
        v2 = jnp.var(y, axis=(0, 2, 3), keepdims=True)
        return (y - m2) / jnp.sqrt(v2 + EPS) * g2[None, :, None, None] + \
            b2[None, :, None, None]

    expected = ref(x101, x94)
    assert out.shape == (N, C_OUT, H, W)
    assert jnp.allclose(out, expected, atol=1e-3, rtol=1e-3)

    print("KERNEL_OK")
</pallas_src>

<mosaic_0001>
module attributes {stable_mosaic.version = 11 : i64} {
  func.func @_bn_add_conv_bn_kernel(%arg0: memref<72x196xf32, #tpu.memory_space<vmem>>, %arg1: memref<72x196xf32, #tpu.memory_space<vmem>>, %arg2: memref<432x72xf32, #tpu.memory_space<vmem>>, %arg3: memref<72x1xf32, #tpu.memory_space<vmem>>, %arg4: memref<72x1xf32, #tpu.memory_space<vmem>>, %arg5: memref<432x1xf32, #tpu.memory_space<vmem>>, %arg6: memref<432x1xf32, #tpu.memory_space<vmem>>, %arg7: memref<432x196xf32, #tpu.memory_space<vmem>>) attributes {dimension_semantics = [], scalar_prefetch = 0 : i64, scratch_operands = 0 : i64, tpu.core_type = #tpu.core_type<tc>} {
    %c0 = arith.constant 0 : index
    %c0_0 = arith.constant 0 : index
    %0 = vector.load %arg0[%c0, %c0_0] : memref<72x196xf32, #tpu.memory_space<vmem>>, vector<72x196xf32>
    %cst = arith.constant dense<0.000000e+00> : vector<72xf32>
    %1 = vector.multi_reduction <add>, %0, %cst [1] : vector<72x196xf32> to vector<72xf32>
    %2 = vector.shape_cast %1 : vector<72xf32> to vector<72x1xf32>
    %cst_1 = arith.constant 0.00510204071 : f32
    %3 = vector.broadcast %cst_1 : f32 to vector<72x1xf32>
    %4 = arith.mulf %2, %3 : vector<72x1xf32>
    %5 = arith.mulf %0, %0 : vector<72x196xf32>
    %cst_2 = arith.constant dense<0.000000e+00> : vector<72xf32>
    %6 = vector.multi_reduction <add>, %5, %cst_2 [1] : vector<72x196xf32> to vector<72xf32>
    %7 = vector.shape_cast %6 : vector<72xf32> to vector<72x1xf32>
    %cst_3 = arith.constant 0.00510204071 : f32
    %8 = vector.broadcast %cst_3 : f32 to vector<72x1xf32>
    %9 = arith.mulf %7, %8 : vector<72x1xf32>
    %10 = arith.mulf %4, %4 : vector<72x1xf32>
    %11 = arith.subf %9, %10 : vector<72x1xf32>
    %c0_4 = arith.constant 0 : index
    %c0_5 = arith.constant 0 : index
    %12 = vector.load %arg3[%c0_4, %c0_5] : memref<72x1xf32, #tpu.memory_space<vmem>>, vector<72x1xf32>
    %cst_6 = arith.constant 9.99999974E-6 : f32
    %13 = vector.broadcast %cst_6 : f32 to vector<72x1xf32>
    %14 = arith.addf %11, %13 : vector<72x1xf32>
    %15 = math.rsqrt %14 : vector<72x1xf32>
    %16 = arith.mulf %12, %15 : vector<72x1xf32>
    %c0_7 = arith.constant 0 : index
    %c0_8 = arith.constant 0 : index
    %17 = vector.load %arg4[%c0_7, %c0_8] : memref<72x1xf32, #tpu.memory_space<vmem>>, vector<72x1xf32>
    %18 = arith.mulf %4, %16 : vector<72x1xf32>
    %19 = arith.subf %17, %18 : vector<72x1xf32>
    %20 = vector.broadcast %16 : vector<72x1xf32> to vector<72x196xf32>
    %21 = arith.mulf %0, %20 : vector<72x196xf32>
    %22 = vector.broadcast %19 : vector<72x1xf32> to vector<72x196xf32>
    %23 = arith.addf %21, %22 : vector<72x196xf32>
    %c0_9 = arith.constant 0 : index
    %c0_10 = arith.constant 0 : index
    %24 = vector.load %arg1[%c0_9, %c0_10] : memref<72x196xf32, #tpu.memory_space<vmem>>, vector<72x196xf32>
    %25 = arith.addf %23, %24 : vector<72x196xf32>
    %cst_11 = arith.constant dense<0.000000e+00> : vector<72xf32>
    %26 = vector.multi_reduction <add>, %25, %cst_11 [1] : vector<72x196xf32> to vector<72xf32>
    %27 = vector.shape_cast %26 : vector<72xf32> to vector<72x1xf32>
    %cst_12 = arith.constant 1.960000e+02 : f32
    %28 = vector.broadcast %cst_12 : f32 to vector<72x1xf32>
    %29 = arith.divf %27, %28 : vector<72x1xf32>
    %30 = vector.broadcast %29 : vector<72x1xf32> to vector<72x196xf32>
    %31 = arith.subf %25, %30 : vector<72x196xf32>
    %c0_13 = arith.constant 0 : index
    %c0_14 = arith.constant 0 : index
    %32 = vector.load %arg2[%c0_13, %c0_14] : memref<432x72xf32, #tpu.memory_space<vmem>>, vector<432x72xf32>
    %cst_15 = arith.constant dense<0.000000e+00> : vector<432x196xf32>
    %33 = tpu.matmul %32, %31, %cst_15 {dimension_numbers = #tpu.dot_dimension_numbers<[1], [0], [0], [1], [0, 0, 1, 1], [], []>} : vector<432x72xf32>, vector<72x196xf32>, vector<432x196xf32> -> vector<432x196xf32>
    %34 = arith.mulf %33, %33 : vector<432x196xf32>
    %cst_16 = arith.constant dense<0.000000e+00> : vector<432xf32>
    %35 = vector.multi_reduction <add>, %34, %cst_16 [1] : vector<432x196xf32> to vector<432xf32>
    %36 = vector.shape_cast %35 : vector<432xf32> to vector<432x1xf32>
    %cst_17 = arith.constant 1.960000e+02 : f32
    %37 = vector.broadcast %cst_17 : f32 to vector<432x1xf32>
    %38 = arith.divf %36, %37 : vector<432x1xf32>
    %c0_18 = arith.constant 0 : index
    %c0_19 = arith.constant 0 : index
    %39 = vector.load %arg5[%c0_18, %c0_19] : memref<432x1xf32, #tpu.memory_space<vmem>>, vector<432x1xf32>
    %cst_20 = arith.constant 9.99999974E-6 : f32
    %40 = vector.broadcast %cst_20 : f32 to vector<432x1xf32>
    %41 = arith.addf %38, %40 : vector<432x1xf32>
    %42 = math.rsqrt %41 : vector<432x1xf32>
    %43 = arith.mulf %39, %42 : vector<432x1xf32>
    %44 = vector.broadcast %43 : vector<432x1xf32> to vector<432x196xf32>
    %45 = arith.mulf %33, %44 : vector<432x196xf32>
    %c0_21 = arith.constant 0 : index
    %c0_22 = arith.constant 0 : index
    %46 = vector.load %arg6[%c0_21, %c0_22] : memref<432x1xf32, #tpu.memory_space<vmem>>, vector<432x1xf32>
    %47 = vector.broadcast %46 : vector<432x1xf32> to vector<432x196xf32>
    %48 = arith.addf %45, %47 : vector<432x196xf32>
    %c0_23 = arith.constant 0 : index
    %c0_24 = arith.constant 0 : index
    %49 = vector.load %arg7[%c0_23, %c0_24] : memref<432x196xf32, #tpu.memory_space<vmem>>, vector<432x196xf32>
    tpu.vector_store %arg7[%c0_23, %c0_24], %48 {strides = array<i32>} : memref<432x196xf32, #tpu.memory_space<vmem>>, vector<432x196xf32>,
    return
  }
}

</mosaic_0001>

<bundles_post_ra>
// kernel: tpu_custom_call.1
= control target key start
LH: loop header
LB: loop body
LE: loop exit
PB: predicated region body
PF: predicated region fallthrough
CT: control target
= control target key end

     0   :  { %vm44_vm0 = vcmask 556032   ;;  %vm514_vm1 = vcmask 588800   ;;  %s5020_s0 = inlined_call_operand.vmem [shape: f32[72,196], index: 0, kind: input, shape index: {}]   ;;  %s5021_s3 = inlined_call_operand.vmem [shape: f32[72,1], index: 3, kind: input, shape index: {}]   ;;  %s5022_s4 = inlined_call_operand.vmem [shape: f32[72,1], index: 4, kind: input, shape index: {}]   ;;  %s5023_s1 = inlined_call_operand.vmem [shape: f32[72,196], index: 1, kind: input, shape index: {}]   ;;  %s5024_s6 = inlined_call_operand.vmem [shape: f32[432,1], index: 6, kind: input, shape index: {}]   ;;  %s5025_s2 = inlined_call_operand.vmem [shape: f32[432,72], index: 2, kind: input, shape index: {}]   ;;  %s5026_s5 = inlined_call_operand.vmem [shape: f32[432,1], index: 5, kind: input, shape index: {}]   ;;  %s5027_s7 = inlined_call_operand.vmem [shape: f32[432,196], index: 7, kind: output, shape index: {}]  }
   0x1   :  { %v2837_v0 = vld [vmem:[%s5020_s0] sm:$0xff]  ;;  %v2842_v1 = vld [vmem:[%s5020_s0 + $0x8] sm:$0xff]  ;;  %v2847_v2 = vld [vmem:[%s5020_s0 + $0x10] sm:$0xff] }
   0x2   :  { %v45_v3 = vsel %vm44_vm0, %v2842_v1, 0.0  ;;  %v90_v4 = vmul.f32 %v2837_v0, %v2837_v0  ;;  %v91_v5 = vmul.f32 %v2842_v1, %v2842_v1  ;;  %v2858_v6 = vld [vmem:[%s5020_s0 + $0x18] sm:$0xff]  ;;  %v92_v9 = vmul.f32 %v2847_v2, %v2847_v2  ;;  %v2870_v11 = vld [vmem:[%s5020_s0 + $0x28] sm:$0xff]  ;;  %v2883_v17 = vld [vmem:[%s5020_s0 + $0x20] sm:$0xff] }
   0x3   :  { %v46_v7 = vadd.f32 %v45_v3, %v2837_v0  ;;  %v49_v8 = vsel %vm44_vm0, %v2858_v6, 0.0  ;;  %v93_v10 = vmul.f32 %v2858_v6, %v2858_v6  ;;  %v2878_v16 = vld [vmem:[%s5020_s0 + $0x38] sm:$0xff]  ;;  %v53_v18 = vsel %vm44_vm0, %v2870_v11, 0.0  ;;  %v2892_v21 = vld [vmem:[%s5020_s0 + $0x30] sm:$0xff]  ;;  %v2908_v29 = vld [vmem:[%s5020_s0 + $0x48] sm:$0xff] }
   0x4   :  { %v108_v12 = vsel %vm44_vm0, %v91_v5, 0.0  ;;  %v50_v14 = vadd.f32 %v49_v8, %v2847_v2  ;;  %v95_v19 = vmul.f32 %v2870_v11, %v2870_v11  ;;  %v57_v22 = vsel %vm44_vm0, %v2878_v16, 0.0  ;;  %v2914_v32 = vld [vmem:[%s5020_s0 + $0x58] sm:$0xff]  ;;  %v2919_v33 = vld [vmem:[%s5020_s0 + $0x40] sm:$0xff]  ;;  %v2928_v37 = vld [vmem:[%s5020_s0 + $0x50] sm:$0xff] }
   0x5   :  { %47 = vadd.xlane.f32.xlu0 %v46_v7  ;;  %v109_v13 = vadd.f32 %v108_v12, %v90_v4  ;;  %v112_v15 = vsel %vm44_vm0, %v93_v10, 0.0  ;;  %v97_v23 = vmul.f32 %v2878_v16, %v2878_v16  ;;  %v54_v24 = vadd.f32 %v53_v18, %v2883_v17  ;;  %v2944_v45 = vld [vmem:[%s5020_s0 + $0x68] sm:$0xff]  ;;  %v2950_v48 = vld [vmem:[%s5020_s0 + $0x78] sm:$0xff]  ;;  %v2955_v49 = vld [vmem:[%s5020_s0 + $0x60] sm:$0xff] }
   0x6   :  { %v113_v20 = vadd.f32 %v112_v15, %v92_v9  ;;  %v94_v25 = vmul.f32 %v2883_v17, %v2883_v17  ;;  %v116_v26 = vsel %vm44_vm0, %v95_v19, 0.0  ;;  %v58_v27 = vadd.f32 %v57_v22, %v2892_v21  ;;  %v2964_v53 = vld [vmem:[%s5020_s0 + $0x70] sm:$0xff]  ;;  %v2976_v58 = vld [vmem:[%s5020_s0 + $0x88] sm:$0xff]  ;;  %v2986_v63 = vld [vmem:[%s5020_s0 + $0x80] sm:$0xff] }
   0x7   :  { %110 = vadd.xlane.f32.xlu1 %v109_v13  ;;  %v96_v28 = vmul.f32 %v2892_v21, %v2892_v21  ;;  %v120_v30 = vsel %vm44_vm0, %v97_v23, 0.0  ;;  %v61_v34 = vsel %vm44_vm0, %v2908_v29, 0.0  ;;  %v99_v35 = vmul.f32 %v2908_v29, %v2908_v29 }
   0x8   :  { %v117_v31 = vadd.f32 %v116_v26, %v94_v25  ;;  %v65_v38 = vsel %vm44_vm0, %v2914_v32, 0.0  ;;  %v101_v39 = vmul.f32 %v2914_v32, %v2914_v32  ;;  %v62_v40 = vadd.f32 %v61_v34, %v2919_v33 }
   0x9   :  { %51 = vadd.xlane.f32.xlu0 %v50_v14  ;;  %v121_v36 = vadd.f32 %v120_v30, %v96_v28  ;;  %v98_v41 = vmul.f32 %v2919_v33, %v2919_v33  ;;  %v124_v42 = vsel %vm44_vm0, %v99_v35, 0.0  ;;  %v66_v43 = vadd.f32 %v65_v38, %v2928_v37 }
   0xa   :  { %v100_v44 = vmul.f32 %v2928_v37, %v2928_v37  ;;  %v128_v46 = vsel %vm44_vm0, %v101_v39, 0.0  ;;  %v69_v50 = vsel %vm44_vm0, %v2944_v45, 0.0  ;;  %v103_v51 = vmul.f32 %v2944_v45, %v2944_v45 }
   0xb   :  { %114 = vadd.xlane.f32.xlu1 %v113_v20  ;;  %v125_v47 = vadd.f32 %v124_v42, %v98_v41  ;;  %v73_v54 = vsel %vm44_vm0, %v2950_v48, 0.0  ;;  %v105_v55 = vmul.f32 %v2950_v48, %v2950_v48  ;;  %v70_v56 = vadd.f32 %v69_v50, %v2955_v49 }
   0xc   :  { %v129_v52 = vadd.f32 %v128_v46, %v100_v44  ;;  %v102_v57 = vmul.f32 %v2955_v49, %v2955_v49  ;;  %v132_v59 = vsel %vm44_vm0, %v103_v51, 0.0  ;;  %v74_v60 = vadd.f32 %v73_v54, %v2964_v53  ;;  %v171_v54 = vld [vmem:[%s5021_s3] sm:$0xff] }
   0xd   :  { %55 = vadd.xlane.f32.xlu0 %v54_v24  ;;  %v104_v61 = vmul.f32 %v2964_v53, %v2964_v53  ;;  %v136_v62 = vsel %vm44_vm0, %v105_v55, 0.0  ;;  %v107_v3 = vmul.f32 %v2976_v58, %v2976_v58  ;;  %v77_v5 = vsel %vm44_vm0, %v2976_v58, 0.0 }
   0xe   :  { %v133_v4 = vadd.f32 %v132_v59, %v102_v57  ;;  %v106_v8 = vmul.f32 %v2986_v63, %v2986_v63  ;;  %v78_v10 = vadd.f32 %v77_v5, %v2986_v63  ;;  %v2792_v13 = vmov 0   ;;  %v172_v5 = vld [vmem:[%s5021_s3 + $0x8] sm:$0xff] }
   0xf   :  { %59 = vadd.xlane.f32.xlu1 %v58_v27  ;;  %v137_v7 = vadd.f32 %v136_v62, %v104_v61  ;;  %v140_v9 = vsel %vm44_vm0, %v107_v3, 0.0  ;;  %2664 = vset.pattern.permute.xlu0 %v2792_v13 }
  0x10   :  { %v141_v12 = vadd.f32 %v140_v9, %v106_v8  ;;  %2665 = vset.pattern.permute.xlu1 %v2792_v13 }
  0x11   :  { %118 = vadd.xlane.f32.xlu0 %v117_v31 }
  0x13   :  { %122 = vadd.xlane.f32.xlu1 %v121_v36 }
  0x15   :  { %63 = vadd.xlane.f32.xlu0 %v62_v40 }
  0x17   :  { %67 = vadd.xlane.f32.xlu1 %v66_v43 }
  0x19   :  { %126 = vadd.xlane.f32.xlu0 %v125_v47 }
  0x1b   :  { %130 = vadd.xlane.f32.xlu1 %v129_v52 }
  0x1d   :  { %71 = vadd.xlane.f32.xlu0 %v70_v56 }
  0x1f   :  { %75 = vadd.xlane.f32.xlu1 %v74_v60 }
  0x21   :  { %134 = vadd.xlane.f32.xlu0 %v133_v4 }
  0x23   :  { %138 = vadd.xlane.f32.xlu1 %v137_v7 }
  0x25   :  { %79 = vadd.xlane.f32.xlu0 %v78_v10 }
  0x27   :  { %142 = vadd.xlane.f32.xlu1 %v141_v12 }
  0x92   :  { %v48_v14 = vpop.xlane.xlu0 %47 }
  0x93   :  { %v2996_v15 = vmul.f32 0.0051020407, %v48_v14 }
  0x94   :  { %v111_v18 = vpop.xlane.xlu1 %110 }
  0x95   :  { %v153_v19 = vmul.f32 %v2996_v15, %v2996_v15  ;;  %v144_v20 = vmul.f32 0.0051020407, %v111_v18 }
  0x96   :  { %v52_v22 = vpop.xlane.xlu0 %51 }
  0x97   :  { %v162_v23 = vsub.f32 %v144_v20, %v153_v19  ;;  %v3000_v24 = vmul.f32 0.0051020407, %v52_v22 }
  0x98   :  { %v115_v25 = vpop.xlane.xlu1 %114 }
  0x99   :  { %v180_v26 = vadd.f32 1e-05, %v162_v23  ;;  %v154_v27 = vmul.f32 %v3000_v24, %v3000_v24  ;;  %v145_v28 = vmul.f32 0.0051020407, %v115_v25  ;;  %v173_v25 = vld [vmem:[%s5021_s3 + $0x10] sm:$0xff] }
  0x9a   :  { %v56_v30 = vpop.xlane.xlu0 %55 }
  0x9b   :  { %2666 = vrsqrt.f32 %v180_v26  ;;  %v163_v31 = vsub.f32 %v145_v28, %v154_v27  ;;  %v3004_v34 = vmul.f32 0.0051020407, %v56_v30 }
  0x9c   :  { %v60_v35 = vpop.xlane.xlu1 %59 }
  0x9d   :  { %v181_v36 = vadd.f32 1e-05, %v163_v31  ;;  %v3006_v38 = vmul.f32 0.0051020407, %v60_v35  ;;  %v155_v40 = vmul.f32 %v3004_v34, %v3004_v34 }
  0x9e   :  { %v119_v39 = vpop.xlane.xlu0 %118 }
  0x9f   :  { %2668 = vrsqrt.f32 %v181_v36  ;;  %v156_v41 = vmul.f32 %v3006_v38, %v3006_v38  ;;  %v146_v42 = vmul.f32 0.0051020407, %v119_v39 }
  0xa0   :  { %v123_v43 = vpop.xlane.xlu1 %122 }
  0xa1   :  { %v164_v44 = vsub.f32 %v146_v42, %v155_v40  ;;  %v147_v46 = vmul.f32 0.0051020407, %v123_v43  ;;  %v174_v42 = vld [vmem:[%s5021_s3 + $0x18] sm:$0xff] }
  0xa2   :  { %v64_v47 = vpop.xlane.xlu0 %63 }
  0xa3   :  { %v182_v50 = vadd.f32 1e-05, %v164_v44  ;;  %v165_v51 = vsub.f32 %v147_v46, %v156_v41  ;;  %v3012_v52 = vmul.f32 0.0051020407, %v64_v47 }
  0xa4   :  { %v68_v55 = vpop.xlane.xlu1 %67 }
  0xa5   :  { %v2667_v56 = vpop.eup %2666  ;;  %2670 = vrsqrt.f32 %v182_v50  ;;  %v183_v57 = vadd.f32 1e-05, %v165_v51  ;;  %v3017_v59 = vmul.f32 0.0051020407, %v68_v55  ;;  %v157_v62 = vmul.f32 %v3012_v52, %v3012_v52 }
  0xa6   :  { %v127_v60 = vpop.xlane.xlu0 %126  ;;  %v3019_v61 = vmul.f32 %v2667_v56, %v171_v54 }
  0xa7   :  { %2672 = vrsqrt.f32 %v183_v57  ;;  %v158_v3 = vmul.f32 %v3017_v59, %v3017_v59  ;;  %v148_v4 = vmul.f32 0.0051020407, %v127_v60  ;;  %v175_v57 = vld [vmem:[%s5021_s3 + $0x20] sm:$0xff] }
  0xa8   :  { %v131_v7 = vpop.xlane.xlu1 %130  ;;  %236 = vperm.xlu0 %2664, %v3019_v61  }
  0xa9   :  { %v2669_v8 = vpop.eup %2668  ;;  %v166_v9 = vsub.f32 %v148_v4, %v157_v62  ;;  %v149_v10 = vmul.f32 0.0051020407, %v131_v7 }
  0xaa   :  { %v72_v12 = vpop.xlane.xlu0 %71  ;;  %v199_v13 = vmul.f32 %v2669_v8, %v172_v5 }
  0xab   :  { %v184_v14 = vadd.f32 1e-05, %v166_v9  ;;  %v167_v18 = vsub.f32 %v149_v10, %v158_v3  ;;  %v3029_v19 = vmul.f32 0.0051020407, %v72_v12  ;;  %v176_v3 = vld [vmem:[%s5021_s3 + $0x28] sm:$0xff]  ;;  %v177_v9 = vld [vmem:[%s5021_s3 + $0x30] sm:$0xff] }
  0xac   :  { %v76_v20 = vpop.xlane.xlu1 %75  ;;  %241 = vperm.xlu1 %2665, %v199_v13   ;;  %v178_v12 = vld [vmem:[%s5021_s3 + $0x38] sm:$0xff] }
  0xad   :  { %2674 = vrsqrt.f32 %v184_v14  ;;  %v185_v22 = vadd.f32 1e-05, %v167_v18  ;;  %v88_v23 = vmul.f32 0.0051020407, %v76_v20  ;;  %v159_v28 = vmul.f32 %v3029_v19, %v3029_v19 }
  0xae   :  { %v135_v26 = vpop.xlane.xlu0 %134  ;;  %v216_v18 = vmul.f32 %v3019_v61, %v2996_v15  ;;  %v217_v15 = vmul.f32 %v199_v13, %v3000_v24  ;;  %v209_v24 = vld [vmem:[%s5022_s4 + $0x10] sm:$0xff] }
  0xaf   :  { %v2671_v27 = vpop.eup %2670  ;;  %2676 = vrsqrt.f32 %v185_v22  ;;  %v160_v30 = vmul.f32 %v88_v23, %v88_v23  ;;  %v150_v31 = vmul.f32 0.0051020407, %v135_v26  ;;  %v207_v22 = vld [vmem:[%s5022_s4] sm:$0xff] }
  0xb0   :  { %v139_v35 = vpop.xlane.xlu1 %138  ;;  %v200_v36 = vmul.f32 %v2671_v27, %v173_v25  ;;  %v212_v27 = vld [vmem:[%s5022_s4 + $0x28] sm:$0xff] }
  0xb1   :  { %v2673_v39 = vpop.eup %2672  ;;  %v168_v40 = vsub.f32 %v150_v31, %v159_v28  ;;  %v151_v41 = vmul.f32 0.0051020407, %v139_v35  ;;  %v179_v28 = vld [vmem:[%s5021_s3 + $0x40] sm:$0xff]  ;;  %v208_v31 = vld [vmem:[%s5022_s4 + $0x8] sm:$0xff] }
  0xb2   :  { %246 = vperm.xlu1 %2665, %v200_v36   ;;  %v80_v43 = vpop.xlane.xlu0 %79  ;;  %v201_v51 = vmul.f32 %v2673_v39, %v174_v42  ;;  %v218_v42 = vmul.f32 %v200_v36, %v3004_v34 }
  0xb3   :  { %v186_v44 = vadd.f32 1e-05, %v168_v40  ;;  %v169_v46 = vsub.f32 %v151_v41, %v160_v30  ;;  %v89_v47 = vmul.f32 0.0051020407, %v80_v43  ;;  %v225_v30 = vsub.f32 %v207_v22, %v216_v18  ;;  %v214_v40 = vld [vmem:[%s5022_s4 + $0x38] sm:$0xff] }
  0xb4   :  { %v143_v50 = vpop.xlane.xlu1 %142  ;;  %v226_v41 = vsub.f32 %v208_v31, %v217_v15 }
  0xb5   :  { %2678 = vrsqrt.f32 %v186_v44  ;;  %v187_v54 = vadd.f32 1e-05, %v169_v46  ;;  %v161_v55 = vmul.f32 %v89_v47, %v89_v47  ;;  %v152_v56 = vmul.f32 0.0051020407, %v143_v50  ;;  %v210_v50 = vld [vmem:[%s5022_s4 + $0x18] sm:$0xff] }
  0xb6   :  { %251 = vperm.xlu1 %2665, %v201_v51   ;;  %v227_v44 = vsub.f32 %v209_v24, %v218_v42  ;;  %v219_v46 = vmul.f32 %v201_v51, %v3006_v38  ;;  %v213_v38 = vld [vmem:[%s5022_s4 + $0x30] sm:$0xff] }
  0xb7   :  { %v2675_v60 = vpop.eup %2674  ;;  %2680 = vrsqrt.f32 %v187_v54  ;;  %v170_v62 = vsub.f32 %v152_v56, %v161_v55 }
  0xb8   :  { %v202_v4 = vmul.f32 %v2675_v60, %v175_v57  ;;  %v228_v36 = vsub.f32 %v210_v50, %v219_v46 }
  0xb9   :  { %v2677_v5 = vpop.eup %2676  ;;  %v188_v7 = vadd.f32 1e-05, %v170_v62 }
  0xba   :  { %256 = vperm.xlu1 %2665, %v202_v4   ;;  %v203_v8 = vmul.f32 %v2677_v5, %v176_v3  ;;  %v220_v54 = vmul.f32 %v202_v4, %v3012_v52 }
  0xbb   :  { %2682 = vrsqrt.f32 %v188_v7 }
  0xbc   :  { %261 = vperm.xlu0 %2664, %v203_v8   ;;  %v221_v26 = vmul.f32 %v203_v8, %v3017_v59 }
  0xbe   :  { %v230_v35 = vsub.f32 %v212_v27, %v221_v26  ;;  %v362_v26 = vld [vmem:[%s5023_s1 + $0x10] sm:$0xff]  ;;  %v363_v27 = vld [vmem:[%s5023_s1 + $0x18] sm:$0xff] }
  0xbf   :  { %v2679_v10 = vpop.eup %2678 }
  0xc0   :  { %v204_v14 = vmul.f32 %v2679_v10, %v177_v9  ;;  %v360_v10 = vld [vmem:[%s5023_s1] sm:$0xff] }
  0xc1   :  { %v2681_v20 = vpop.eup %2680 }
  0xc2   :  { %266 = vperm.xlu1 %2665, %v204_v14   ;;  %v205_v25 = vmul.f32 %v2681_v20, %v178_v12  ;;  %v222_v56 = vmul.f32 %v204_v14, %v3029_v19  ;;  %v361_v12 = vld [vmem:[%s5023_s1 + $0x8] sm:$0xff] }
  0xc4   :  { %271 = vperm.xlu0 %2664, %v205_v25   ;;  %v223_v59 = vmul.f32 %v205_v25, %v88_v23  ;;  %v215_v23 = vld [vmem:[%s5022_s4 + $0x40] sm:$0xff]  ;;  %v231_v51 = vsub.f32 %v213_v38, %v222_v56 }
  0xc5   :  { %v2683_v61 = vpop.eup %2682 }
  0xc6   :  { %299 = vperm.xlu1 %2665, %v225_v30   ;;  %v206_v39 = vmul.f32 %v2683_v61, %v179_v28  ;;  %v232_v13 = vsub.f32 %v214_v40, %v223_v59 }
  0xc8   :  { %324 = vperm.xlu0 %2664, %v230_v35   ;;  %v224_v43 = vmul.f32 %v206_v39, %v89_v47  ;;  %v211_v47 = vld [vmem:[%s5022_s4 + $0x20] sm:$0xff] }
  0xc9   :  { %v229_v55 = vsub.f32 %v211_v47, %v220_v54 }
  0xca   :  { %304 = vperm.xlu1 %2665, %v226_v41   ;;  %v233_v34 = vsub.f32 %v215_v23, %v224_v43  ;;  %v364_v41 = vld [vmem:[%s5023_s1 + $0x20] sm:$0xff] }
  0xcc   :  { %334 = vperm.xlu0 %2664, %v232_v13  }
  0xce   :  { %309 = vperm.xlu1 %2665, %v227_v44  }
  0xd0   :  { %339 = vperm.xlu0 %2664, %v233_v34  }
  0xd2   :  { %314 = vperm.xlu1 %2665, %v228_v36  }
  0xd6   :  { %319 = vperm.xlu1 %2665, %v229_v55  }
  0xda   :  { %329 = vperm.xlu1 %2665, %v231_v51  }
  0xde   :  { %276 = vperm.xlu1 %2665, %v206_v39  }
 0x127   :  { %v237_v52 = vpop.permute.xlu0 %236 }
 0x128   :  { %v279_v7 = vmul.f32 %v237_v52, %v2837_v0  ;;  %v280_v19 = vmul.f32 %v237_v52, %v2842_v1 }
 0x12b   :  { %v242_v57 = vpop.permute.xlu1 %241 }
 0x12c   :  { %v281_v20 = vmul.f32 %v242_v57, %v2847_v2  ;;  %v282_v22 = vmul.f32 %v242_v57, %v2858_v6 }
 0x131   :  { %v247_v60 = vpop.permute.xlu1 %246 }
 0x132   :  { %v283_v6 = vmul.f32 %v247_v60, %v2883_v17  ;;  %v284_v31 = vmul.f32 %v247_v60, %v2870_v11  ;;  %v365_v17 = vld [vmem:[%s5023_s1 + $0x28] sm:$0xff] }
 0x135   :  { %v252_v62 = vpop.permute.xlu1 %251 }
 0x136   :  { %v286_v13 = vmul.f32 %v252_v62, %v2878_v16  ;;  %v367_v16 = vld [vmem:[%s5023_s1 + $0x38] sm:$0xff] }
 0x139   :  { %v257_v3 = vpop.permute.xlu1 %256 }
 0x13a   :  { %v288_v38 = vmul.f32 %v257_v3, %v2908_v29  ;;  %v368_v29 = vld [vmem:[%s5023_s1 + $0x40] sm:$0xff] }
 0x13b   :  { %v262_v4 = vpop.permute.xlu0 %261 }
 0x13c   :  { %v290_v35 = vmul.f32 %v262_v4, %v2914_v32  ;;  %v285_v32 = vmul.f32 %v252_v62, %v2892_v21  ;;  %v289_v43 = vmul.f32 %v262_v4, %v2928_v37  ;;  %v366_v21 = vld [vmem:[%s5023_s1 + $0x30] sm:$0xff]  ;;  %v371_v37 = vld [vmem:[%s5023_s1 + $0x58] sm:$0xff] }
 0x141   :  { %v3089_v5 = vpop.permute.xlu1 %266 }
 0x143   :  { %v272_v8 = vpop.permute.xlu0 %271 }
 0x144   :  { %v294_v44 = vmul.f32 %v272_v8, %v2950_v48  ;;  %v287_v48 = vmul.f32 %v257_v3, %v2919_v33  ;;  %v293_v51 = vmul.f32 %v272_v8, %v2964_v53  ;;  %v370_v33 = vld [vmem:[%s5023_s1 + $0x50] sm:$0xff]  ;;  %v369_v53 = vld [vmem:[%s5023_s1 + $0x48] sm:$0xff]  ;;  %v375_v3 = vld [vmem:[%s5023_s1 + $0x78] sm:$0xff]  ;;  %v291_v8 = vmul.f32 %v3089_v5, %v2955_v49 }
 0x145   :  { %v300_v9 = vpop.permute.xlu1 %299 }
 0x146   :  { %v342_v14 = vadd.f32 %v300_v9, %v279_v7  ;;  %v343_v18 = vadd.f32 %v300_v9, %v280_v19 }
 0x147   :  { %v325_v15 = vpop.permute.xlu0 %324 }
 0x148   :  { %v3101_v25 = vadd.f32 %v360_v10, %v342_v14  ;;  %v3103_v0 = vadd.f32 %v361_v12, %v343_v18  ;;  %v353_v46 = vadd.f32 %v325_v15, %v290_v35  ;;  %v352_v57 = vadd.f32 %v325_v15, %v289_v43 }
 0x149   :  { %v305_v1 = vpop.permute.xlu1 %304  ;;  %v292_v14 = vmul.f32 %v3089_v5, %v2944_v45  ;;  %v372_v45 = vld [vmem:[%s5023_s1 + $0x60] sm:$0xff]  ;;  %v373_v5 = vld [vmem:[%s5023_s1 + $0x68] sm:$0xff] }
 0x14a   :  { %v344_v28 = vadd.f32 %v305_v1, %v281_v20  ;;  %v345_v30 = vadd.f32 %v305_v1, %v282_v22  ;;  %v396_v2 = vsel %vm44_vm0, %v3103_v0, 0.0  ;;  %v3160_v7 = vadd.f32 %v371_v37, %v353_v46  ;;  %v377_v46 = vld [vmem:[%s5023_s1 + $0x88] sm:$0xff] }
 0x14b   :  { %v397_v61 = vadd.f32 %v396_v2, %v3101_v25  ;;  %v335_v36 = vpop.permute.xlu0 %334  ;;  %v3178_v22 = vadd.f32 %v370_v33, %v352_v57  ;;  %v2039_v37 = vld [vmem:[%s5024_s6 + $0x8] sm:$0xff]  ;;  %v2044_v33 = vld [vmem:[%s5024_s6 + $0x30] sm:$0xff] }
 0x14c   :  { %v3117_v59 = vadd.f32 %v362_v26, %v344_v28  ;;  %v3119_v39 = vadd.f32 %v363_v27, %v345_v30  ;;  %v357_v62 = vadd.f32 %v335_v36, %v294_v44  ;;  %v356_v18 = vadd.f32 %v335_v36, %v293_v51  ;;  %v374_v27 = vld [vmem:[%s5023_s1 + $0x70] sm:$0xff]  ;;  %v376_v44 = vld [vmem:[%s5023_s1 + $0x80] sm:$0xff]  ;;  %v2047_v57 = vld [vmem:[%s5024_s6 + $0x48] sm:$0xff] }
 0x14d   :  { %v310_v40 = vpop.permute.xlu1 %309  ;;  %398 = vadd.xlane.f32.xlu1 %v397_v61  ;;  %v416_v49 = vsel %vm44_vm0, %v3160_v7, 0.0  ;;  %v2040_v51 = vld [vmem:[%s5024_s6 + $0x10] sm:$0xff] }
 0x14e   :  { %v346_v42 = vadd.f32 %v310_v40, %v283_v6  ;;  %v347_v24 = vadd.f32 %v310_v40, %v284_v31  ;;  %v400_v11 = vsel %vm44_vm0, %v3119_v39, 0.0  ;;  %v3189_v28 = vadd.f32 %v375_v3, %v357_v62  ;;  %v2049_v62 = vld [vmem:[%s5024_s6 + $0x58] sm:$0xff]  ;;  %v2048_v3 = vld [vmem:[%s5024_s6 + $0x50] sm:$0xff] }
 0x14f   :  { %v401_v23 = vadd.f32 %v400_v11, %v3117_v59  ;;  %v417_v31 = vadd.f32 %v416_v49, %v3178_v22  ;;  %v3201_v35 = vadd.f32 %v374_v27, %v356_v18  ;;  %v2054_v18 = vld [vmem:[%s5024_s6 + $0x80] sm:$0xff]  ;;  %v2056_v49 = vld [vmem:[%s5024_s6 + $0x90] sm:$0xff]  ;;  %v2063_v27 = vld [vmem:[%s5024_s6 + $0xc8] sm:$0xff] }
 0x150   :  { %v3134_v50 = vadd.f32 %v364_v41, %v346_v42  ;;  %v3136_v34 = vadd.f32 %v365_v17, %v347_v24  ;;  %v424_v17 = vsel %vm44_vm0, %v3189_v28, 0.0 }
 0x151   :  { %v315_v54 = vpop.permute.xlu1 %314  ;;  %402 = vadd.xlane.f32.xlu0 %v401_v23  ;;  %v425_v23 = vadd.f32 %v424_v17, %v3201_v35  ;;  %v2066_v17 = vld [vmem:[%s5024_s6 + $0xe0] sm:$0xff] }
 0x152   :  { %v348_v47 = vadd.f32 %v315_v54, %v285_v32  ;;  %v349_v55 = vadd.f32 %v315_v54, %v286_v13  ;;  %v404_v56 = vsel %vm44_vm0, %v3136_v34, 0.0  ;;  %v340_v13 = vpop.permute.xlu0 %339 }
 0x153   :  { %v405_v60 = vadd.f32 %v404_v56, %v3134_v50  ;;  %v2793_v56 = vmov 0.0  }
 0x154   :  { %v3153_v52 = vadd.f32 %v366_v21, %v348_v47  ;;  %v3155_v4 = vadd.f32 %v367_v16, %v349_v55  ;;  %v2043_v47 = vld [vmem:[%s5024_s6 + $0x28] sm:$0xff]  ;;  %v2038_v55 = vld [vmem:[%s5024_s6] sm:$0xff]  ;;  %741 = vmatprep.mubr.f32.mxu0 %v2793_v56  ;;  %903 = vmatprep.mubr.f32.mxu1 %v2793_v56 }
 0x155   :  { %v320_v19 = vpop.permute.xlu1 %319  ;;  %406 = vadd.xlane.f32.xlu0 %v405_v60  ;;  %v2042_v60 = vld [vmem:[%s5024_s6 + $0x20] sm:$0xff] }
 0x156   :  { %v350_v9 = vadd.f32 %v320_v19, %v287_v48  ;;  %v351_v10 = vadd.f32 %v320_v19, %v288_v38  ;;  %v408_v12 = vsel %vm44_vm0, %v3155_v4, 0.0  ;;  %v2041_v48 = vld [vmem:[%s5024_s6 + $0x18] sm:$0xff]  ;;  %v2051_v19 = vld [vmem:[%s5024_s6 + $0x68] sm:$0xff] }
 0x157   :  { %v409_v20 = vadd.f32 %v408_v12, %v3153_v52  ;;  %v2045_v38 = vld [vmem:[%s5024_s6 + $0x38] sm:$0xff]  ;;  %v2052_v12 = vld [vmem:[%s5024_s6 + $0x70] sm:$0xff] }
 0x158   :  { %v3180_v1 = vadd.f32 %v368_v29, %v350_v9  ;;  %v3182_v26 = vadd.f32 %v369_v53, %v351_v10  ;;  %v2046_v29 = vld [vmem:[%s5024_s6 + $0x40] sm:$0xff]  ;;  %v2053_v53 = vld [vmem:[%s5024_s6 + $0x78] sm:$0xff] }
 0x159   :  { %v330_v30 = vpop.permute.xlu1 %329  ;;  %410 = vadd.xlane.f32.xlu1 %v409_v20  ;;  %v2050_v9 = vld [vmem:[%s5024_s6 + $0x60] sm:$0xff]  ;;  %v2057_v10 = vld [vmem:[%s5024_s6 + $0x98] sm:$0xff] }
 0x15a   :  { %v354_v2 = vadd.f32 %v330_v30, %v291_v8  ;;  %v355_v6 = vadd.f32 %v330_v30, %v292_v14  ;;  %v412_v15 = vsel %vm44_vm0, %v3182_v26, 0.0  ;;  %v2055_v8 = vld [vmem:[%s5024_s6 + $0x88] sm:$0xff]  ;;  %v2061_v20 = vld [vmem:[%s5024_s6 + $0xb8] sm:$0xff]  ;;  %v2058_v30 = vld [vmem:[%s5024_s6 + $0xa0] sm:$0xff] }
 0x15b   :  { %v413_v61 = vadd.f32 %v412_v15, %v3180_v1  ;;  %v2059_v14 = vld [vmem:[%s5024_s6 + $0xa8] sm:$0xff]  ;;  %v2069_v15 = vld [vmem:[%s5024_s6 + $0xf8] sm:$0xff] }
 0x15c   :  { %v3203_v40 = vadd.f32 %v372_v45, %v354_v2  ;;  %v3205_v41 = vadd.f32 %v373_v5, %v355_v6  ;;  %v2065_v45 = vld [vmem:[%s5024_s6 + $0xd8] sm:$0xff]  ;;  %v2060_v5 = vld [vmem:[%s5024_s6 + $0xb0] sm:$0xff]  ;;  %v2067_v2 = vld [vmem:[%s5024_s6 + $0xe8] sm:$0xff] }
 0x15d   :  { %v277_v42 = vpop.permute.xlu1 %276  ;;  %414 = vadd.xlane.f32.xlu0 %v413_v61  ;;  %418 = vadd.xlane.f32.xlu1 %v417_v31  ;;  %v2062_v6 = vld [vmem:[%s5024_s6 + $0xc0] sm:$0xff]  ;;  %v2064_v61 = vld [vmem:[%s5024_s6 + $0xd0] sm:$0xff]  ;;  %v2071_v31 = vld [vmem:[%s5024_s6 + $0x108] sm:$0xff] }
 0x15e   :  { %v295_v24 = vmul.f32 %v277_v42, %v2986_v63  ;;  %v296_v11 = vmul.f32 %v277_v42, %v2976_v58  ;;  %v420_v32 = vsel %vm44_vm0, %v3205_v41, 0.0  ;;  %v2073_v42 = vld [vmem:[%s5024_s6 + $0x118] sm:$0xff] }
 0x15f   :  { %v421_v43 = vadd.f32 %v420_v32, %v3203_v40  ;;  %v2070_v32 = vld [vmem:[%s5024_s6 + $0x100] sm:$0xff] }
 0x160   :  { %v359_v36 = vadd.f32 %v340_v13, %v296_v11  ;;  %v358_v63 = vadd.f32 %v340_v13, %v295_v24  ;;  %v2068_v24 = vld [vmem:[%s5024_s6 + $0xf0] sm:$0xff]  ;;  %v2075_v11 = vld [vmem:[%s5024_s6 + $0x128] sm:$0xff]  ;;  %v2077_v13 = vld [vmem:[%s5024_s6 + $0x138] sm:$0xff] }
 0x161   :  { %422 = vadd.xlane.f32.xlu0 %v421_v43  ;;  %426 = vadd.xlane.f32.xlu1 %v425_v23  ;;  %v2072_v43 = vld [vmem:[%s5024_s6 + $0x110] sm:$0xff]  ;;  %v2079_v23 = vld [vmem:[%s5024_s6 + $0x148] sm:$0xff] }
 0x162   :  { %v3221_v58 = vadd.f32 %v376_v44, %v358_v63  ;;  %v3223_v54 = vadd.f32 %v377_v46, %v359_v36  ;;  %v2074_v44 = vld [vmem:[%s5024_s6 + $0x120] sm:$0xff]  ;;  %v2081_v46 = vld [vmem:[%s5024_s6 + $0x158] sm:$0xff]  ;;  %v2076_v36 = vld [vmem:[%s5024_s6 + $0x130] sm:$0xff] }
 0x163   :  { %v2083_v63 = vld [vmem:[%s5024_s6 + $0x168] sm:$0xff] }
 0x164   :  { %v428_v21 = vsel %vm44_vm0, %v3223_v54, 0.0 }
 0x165   :  { %v429_v16 = vadd.f32 %v428_v21, %v3221_v58  ;;  %v2078_v21 = vld [vmem:[%s5024_s6 + $0x140] sm:$0xff] }
 0x167   :  { %430 = vadd.xlane.f32.xlu0 %v429_v16  ;;  %v2085_v16 = vld [vmem:[%s5024_s6 + $0x178] sm:$0xff] }
 0x172   :  { %2099 = vperm.xlu1 %2665, %v2039_v37   ;;  %v2080_v37 = vld [vmem:[%s5024_s6 + $0x150] sm:$0xff] }
 0x176   :  { %2109 = vperm.xlu1 %2665, %v2041_v48   ;;  %v2087_v48 = vld [vmem:[%s5024_s6 + $0x188] sm:$0xff] }
 0x17a   :  { %2119 = vperm.xlu1 %2665, %v2043_v47   ;;  %v2082_v47 = vld [vmem:[%s5024_s6 + $0x160] sm:$0xff] }
 0x17d   :  { %2094 = vperm.xlu0 %2664, %v2038_v55   ;;  %v2089_v55 = vld [vmem:[%s5024_s6 + $0x198] sm:$0xff] }
 0x17e   :  { %2129 = vperm.xlu1 %2665, %v2045_v38   ;;  %v2084_v38 = vld [vmem:[%s5024_s6 + $0x170] sm:$0xff] }
 0x181   :  { %2104 = vperm.xlu0 %2664, %v2040_v51  }
 0x182   :  { %2139 = vperm.xlu1 %2665, %v2047_v57   ;;  %v2086_v57 = vld [vmem:[%s5024_s6 + $0x180] sm:$0xff] }
 0x185   :  { %2114 = vperm.xlu0 %2664, %v2042_v60  }
 0x186   :  { %2149 = vperm.xlu1 %2665, %v2049_v62  }
 0x189   :  { %2124 = vperm.xlu0 %2664, %v2044_v33   ;;  %v2088_v33 = vld [vmem:[%s5024_s6 + $0x190] sm:$0xff] }
 0x18a   :  { %2159 = vperm.xlu1 %2665, %v2051_v19  }
 0x18d   :  { %2134 = vperm.xlu0 %2664, %v2046_v29  }
 0x18e   :  { %2169 = vperm.xlu1 %2665, %v2053_v53  }
 0x191   :  { %2144 = vperm.xlu0 %2664, %v2048_v3  }
 0x192   :  { %2179 = vperm.xlu1 %2665, %v2055_v8  }
 0x195   :  { %2154 = vperm.xlu0 %2664, %v2050_v9  }
 0x196   :  { %2189 = vperm.xlu1 %2665, %v2057_v10  }
 0x199   :  { %2164 = vperm.xlu0 %2664, %v2052_v12  }
 0x19a   :  { %2199 = vperm.xlu1 %2665, %v2059_v14  }
 0x19d   :  { %2174 = vperm.xlu0 %2664, %v2054_v18  }
 0x19e   :  { %2209 = vperm.xlu1 %2665, %v2061_v20  }
 0x1a1   :  { %2184 = vperm.xlu0 %2664, %v2056_v49  }
 0x1a2   :  { %2219 = vperm.xlu1 %2665, %v2063_v27  }
 0x1a5   :  { %2194 = vperm.xlu0 %2664, %v2058_v30  }
 0x1a6   :  { %2229 = vperm.xlu1 %2665, %v2065_v45  }
 0x1a9   :  { %2204 = vperm.xlu0 %2664, %v2060_v5  }
 0x1aa   :  { %2239 = vperm.xlu1 %2665, %v2067_v2  }
 0x1ad   :  { %2214 = vperm.xlu0 %2664, %v2062_v6  }
 0x1ae   :  { %2249 = vperm.xlu1 %2665, %v2069_v15  }
 0x1b1   :  { %2224 = vperm.xlu0 %2664, %v2064_v61  }
 0x1b2   :  { %2259 = vperm.xlu1 %2665, %v2071_v31  }
 0x1b5   :  { %2234 = vperm.xlu0 %2664, %v2066_v17  }
 0x1b6   :  { %2269 = vperm.xlu1 %2665, %v2073_v42  }
 0x1b9   :  { %2244 = vperm.xlu0 %2664, %v2068_v24  }
 0x1ba   :  { %2279 = vperm.xlu1 %2665, %v2075_v11  }
 0x1bd   :  { %2254 = vperm.xlu0 %2664, %v2070_v32  }
 0x1be   :  { %2289 = vperm.xlu1 %2665, %v2077_v13  }
 0x1c1   :  { %2264 = vperm.xlu0 %2664, %v2072_v43  }
 0x1c2   :  { %2299 = vperm.xlu1 %2665, %v2079_v23   ;;  %v489_v23 = vld [vmem:[%s5025_s2 + $0xe8] sm:$0xff] }
 0x1c5   :  { %2274 = vperm.xlu0 %2664, %v2074_v44   ;;  %v463_v44 = vld [vmem:[%s5025_s2 + $0x18] sm:$0xff] }
 0x1c6   :  { %2309 = vperm.xlu1 %2665, %v2081_v46   ;;  %v490_v46 = vld [vmem:[%s5025_s2 + $0xf0] sm:$0xff] }
 0x1c9   :  { %2284 = vperm.xlu0 %2664, %v2076_v36   ;;  %v464_v36 = vld [vmem:[%s5025_s2 + $0x20] sm:$0xff] }
 0x1ca   :  { %2319 = vperm.xlu1 %2665, %v2083_v63   ;;  %v491_v63 = vld [vmem:[%s5025_s2 + $0xf8] sm:$0xff] }
 0x1cd   :  { %2294 = vperm.xlu0 %2664, %v2078_v21   ;;  %v465_v21 = vld [vmem:[%s5025_s2 + $0x28] sm:$0xff] }
 0x1ce   :  { %2329 = vperm.xlu1 %2665, %v2085_v16   ;;  %v492_v16 = vld [vmem:[%s5025_s2 + $0x100] sm:$0xff] }
 0x1d1   :  { %2304 = vperm.xlu0 %2664, %v2080_v37   ;;  %v466_v37 = vld [vmem:[%s5025_s2 + $0x30] sm:$0xff] }
 0x1d2   :  { %2339 = vperm.xlu1 %2665, %v2087_v48   ;;  %v493_v48 = vld [vmem:[%s5025_s2 + $0x108] sm:$0xff] }
 0x1d5   :  { %2314 = vperm.xlu0 %2664, %v2082_v47   ;;  %v467_v47 = vld [vmem:[%s5025_s2 + $0x38] sm:$0xff] }
 0x1d6   :  { %2349 = vperm.xlu1 %2665, %v2089_v55   ;;  %v494_v55 = vld [vmem:[%s5025_s2 + $0x110] sm:$0xff] }
 0x1d9   :  { %2324 = vperm.xlu0 %2664, %v2084_v38   ;;  %v468_v38 = vld [vmem:[%s5025_s2 + $0x40] sm:$0xff] }
 0x1da   :  { %v399_v51 = vpop.xlane.xlu1 %398 }
 0x1db   :  { %v433_v60 = vmul.f32 0.0051020407, %v399_v51  ;;  %v495_v51 = vld [vmem:[%s5025_s2 + $0x118] sm:$0xff] }
 0x1dd   :  { %2334 = vperm.xlu0 %2664, %v2086_v57   ;;  %v443_v29 = vsub.f32 %v3103_v0, %v433_v60  ;;  %v442_v3 = vsub.f32 %v3101_v25, %v433_v60  ;;  %v469_v57 = vld [vmem:[%s5025_s2 + $0x48] sm:$0xff]  ;;  %v496_v60 = vld [vmem:[%s5025_s2 + $0x120] sm:$0xff] }
 0x1de   :  { %v403_v62 = vpop.xlane.xlu0 %402 }
 0x1df   :  { %v434_v19 = vmul.f32 0.0051020407, %v403_v62  ;;  %v470_v62 = vld [vmem:[%s5025_s2 + $0x50] sm:$0xff] }
 0x1e1   :  { %2344 = vperm.xlu0 %2664, %v2088_v33   ;;  %v445_v53 = vsub.f32 %v3119_v39, %v434_v19  ;;  %v444_v8 = vsub.f32 %v3117_v59, %v434_v19  ;;  %v497_v33 = vld [vmem:[%s5025_s2 + $0x128] sm:$0xff]  ;;  %v471_v19 = vld [vmem:[%s5025_s2 + $0x58] sm:$0xff] }
 0x1e2   :  { %v407_v9 = vpop.xlane.xlu0 %406 }
 0x1e3   :  { %v2636_v10 = vpack.c.bf16 %v445_v53, %v443_v29  ;;  %v2638_v12 = vpack.c.bf16 %v444_v8, %v442_v3  ;;  %v435_v14 = vmul.f32 0.0051020407, %v407_v9  ;;  %v498_v29 = vld [vmem:[%s5025_s2 + $0x130] sm:$0xff]  ;;  %v472_v53 = vld [vmem:[%s5025_s2 + $0x60] sm:$0xff]  ;;  %v499_v3 = vld [vmem:[%s5025_s2 + $0x138] sm:$0xff] }
 0x1e4   :  { %v473_v8 = vld [vmem:[%s5025_s2 + $0x68] sm:$0xff]  ;;  %v500_v9 = vld [vmem:[%s5025_s2 + $0x140] sm:$0xff] }
 0x1e5   :  { %2637 = vmatprep.subr.bf16.mxu0 %v2636_v10  ;;  %2652 = vmatprep.subr.bf16.mxu1 %v2636_v10  ;;  %v446_v49 = vsub.f32 %v3134_v50, %v435_v14  ;;  %v447_v0 = vsub.f32 %v3136_v34, %v435_v14  ;;  %v474_v10 = vld [vmem:[%s5025_s2 + $0x70] sm:$0xff]  ;;  %v475_v14 = vld [vmem:[%s5025_s2 + $0x78] sm:$0xff] }
 0x1e6   :  { %v411_v18 = vpop.xlane.xlu1 %410  ;;  %2639 = vmatpush1.bf16.msra.mxu0 %v2638_v12  ;;  %2657 = vmatpush1.bf16.msra.mxu1 %v2638_v12  ;;  %v501_v12 = vld [vmem:[%s5025_s2 + $0x148] sm:$0xff] }
 0x1e7   :  { %v436_v20 = vmul.f32 0.0051020407, %v411_v18  ;;  %v502_v18 = vld [vmem:[%s5025_s2 + $0x150] sm:$0xff] }
 0x1e9   :  { %v448_v39 = vsub.f32 %v3153_v52, %v436_v20  ;;  %v449_v25 = vsub.f32 %v3155_v4, %v436_v20  ;;  %v476_v20 = vld [vmem:[%s5025_s2 + $0x80] sm:$0xff] }
 0x1ea   :  { %v419_v27 = vpop.xlane.xlu1 %418  ;;  %v415_v59 = vpop.xlane.xlu0 %414 }
 0x1eb   :  { %v438_v30 = vmul.f32 0.0051020407, %v419_v27  ;;  %v437_v45 = vmul.f32 0.0051020407, %v415_v59  ;;  %v2640_v5 = vpack.c.bf16 %v449_v25, %v447_v0  ;;  %v2642_v2 = vpack.c.bf16 %v448_v39, %v446_v49  ;;  %v503_v49 = vld [vmem:[%s5025_s2 + $0x158] sm:$0xff]  ;;  %v477_v0 = vld [vmem:[%s5025_s2 + $0x88] sm:$0xff] }
 0x1ec   :  { %v504_v39 = vld [vmem:[%s5025_s2 + $0x160] sm:$0xff]  ;;  %v478_v25 = vld [vmem:[%s5025_s2 + $0x90] sm:$0xff]  ;;  %v505_v27 = vld [vmem:[%s5025_s2 + $0x168] sm:$0xff] }
 0x1ed   :  { %v452_v6 = vsub.f32 %v3178_v22, %v438_v30  ;;  %v453_v15 = vsub.f32 %v3160_v7, %v438_v30  ;;  %v450_v61 = vsub.f32 %v3180_v1, %v437_v45  ;;  %v451_v50 = vsub.f32 %v3182_v26, %v437_v45  ;;  %2641 = vmatprep.subr.bf16.mxu0 %v2640_v5  ;;  %v479_v59 = vld [vmem:[%s5025_s2 + $0x98] sm:$0xff]  ;;  %v506_v30 = vld [vmem:[%s5025_s2 + $0x170] sm:$0xff]  ;;  %v480_v45 = vld [vmem:[%s5025_s2 + $0xa0] sm:$0xff] }
 0x1ee   :  { %2653 = vmatprep.subr.bf16.mxu1 %v2640_v5  ;;  %v427_v34 = vpop.xlane.xlu1 %426  ;;  %2643 = vmatpush1.bf16.msra.mxu0 %v2642_v2  ;;  %v423_v52 = vpop.xlane.xlu0 %422  ;;  %v507_v5 = vld [vmem:[%s5025_s2 + $0x178] sm:$0xff] }
 0x1ef   :  { %v440_v4 = vmul.f32 0.0051020407, %v427_v34  ;;  %2658 = vmatpush1.bf16.msra.mxu1 %v2642_v2  ;;  %v439_v31 = vmul.f32 0.0051020407, %v423_v52  ;;  %v2644_v17 = vpack.c.bf16 %v453_v15, %v451_v50  ;;  %v2646_v42 = vpack.c.bf16 %v452_v6, %v450_v61  ;;  %v481_v2 = vld [vmem:[%s5025_s2 + $0xa8] sm:$0xff]  ;;  %v508_v6 = vld [vmem:[%s5025_s2 + $0x180] sm:$0xff] }
 0x1f0   :  { %v482_v15 = vld [vmem:[%s5025_s2 + $0xb0] sm:$0xff]  ;;  %v509_v61 = vld [vmem:[%s5025_s2 + $0x188] sm:$0xff]  ;;  %v483_v50 = vld [vmem:[%s5025_s2 + $0xb8] sm:$0xff] }
 0x1f1   :  { %v456_v24 = vsub.f32 %v3201_v35, %v440_v4  ;;  %v457_v22 = vsub.f32 %v3189_v28, %v440_v4  ;;  %v454_v7 = vsub.f32 %v3203_v40, %v439_v31  ;;  %v455_v1 = vsub.f32 %v3205_v41, %v439_v31  ;;  %2645 = vmatprep.subr.bf16.mxu0 %v2644_v17  ;;  %v460_v28 = vld [vmem:[%s5025_s2] sm:$0xff]  ;;  %v487_v40 = vld [vmem:[%s5025_s2 + $0xd8] sm:$0xff]  ;;  %v461_v41 = vld [vmem:[%s5025_s2 + $0x8] sm:$0xff] }
 0x1f2   :  { %2654 = vmatprep.subr.bf16.mxu1 %v2644_v17  ;;  %2647 = vmatpush1.bf16.msra.mxu0 %v2646_v42  ;;  %v510_v34 = vld [vmem:[%s5025_s2 + $0x190] sm:$0xff]  ;;  %v484_v52 = vld [vmem:[%s5025_s2 + $0xc0] sm:$0xff]  ;;  %v511_v4 = vld [vmem:[%s5025_s2 + $0x198] sm:$0xff] }
 0x1f3   :  { %2659 = vmatpush1.bf16.msra.mxu1 %v2646_v42  ;;  %v2648_v26 = vpack.c.bf16 %v457_v22, %v455_v1  ;;  %v2650_v11 = vpack.c.bf16 %v456_v24, %v454_v7  ;;  %v485_v31 = vld [vmem:[%s5025_s2 + $0xc8] sm:$0xff]  ;;  %v512_v17 = vld [vmem:[%s5025_s2 + $0x1a0] sm:$0xff]  ;;  %v486_v42 = vld [vmem:[%s5025_s2 + $0xd0] sm:$0xff]  ;;  %v3672_v22 = vpop.permute.xlu1 %2099 }
 0x1f4   :  { %v431_v32 = vpop.xlane.xlu0 %430  ;;  %v513_v24 = vld [vmem:[%s5025_s2 + $0x1a8] sm:$0xff] }
 0x1f5   :  { %v441_v13 = vmul.f32 0.0051020407, %v431_v32  ;;  %2649 = vmatprep.subr.bf16.mxu0 %v2648_v26  ;;  %2655 = vmatprep.subr.bf16.mxu1 %v2648_v26 }
 0x1f6   :  { %2651 = vmatpush1.bf16.msra.mxu0 %v2650_v11 }
 0x1f7   :  { %v458_v43 = vsub.f32 %v3221_v58, %v441_v13  ;;  %v459_v35 = vsub.f32 %v3223_v54, %v441_v13  ;;  %2660 = vmatpush1.bf16.msra.mxu1 %v2650_v11  ;;  %v488_v58 = vld [vmem:[%s5025_s2 + $0xe0] sm:$0xff]  ;;  %v462_v54 = vld [vmem:[%s5025_s2 + $0x10] sm:$0xff]  ;;  %v3676_v1 = vpop.permute.xlu1 %2109 }
 0x1f9   :  { %693 = vmatprep.subr.mxu0 %v459_v35  ;;  %2656 = vmatprep.subr.mxu1 %v459_v35 }
 0x1fa   :  { %694 = vmatpush1.msra.mxu0 %v458_v43 }
 0x1fb   :  { %2661 = vmatpush1.msra.mxu1 %v458_v43  ;;  %2582 = vmatmul.mubr.msk.f32.vlgmr.msra.gmra.mrb[0].mxu0 %vm514_vm1, %v460_v28 }
 0x1fc   :  { %2609 = vmatmul.mubr.msk.f32.vlgmr.msra.gmra.mrb[0].mxu1 %vm514_vm1, %v487_v40  ;;  %747 = vmatprep.mubr.f32.mxu0 %v2793_v56  ;;  %v3674_v7 = vpop.permute.xlu0 %2094  ;;  %v3694_v40 = vpop.permute.xlu1 %2119 }
 0x1fd   :  { %909 = vmatprep.mubr.f32.mxu1 %v2793_v56 }
 0x1ff   :  { %2583 = vmatmul.mubr.msk.f32.gmra.mrb[2].mxu0 %vm514_vm1, %v461_v41 }
 0x200   :  { %2610 = vmatmul.mubr.msk.f32.gmra.mrb[2].mxu1 %vm514_vm1, %v488_v58  ;;  %753 = vmatprep.mubr.f32.mxu0 %v2793_v56  ;;  %v3678_v26 = vpop.permute.xlu0 %2104 }
 0x201   :  { %915 = vmatprep.mubr.f32.mxu1 %v2793_v56 }
 0x203   :  { %2584 = vmatmul.mubr.msk.f32.gmra.mrb[4].mxu0 %vm514_vm1, %v462_v54 }
 0x204   :  { %2611 = vmatmul.mubr.msk.f32.gmra.mrb[4].mxu1 %vm514_vm1, %v489_v23  ;;  %759 = vmatprep.mubr.f32.mxu0 %v2793_v56 }
 0x205   :  { %921 = vmatprep.mubr.f32.mxu1 %v2793_v56 }
 0x207   :  { %2585 = vmatmul.mubr.msk.f32.gmra.mrb[6].mxu0 %vm514_vm1, %v463_v44 }
 0x208   :  { %2612 = vmatmul.mubr.msk.f32.gmra.mrb[6].mxu1 %vm514_vm1, %v490_v46  ;;  %765 = vmatprep.mubr.f32.mxu0 %v2793_v56 }
 0x209   :  { %927 = vmatprep.mubr.f32.mxu1 %v2793_v56 }
 0x20b   :  { %2586 = vmatmul.mubr.msk.f32.gmra.mrb[8].mxu0 %vm514_vm1, %v464_v36 }
 0x20c   :  { %2613 = vmatmul.mubr.msk.f32.gmra.mrb[8].mxu1 %vm514_vm1, %v491_v63  ;;  %771 = vmatprep.mubr.f32.mxu0 %v2793_v56  ;;  %v3706_v63 = vpop.permute.xlu0 %2114 }
 0x20d   :  { %933 = vmatprep.mubr.f32.mxu1 %v2793_v56 }
 0x20f   :  { %2587 = vmatmul.mubr.msk.f32.gmra.mrb[10].mxu0 %vm514_vm1, %v465_v21 }
 0x210   :  { %2614 = vmatmul.mubr.msk.f32.gmra.mrb[10].mxu1 %vm514_vm1, %v492_v16  ;;  %777 = vmatprep.mubr.f32.mxu0 %v2793_v56 }
 0x211   :  { %939 = vmatprep.mubr.f32.mxu1 %v2793_v56 }
 0x213   :  { %2588 = vmatmul.mubr.msk.f32.gmra.mrb[12].mxu0 %vm514_vm1, %v466_v37 }
 0x214   :  { %2615 = vmatmul.mubr.msk.f32.gmra.mrb[12].mxu1 %vm514_vm1, %v493_v48  ;;  %783 = vmatprep.mubr.f32.mxu0 %v2793_v56 }
 0x215   :  { %945 = vmatprep.mubr.f32.mxu1 %v2793_v56 }
 0x217   :  { %2589 = vmatmul.mubr.msk.f32.gmra.mrb[14].mxu0 %vm514_vm1, %v467_v47 }
 0x218   :  { %2616 = vmatmul.mubr.msk.f32.gmra.mrb[14].mxu1 %vm514_vm1, %v494_v55  ;;  %789 = vmatprep.mubr.f32.mxu0 %v2793_v56 }
 0x219   :  { %951 = vmatprep.mubr.f32.mxu1 %v2793_v56 }
 0x21b   :  { %2590 = vmatmul.mubr.msk.f32.gmra.mrb[16].mxu0 %vm514_vm1, %v468_v38 }
 0x21c   :  { %2617 = vmatmul.mubr.msk.f32.gmra.mrb[16].mxu1 %vm514_vm1, %v495_v51  ;;  %795 = vmatprep.mubr.f32.mxu0 %v2793_v56 }
 0x21d   :  { %957 = vmatprep.mubr.f32.mxu1 %v2793_v56 }
 0x21f   :  { %2591 = vmatmul.mubr.msk.f32.gmra.mrb[18].mxu0 %vm514_vm1, %v469_v57 }
 0x220   :  { %2618 = vmatmul.mubr.msk.f32.gmra.mrb[18].mxu1 %vm514_vm1, %v496_v60  ;;  %801 = vmatprep.mubr.f32.mxu0 %v2793_v56 }
 0x221   :  { %963 = vmatprep.mubr.f32.mxu1 %v2793_v56 }
 0x223   :  { %2592 = vmatmul.mubr.msk.f32.gmra.mrb[20].mxu0 %vm514_vm1, %v470_v62 }
 0x224   :  { %2619 = vmatmul.mubr.msk.f32.gmra.mrb[20].mxu1 %vm514_vm1, %v497_v33  ;;  %807 = vmatprep.mubr.f32.mxu0 %v2793_v56 }
 0x225   :  { %969 = vmatprep.mubr.f32.mxu1 %v2793_v56 }
 0x227   :  { %2593 = vmatmul.mubr.msk.f32.gmra.mrb[22].mxu0 %vm514_vm1, %v471_v19  ;;  %v3726_v19 = vpop.permute.xlu1 %2129 }
 0x228   :  { %2620 = vmatmul.mubr.msk.f32.gmra.mrb[22].mxu1 %vm514_vm1, %v498_v29  ;;  %813 = vmatprep.mubr.f32.mxu0 %v2793_v56  ;;  %5143 = vst [vmem:[#allocation2_spill] sm:$0xff] %v3726_v19 }
 0x229   :  { %975 = vmatprep.mubr.f32.mxu1 %v2793_v56 }
 0x22b   :  { %2594 = vmatmul.mubr.msk.f32.gmra.mrb[24].mxu0 %vm514_vm1, %v472_v53 }
 0x22c   :  { %2621 = vmatmul.mubr.msk.f32.gmra.mrb[24].mxu1 %vm514_vm1, %v499_v3  ;;  %819 = vmatprep.mubr.f32.mxu0 %v2793_v56 }
 0x22d   :  { %981 = vmatprep.mubr.f32.mxu1 %v2793_v56 }
 0x22f   :  { %2595 = vmatmul.mubr.msk.f32.gmra.mrb[26].mxu0 %vm514_vm1, %v473_v8 }
 0x230   :  { %2622 = vmatmul.mubr.msk.f32.gmra.mrb[26].mxu1 %vm514_vm1, %v500_v9  ;;  %825 = vmatprep.mubr.f32.mxu0 %v2793_v56 }
 0x231   :  { %987 = vmatprep.mubr.f32.mxu1 %v2793_v56 }
 0x233   :  { %2596 = vmatmul.mubr.msk.f32.gmra.mrb[28].mxu0 %vm514_vm1, %v474_v10 }
 0x234   :  { %2623 = vmatmul.mubr.msk.f32.gmra.mrb[28].mxu1 %vm514_vm1, %v501_v12  ;;  %831 = vmatprep.mubr.f32.mxu0 %v2793_v56  ;;  %v3738_v12 = vpop.permute.xlu0 %2124 }
 0x235   :  { %993 = vmatprep.mubr.f32.mxu1 %v2793_v56 }
 0x237   :  { %2597 = vmatmul.mubr.msk.f32.gmra.mrb[30].mxu0 %vm514_vm1, %v475_v14 }
 0x238   :  { %2624 = vmatmul.mubr.msk.f32.gmra.mrb[30].mxu1 %vm514_vm1, %v502_v18  ;;  %837 = vmatprep.mubr.f32.mxu0 %v2793_v56 }
 0x239   :  { %999 = vmatprep.mubr.f32.mxu1 %v2793_v56 }
 0x23b   :  { %2598 = vmatmul.mubr.msk.f32.gmra.mrb[32].mxu0 %vm514_vm1, %v476_v20 }
 0x23c   :  { %2625 = vmatmul.mubr.msk.f32.gmra.mrb[32].mxu1 %vm514_vm1, %v503_v49  ;;  %843 = vmatprep.mubr.f32.mxu0 %v2793_v56 }
 0x23d   :  { %1005 = vmatprep.mubr.f32.mxu1 %v2793_v56 }
 0x23f   :  { %2599 = vmatmul.mubr.msk.f32.gmra.mrb[34].mxu0 %vm514_vm1, %v477_v0 }
 0x240   :  { %2626 = vmatmul.mubr.msk.f32.gmra.mrb[34].mxu1 %vm514_vm1, %v504_v39  ;;  %849 = vmatprep.mubr.f32.mxu0 %v2793_v56 }
 0x241   :  { %1011 = vmatprep.mubr.f32.mxu1 %v2793_v56 }
 0x243   :  { %2600 = vmatmul.mubr.msk.f32.gmra.mrb[36].mxu0 %vm514_vm1, %v478_v25 }
 0x244   :  { %2627 = vmatmul.mubr.msk.f32.gmra.mrb[36].mxu1 %vm514_vm1, %v505_v27  ;;  %855 = vmatprep.mubr.f32.mxu0 %v2793_v56 }
 0x245   :  { %1017 = vmatprep.mubr.f32.mxu1 %v2793_v56 }
 0x247   :  { %2601 = vmatmul.mubr.msk.f32.gmra.mrb[38].mxu0 %vm514_vm1, %v479_v59 }
 0x248   :  { %2628 = vmatmul.mubr.msk.f32.gmra.mrb[38].mxu1 %vm514_vm1, %v506_v30  ;;  %861 = vmatprep.mubr.f32.mxu0 %v2793_v56 }
 0x249   :  { %1023 = vmatprep.mubr.f32.mxu1 %v2793_v56 }
 0x24b   :  { %2602 = vmatmul.mubr.msk.f32.gmra.mrb[40].mxu0 %vm514_vm1, %v480_v45 }
 0x24c   :  { %2629 = vmatmul.mubr.msk.f32.gmra.mrb[40].mxu1 %vm514_vm1, %v507_v5  ;;  %867 = vmatprep.mubr.f32.mxu0 %v2793_v56 }
 0x24d   :  { %1029 = vmatprep.mubr.f32.mxu1 %v2793_v56 }
 0x24f   :  { %2603 = vmatmul.mubr.msk.f32.gmra.mrb[42].mxu0 %vm514_vm1, %v481_v2  ;;  %v3758_v2 = vpop.permute.xlu1 %2139 }
 0x250   :  { %2630 = vmatmul.mubr.msk.f32.gmra.mrb[42].mxu1 %vm514_vm1, %v508_v6  ;;  %873 = vmatprep.mubr.f32.mxu0 %v2793_v56  ;;  %5144 = vst [vmem:[#allocation3_spill] sm:$0xff] %v3758_v2 }
 0x251   :  { %1035 = vmatprep.mubr.f32.mxu1 %v2793_v56 }
 0x253   :  { %2604 = vmatmul.mubr.msk.f32.gmra.mrb[44].mxu0 %vm514_vm1, %v482_v15 }
 0x254   :  { %2631 = vmatmul.mubr.msk.f32.gmra.mrb[44].mxu1 %vm514_vm1, %v509_v61  ;;  %879 = vmatprep.mubr.f32.mxu0 %v2793_v56 }
 0x255   :  { %1041 = vmatprep.mubr.f32.mxu1 %v2793_v56 }
 0x257   :  { %2605 = vmatmul.mubr.msk.f32.gmra.mrb[46].mxu0 %vm514_vm1, %v483_v50 }
 0x258   :  { %2632 = vmatmul.mubr.msk.f32.gmra.mrb[46].mxu1 %vm514_vm1, %v510_v34  ;;  %885 = vmatprep.mubr.f32.mxu0 %v2793_v56 }
 0x259   :  { %1047 = vmatprep.mubr.f32.mxu1 %v2793_v56 }
 0x25b   :  { %2606 = vmatmul.mubr.msk.f32.gmra.mrb[48].mxu0 %vm514_vm1, %v484_v52 }
 0x25c   :  { %2633 = vmatmul.mubr.msk.f32.gmra.mrb[48].mxu1 %vm514_vm1, %v511_v4  ;;  %891 = vmatprep.mubr.f32.mxu0 %v2793_v56 }
 0x25d   :  { %1053 = vmatprep.mubr.f32.mxu1 %v2793_v56 }
 0x25f   :  { %2607 = vmatmul.mubr.msk.f32.gmra.mrb[50].mxu0 %vm514_vm1, %v485_v31  ;;  %v3770_v31 = vpop.permute.xlu0 %2134 }
 0x260   :  { %2634 = vmatmul.mubr.msk.f32.gmra.mrb[50].mxu1 %vm514_vm1, %v512_v17  ;;  %897 = vmatprep.mubr.f32.mxu0 %v2793_v56  ;;  %5145 = vst [vmem:[#allocation4_spill] sm:$0xff] %v3770_v31 }
 0x261   :  { %1059 = vmatprep.mubr.f32.mxu1 %v2793_v56 }
 0x263   :  { %2608 = vmatmul.mubr.msk.f32.gmra.mrb[52].mxu0 %vm514_vm1, %v486_v42 }
 0x264   :  { %2635 = vmatmul.mubr.msk.f32.gmra.mrb[52].mxu1 %vm514_vm1, %v513_v24 }
 0x2ce   :  { %v3680_v11 = vpop.f32.mrb[0].mxu0 }
 0x2cf   :  { %v3682_v32 = vpop.f32.mrb[0].mxu1  ;;  %v3684_v56 = vpop.f32.mrb[1].mxu0  ;;  %v1066_v35 = vmul.f32 %v3680_v11, %v3680_v11 }
 0x2d0   :  { %v1067_v13 = vmul.f32 %v3684_v56, %v3684_v56  ;;  %v3688_v43 = vpop.f32.mrb[1].mxu1  ;;  %v1120_v41 = vmul.f32 %v3682_v32, %v3682_v32 }
 0x2d1   :  { %v1121_v28 = vmul.f32 %v3688_v43, %v3688_v43 }
 0x2d2   :  { %v1174_v58 = vsel %vm44_vm0, %v1067_v13, 0.0  ;;  %v3699_v54 = vpop.f32.mrb[2].mxu0 }
 0x2d3   :  { %v3701_v23 = vpop.f32.mrb[2].mxu1  ;;  %v3703_v44 = vpop.f32.mrb[3].mxu0  ;;  %v1282_v46 = vsel %vm44_vm0, %v1121_v28, 0.0  ;;  %v1175_v36 = vadd.f32 %v1174_v58, %v1066_v35  ;;  %v1068_v48 = vmul.f32 %v3699_v54, %v3699_v54 }
 0x2d4   :  { %v1069_v21 = vmul.f32 %v3703_v44, %v3703_v44  ;;  %v3710_v16 = vpop.f32.mrb[3].mxu1  ;;  %v1283_v37 = vadd.f32 %v1282_v46, %v1120_v41  ;;  %v1122_v55 = vmul.f32 %v3701_v23, %v3701_v23 }
 0x2d5   :  { %v1123_v47 = vmul.f32 %v3710_v16, %v3710_v16  ;;  %1176 = vadd.xlane.f32.xlu1 %v1175_v36 }
 0x2d6   :  { %1284 = vadd.xlane.f32.xlu0 %v1283_v37  ;;  %v3718_v38 = vpop.f32.mrb[4].mxu0  ;;  %v1178_v51 = vsel %vm44_vm0, %v1069_v21, 0.0 }
 0x2d7   :  { %v1286_v57 = vsel %vm44_vm0, %v1123_v47, 0.0  ;;  %v3722_v60 = vpop.f32.mrb[5].mxu0  ;;  %v3724_v62 = vpop.f32.mrb[4].mxu1  ;;  %v1179_v33 = vadd.f32 %v1178_v51, %v1068_v48  ;;  %v1070_v9 = vmul.f32 %v3718_v38, %v3718_v38 }
 0x2d8   :  { %v1071_v29 = vmul.f32 %v3722_v60, %v3722_v60  ;;  %v1124_v53 = vmul.f32 %v3724_v62, %v3724_v62  ;;  %v3732_v3 = vpop.f32.mrb[5].mxu1  ;;  %v1287_v8 = vadd.f32 %v1286_v57, %v1122_v55  ;;  %v3790_v48 = vpop.permute.xlu1 %2149 }
 0x2d9   :  { %v1125_v10 = vmul.f32 %v3732_v3, %v3732_v3  ;;  %5146 = vst [vmem:[#allocation5_spill] sm:$0xff] %v3790_v48 }
 0x2da   :  { %v1182_v14 = vsel %vm44_vm0, %v1071_v29, 0.0  ;;  %1288 = vadd.xlane.f32.xlu1 %v1287_v8  ;;  %1180 = vadd.xlane.f32.xlu0 %v1179_v33  ;;  %v3741_v18 = vpop.f32.mrb[6].mxu0  ;;  %v3800_v29 = vpop.permute.xlu0 %2144 }
 0x2db   :  { %v3743_v20 = vpop.f32.mrb[6].mxu1  ;;  %v1072_v49 = vmul.f32 %v3741_v18, %v3741_v18  ;;  %v1183_v0 = vadd.f32 %v1182_v14, %v1070_v9  ;;  %v3747_v39 = vpop.f32.mrb[7].mxu0  ;;  %v1290_v25 = vsel %vm44_vm0, %v1125_v10, 0.0  ;;  %5147 = vst [vmem:[#allocation6_spill] sm:$0xff] %v3800_v29 }
 0x2dc   :  { %v1126_v27 = vmul.f32 %v3743_v20, %v3743_v20  ;;  %v3752_v59 = vpop.f32.mrb[7].mxu1  ;;  %v1073_v30 = vmul.f32 %v3747_v39, %v3747_v39  ;;  %v1291_v45 = vadd.f32 %v1290_v25, %v1124_v53 }
 0x2dd   :  { %v1127_v5 = vmul.f32 %v3752_v59, %v3752_v59 }
 0x2de   :  { %1184 = vadd.xlane.f32.xlu1 %v1183_v0  ;;  %v1186_v6 = vsel %vm44_vm0, %v1073_v30, 0.0  ;;  %v3761_v15 = vpop.f32.mrb[8].mxu0  ;;  %1292 = vadd.xlane.f32.xlu0 %v1291_v45 }
 0x2df   :  { %v1294_v61 = vsel %vm44_vm0, %v1127_v5, 0.0  ;;  %v1074_v50 = vmul.f32 %v3761_v15, %v3761_v15  ;;  %v3766_v34 = vpop.f32.mrb[9].mxu0  ;;  %v3768_v52 = vpop.f32.mrb[8].mxu1  ;;  %v1187_v4 = vadd.f32 %v1186_v6, %v1072_v49 }
 0x2e0   :  { %v1075_v17 = vmul.f32 %v3766_v34, %v3766_v34  ;;  %v1128_v42 = vmul.f32 %v3768_v52, %v3768_v52  ;;  %v3776_v24 = vpop.f32.mrb[9].mxu1  ;;  %v1295_v13 = vadd.f32 %v1294_v61, %v1126_v27  ;;  %v3820_v6 = vpop.permute.xlu1 %2159 }
 0x2e1   :  { %v1129_v35 = vmul.f32 %v3776_v24, %v3776_v24  ;;  %5148 = vst [vmem:[#allocation7_spill] sm:$0xff] %v3820_v6 }
 0x2e2   :  { %v1190_v28 = vsel %vm44_vm0, %v1075_v17, 0.0  ;;  %1296 = vadd.xlane.f32.xlu1 %v1295_v13  ;;  %1188 = vadd.xlane.f32.xlu0 %v1187_v4  ;;  %v3781_v41 = vpop.f32.mrb[10].mxu0 }
 0x2e3   :  { %v1298_v58 = vsel %vm44_vm0, %v1129_v35, 0.0  ;;  %v3784_v46 = vpop.f32.mrb[10].mxu1  ;;  %v1076_v36 = vmul.f32 %v3781_v41, %v3781_v41  ;;  %v1191_v21 = vadd.f32 %v1190_v28, %v1074_v50  ;;  %v3788_v37 = vpop.f32.mrb[11].mxu0 }
 0x2e4   :  { %v1130_v47 = vmul.f32 %v3784_v46, %v3784_v46  ;;  %v3794_v55 = vpop.f32.mrb[11].mxu1  ;;  %v1077_v51 = vmul.f32 %v3788_v37, %v3788_v37  ;;  %v1299_v57 = vadd.f32 %v1298_v58, %v1128_v42  ;;  %v3832_v28 = vpop.permute.xlu0 %2154 }
 0x2e5   :  { %v1131_v33 = vmul.f32 %v3794_v55, %v3794_v55  ;;  %5151 = vst [vmem:[#allocation10_spill] sm:$0xff] %v3832_v28 }
 0x2e6   :  { %1192 = vadd.xlane.f32.xlu1 %v1191_v21  ;;  %v1194_v53 = vsel %vm44_vm0, %v1077_v51, 0.0  ;;  %v3803_v8 = vpop.f32.mrb[12].mxu0  ;;  %1300 = vadd.xlane.f32.xlu0 %v1299_v57 }
 0x2e7   :  { %v1302_v9 = vsel %vm44_vm0, %v1131_v33, 0.0  ;;  %v1078_v10 = vmul.f32 %v3803_v8, %v3803_v8  ;;  %v3808_v14 = vpop.f32.mrb[13].mxu0  ;;  %v3810_v49 = vpop.f32.mrb[12].mxu1  ;;  %v1195_v0 = vadd.f32 %v1194_v53, %v1076_v36 }
 0x2e8   :  { %v1079_v25 = vmul.f32 %v3808_v14, %v3808_v14  ;;  %v1132_v27 = vmul.f32 %v3810_v49, %v3810_v49  ;;  %v3816_v30 = vpop.f32.mrb[13].mxu1  ;;  %v1303_v45 = vadd.f32 %v1302_v9, %v1130_v47 }
 0x2e9   :  { %v1133_v5 = vmul.f32 %v3816_v30, %v3816_v30 }
 0x2ea   :  { %v1198_v61 = vsel %vm44_vm0, %v1079_v25, 0.0  ;;  %1304 = vadd.xlane.f32.xlu1 %v1303_v45  ;;  %1196 = vadd.xlane.f32.xlu0 %v1195_v0  ;;  %v3823_v50 = vpop.f32.mrb[14].mxu0 }
 0x2eb   :  { %5149 = vst [vmem:[#allocation8_spill] sm:$0xff] %v3823_v50  ;;  %v1306_v4 = vsel %vm44_vm0, %v1133_v5, 0.0  ;;  %v3826_v17 = vpop.f32.mrb[14].mxu1  ;;  %v1080_v42 = vmul.f32 %v3823_v50, %v3823_v50  ;;  %v1199_v13 = vadd.f32 %v1198_v61, %v1078_v10  ;;  %v3830_v35 = vpop.f32.mrb[15].mxu0 }
 0x2ec   :  { %5150 = vst [vmem:[#allocation9_spill] sm:$0xff] %v3830_v35  ;;  %v1134_v58 = vmul.f32 %v3826_v17, %v3826_v17  ;;  %v3836_v36 = vpop.f32.mrb[15].mxu1  ;;  %v1081_v21 = vmul.f32 %v3830_v35, %v3830_v35  ;;  %v1307_v47 = vadd.f32 %v1306_v4, %v1132_v27  ;;  %v3852_v27 = vpop.permute.xlu1 %2169 }
 0x2ed   :  { %v1135_v51 = vmul.f32 %v3836_v36, %v3836_v36  ;;  %5155 = vst [vmem:[#allocation14_spill] sm:$0xff] %v3852_v27 }
 0x2ee   :  { %1200 = vadd.xlane.f32.xlu1 %v1199_v13  ;;  %v1202_v57 = vsel %vm44_vm0, %v1081_v21, 0.0  ;;  %v3843_v33 = vpop.f32.mrb[16].mxu0  ;;  %1308 = vadd.xlane.f32.xlu0 %v1307_v47  ;;  %v3862_v21 = vpop.permute.xlu0 %2164 }
 0x2ef   :  { %5152 = vst [vmem:[#allocation11_spill] sm:$0xff] %v3843_v33  ;;  %v1310_v53 = vsel %vm44_vm0, %v1135_v51, 0.0  ;;  %v1082_v9 = vmul.f32 %v3843_v33, %v3843_v33  ;;  %v3848_v10 = vpop.f32.mrb[17].mxu0  ;;  %v3850_v0 = vpop.f32.mrb[16].mxu1  ;;  %v1203_v25 = vadd.f32 %v1202_v57, %v1080_v42  ;;  %5157 = vst [vmem:[#allocation16_spill] sm:$0xff] %v3862_v21 }
 0x2f0   :  { %5153 = vst [vmem:[#allocation12_spill] sm:$0xff] %v3848_v10  ;;  %5154 = vst [vmem:[#allocation13_spill] sm:$0xff] %v3850_v0  ;;  %v1083_v45 = vmul.f32 %v3848_v10, %v3848_v10  ;;  %v1136_v5 = vmul.f32 %v3850_v0, %v3850_v0  ;;  %v3858_v61 = vpop.f32.mrb[17].mxu1  ;;  %v1311_v4 = vadd.f32 %v1310_v53, %v1134_v58 }
 0x2f1   :  { %5156 = vst [vmem:[#allocation15_spill] sm:$0xff] %v3858_v61  ;;  %v1137_v13 = vmul.f32 %v3858_v61, %v3858_v61 }
 0x2f2   :  { %v1206_v47 = vsel %vm44_vm0, %v1083_v45, 0.0  ;;  %1312 = vadd.xlane.f32.xlu1 %v1311_v4  ;;  %1204 = vadd.xlane.f32.xlu0 %v1203_v25  ;;  %v3865_v42 = vpop.f32.mrb[18].mxu0 }
 0x2f3   :  { %5158 = vst [vmem:[#allocation17_spill] sm:$0xff] %v3865_v42  ;;  %v1314_v51 = vsel %vm44_vm0, %v1137_v13, 0.0  ;;  %v3868_v57 = vpop.f32.mrb[18].mxu1  ;;  %v1084_v27 = vmul.f32 %v3865_v42, %v3865_v42  ;;  %v1207_v6 = vadd.f32 %v1206_v47, %v1082_v9  ;;  %v3872_v58 = vpop.f32.mrb[19].mxu0 }
 0x2f4   :  { %5159 = vst [vmem:[#allocation18_spill] sm:$0xff] %v3868_v57  ;;  %5160 = vst [vmem:[#allocation19_spill] sm:$0xff] %v3872_v58  ;;  %v1138_v53 = vmul.f32 %v3868_v57, %v3868_v57  ;;  %v3876_v21 = vpop.f32.mrb[19].mxu1  ;;  %v1085_v25 = vmul.f32 %v3872_v58, %v3872_v58  ;;  %v1315_v45 = vadd.f32 %v1314_v51, %v1136_v5  ;;  %v3882_v13 = vpop.permute.xlu1 %2179 }
 0x2f5   :  { %5161 = vst [vmem:[#allocation20_spill] sm:$0xff] %v3876_v21  ;;  %v1139_v4 = vmul.f32 %v3876_v21, %v3876_v21  ;;  %5162 = vst [vmem:[#allocation21_spill] sm:$0xff] %v3882_v13  ;;  %v3894_v51 = vpop.permute.xlu0 %2174 }
 0x2f6   :  { %1208 = vadd.xlane.f32.xlu1 %v1207_v6  ;;  %v1210_v28 = vsel %vm44_vm0, %v1085_v25, 0.0  ;;  %v3885_v9 = vpop.f32.mrb[20].mxu0  ;;  %1316 = vadd.xlane.f32.xlu0 %v1315_v45  ;;  %5166 = vst [vmem:[#allocation25_spill] sm:$0xff] %v3894_v51 }
 0x2f7   :  { %5163 = vst [vmem:[#allocation22_spill] sm:$0xff] %v3885_v9  ;;  %v1318_v47 = vsel %vm44_vm0, %v1139_v4, 0.0  ;;  %v1086_v48 = vmul.f32 %v3885_v9, %v3885_v9  ;;  %v3890_v29 = vpop.f32.mrb[21].mxu0  ;;  %v3892_v2 = vpop.f32.mrb[20].mxu1  ;;  %v1211_v5 = vadd.f32 %v1210_v28, %v1084_v27 }
 0x2f8   :  { %5164 = vst [vmem:[#allocation23_spill] sm:$0xff] %v3890_v29  ;;  %5165 = vst [vmem:[#allocation24_spill] sm:$0xff] %v3892_v2  ;;  %v1087_v6 = vmul.f32 %v3890_v29, %v3890_v29  ;;  %v1140_v25 = vmul.f32 %v3892_v2, %v3892_v2  ;;  %v3900_v13 = vpop.f32.mrb[21].mxu1  ;;  %v1319_v45 = vadd.f32 %v1318_v47, %v1138_v53  ;;  %v3914_v53 = vpop.permute.xlu1 %2189 }
 0x2f9   :  { %5167 = vst [vmem:[#allocation26_spill] sm:$0xff] %v3900_v13  ;;  %v1141_v4 = vmul.f32 %v3900_v13, %v3900_v13  ;;  %5171 = vst [vmem:[#allocation30_spill] sm:$0xff] %v3914_v53  ;;  %v3924_v13 = vpop.permute.xlu0 %2184 }
 0x2fa   :  { %v1214_v9 = vsel %vm44_vm0, %v1087_v6, 0.0  ;;  %1320 = vadd.xlane.f32.xlu1 %v1319_v45  ;;  %1212 = vadd.xlane.f32.xlu0 %v1211_v5  ;;  %v3905_v58 = vpop.f32.mrb[22].mxu0  ;;  %5173 = vst [vmem:[#allocation32_spill] sm:$0xff] %v3924_v13 }
 0x2fb   :  { %5168 = vst [vmem:[#allocation27_spill] sm:$0xff] %v3905_v58  ;;  %v1322_v28 = vsel %vm44_vm0, %v1141_v4, 0.0  ;;  %v3908_v27 = vpop.f32.mrb[22].mxu1  ;;  %v1088_v51 = vmul.f32 %v3905_v58, %v3905_v58  ;;  %v1215_v2 = vadd.f32 %v1214_v9, %v1086_v48  ;;  %v3912_v29 = vpop.f32.mrb[23].mxu0 }
 0x2fc   :  { %5169 = vst [vmem:[#allocation28_spill] sm:$0xff] %v3908_v27  ;;  %5170 = vst [vmem:[#allocation29_spill] sm:$0xff] %v3912_v29  ;;  %v1142_v47 = vmul.f32 %v3908_v27, %v3908_v27  ;;  %v3918_v6 = vpop.f32.mrb[23].mxu1  ;;  %v1089_v5 = vmul.f32 %v3912_v29, %v3912_v29  ;;  %v1323_v45 = vadd.f32 %v1322_v28, %v1140_v25 }
 0x2fd   :  { %5172 = vst [vmem:[#allocation31_spill] sm:$0xff] %v3918_v6  ;;  %v1143_v4 = vmul.f32 %v3918_v6, %v3918_v6 }
 0x2fe   :  { %1216 = vadd.xlane.f32.xlu1 %v1215_v2  ;;  %v1218_v48 = vsel %vm44_vm0, %v1089_v5, 0.0  ;;  %v3927_v9 = vpop.f32.mrb[24].mxu0  ;;  %1324 = vadd.xlane.f32.xlu0 %v1323_v45 }
 0x2ff   :  { %5174 = vst [vmem:[#allocation33_spill] sm:$0xff] %v3927_v9  ;;  %v1326_v53 = vsel %vm44_vm0, %v1143_v4, 0.0  ;;  %v1090_v58 = vmul.f32 %v3927_v9, %v3927_v9  ;;  %v3932_v27 = vpop.f32.mrb[25].mxu0  ;;  %v3934_v29 = vpop.f32.mrb[24].mxu1  ;;  %v1219_v25 = vadd.f32 %v1218_v48, %v1088_v51 }
 0x300   :  { %5175 = vst [vmem:[#allocation34_spill] sm:$0xff] %v3932_v27  ;;  %5176 = vst [vmem:[#allocation35_spill] sm:$0xff] %v3934_v29  ;;  %v1091_v28 = vmul.f32 %v3932_v27, %v3932_v27  ;;  %v1144_v2 = vmul.f32 %v3934_v29, %v3934_v29  ;;  %v3940_v5 = vpop.f32.mrb[25].mxu1  ;;  %v1327_v13 = vadd.f32 %v1326_v53, %v1142_v47  ;;  %v3944_v4 = vpop.permute.xlu1 %2199 }
 0x301   :  { %5177 = vst [vmem:[#allocation36_spill] sm:$0xff] %v3940_v5  ;;  %v1145_v45 = vmul.f32 %v3940_v5, %v3940_v5  ;;  %5178 = vst [vmem:[#allocation37_spill] sm:$0xff] %v3944_v4  ;;  %v3956_v47 = vpop.permute.xlu0 %2194 }
 0x302   :  { %v1222_v9 = vsel %vm44_vm0, %v1091_v28, 0.0  ;;  %1328 = vadd.xlane.f32.xlu1 %v1327_v13  ;;  %1220 = vadd.xlane.f32.xlu0 %v1219_v25  ;;  %v3947_v6 = vpop.f32.mrb[26].mxu0  ;;  %5182 = vst [vmem:[#allocation41_spill] sm:$0xff] %v3956_v47 }
 0x303   :  { %5179 = vst [vmem:[#allocation38_spill] sm:$0xff] %v3947_v6  ;;  %v1330_v51 = vsel %vm44_vm0, %v1145_v45, 0.0  ;;  %v3950_v48 = vpop.f32.mrb[26].mxu1  ;;  %v1092_v29 = vmul.f32 %v3947_v6, %v3947_v6  ;;  %v1223_v27 = vadd.f32 %v1222_v9, %v1090_v58  ;;  %v3954_v53 = vpop.f32.mrb[27].mxu0 }
 0x304   :  { %5180 = vst [vmem:[#allocation39_spill] sm:$0xff] %v3950_v48  ;;  %5181 = vst [vmem:[#allocation40_spill] sm:$0xff] %v3954_v53  ;;  %v1146_v4 = vmul.f32 %v3950_v48, %v3950_v48  ;;  %v3960_v28 = vpop.f32.mrb[27].mxu1  ;;  %v1093_v13 = vmul.f32 %v3954_v53, %v3954_v53  ;;  %v1331_v25 = vadd.f32 %v1330_v51, %v1144_v2  ;;  %v3976_v2 = vpop.permute.xlu1 %2209 }
 0x305   :  { %5183 = vst [vmem:[#allocation42_spill] sm:$0xff] %v3960_v28  ;;  %v1147_v45 = vmul.f32 %v3960_v28, %v3960_v28  ;;  %5187 = vst [vmem:[#allocation46_spill] sm:$0xff] %v3976_v2 }
 0x306   :  { %1224 = vadd.xlane.f32.xlu1 %v1223_v27  ;;  %v1226_v6 = vsel %vm44_vm0, %v1093_v13, 0.0  ;;  %v3967_v58 = vpop.f32.mrb[28].mxu0  ;;  %1332 = vadd.xlane.f32.xlu0 %v1331_v25 }
 0x307   :  { %5184 = vst [vmem:[#allocation43_spill] sm:$0xff] %v3967_v58  ;;  %v1334_v9 = vsel %vm44_vm0, %v1147_v45, 0.0  ;;  %v1094_v47 = vmul.f32 %v3967_v58, %v3967_v58  ;;  %v3972_v48 = vpop.f32.mrb[29].mxu0  ;;  %v3974_v5 = vpop.f32.mrb[28].mxu1  ;;  %v1227_v53 = vadd.f32 %v1226_v6, %v1092_v29 }
 0x308   :  { %5185 = vst [vmem:[#allocation44_spill] sm:$0xff] %v3972_v48  ;;  %5186 = vst [vmem:[#allocation45_spill] sm:$0xff] %v3974_v5  ;;  %v1095_v27 = vmul.f32 %v3972_v48, %v3972_v48  ;;  %v1148_v51 = vmul.f32 %v3974_v5, %v3974_v5  ;;  %v3982_v13 = vpop.f32.mrb[29].mxu1  ;;  %v1335_v25 = vadd.f32 %v1334_v9, %v1146_v4  ;;  %v3986_v58 = vpop.permute.xlu0 %2204 }
 0x309   :  { %5188 = vst [vmem:[#allocation47_spill] sm:$0xff] %v3982_v13  ;;  %v1149_v45 = vmul.f32 %v3982_v13, %v3982_v13  ;;  %5189 = vst [vmem:[#allocation48_spill] sm:$0xff] %v3986_v58 }
 0x30a   :  { %v1230_v28 = vsel %vm44_vm0, %v1095_v27, 0.0  ;;  %1336 = vadd.xlane.f32.xlu1 %v1335_v25  ;;  %1228 = vadd.xlane.f32.xlu0 %v1227_v53  ;;  %v3989_v29 = vpop.f32.mrb[30].mxu0 }
 0x30b   :  { %5190 = vst [vmem:[#allocation49_spill] sm:$0xff] %v3989_v29  ;;  %v1338_v6 = vsel %vm44_vm0, %v1149_v45, 0.0  ;;  %v3992_v2 = vpop.f32.mrb[30].mxu1  ;;  %v1096_v5 = vmul.f32 %v3989_v29, %v3989_v29  ;;  %v1231_v48 = vadd.f32 %v1230_v28, %v1094_v47  ;;  %v3996_v4 = vpop.f32.mrb[31].mxu0 }
 0x30c   :  { %5191 = vst [vmem:[#allocation50_spill] sm:$0xff] %v3992_v2  ;;  %5192 = vst [vmem:[#allocation51_spill] sm:$0xff] %v3996_v4  ;;  %v1150_v9 = vmul.f32 %v3992_v2, %v3992_v2  ;;  %v4000_v58 = vpop.f32.mrb[31].mxu1  ;;  %v1097_v53 = vmul.f32 %v3996_v4, %v3996_v4  ;;  %v1339_v27 = vadd.f32 %v1338_v6, %v1148_v51  ;;  %v4006_v45 = vpop.permute.xlu1 %2219 }
 0x30d   :  { %5193 = vst [vmem:[#allocation52_spill] sm:$0xff] %v4000_v58  ;;  %v1151_v25 = vmul.f32 %v4000_v58, %v4000_v58  ;;  %5194 = vst [vmem:[#allocation53_spill] sm:$0xff] %v4006_v45  ;;  %v4018_v6 = vpop.permute.xlu0 %2214 }
 0x30e   :  { %1232 = vadd.xlane.f32.xlu1 %v1231_v48  ;;  %v1234_v29 = vsel %vm44_vm0, %v1097_v53, 0.0  ;;  %v4009_v47 = vpop.f32.mrb[32].mxu0  ;;  %1340 = vadd.xlane.f32.xlu0 %v1339_v27  ;;  %5198 = vst [vmem:[#allocation57_spill] sm:$0xff] %v4018_v6 }
 0x30f   :  { %5195 = vst [vmem:[#allocation54_spill] sm:$0xff] %v4009_v47  ;;  %v1342_v28 = vsel %vm44_vm0, %v1151_v25, 0.0  ;;  %v1098_v2 = vmul.f32 %v4009_v47, %v4009_v47  ;;  %v4014_v13 = vpop.f32.mrb[33].mxu0  ;;  %v4016_v4 = vpop.f32.mrb[32].mxu1  ;;  %v1235_v51 = vadd.f32 %v1234_v29, %v1096_v5 }
 0x310   :  { %5196 = vst [vmem:[#allocation55_spill] sm:$0xff] %v4014_v13  ;;  %5197 = vst [vmem:[#allocation56_spill] sm:$0xff] %v4016_v4  ;;  %v1099_v48 = vmul.f32 %v4014_v13, %v4014_v13  ;;  %v1152_v53 = vmul.f32 %v4016_v4, %v4016_v4  ;;  %v4024_v45 = vpop.f32.mrb[33].mxu1  ;;  %v1343_v27 = vadd.f32 %v1342_v28, %v1150_v9  ;;  %v4038_v9 = vpop.permute.xlu1 %2229 }
 0x311   :  { %5199 = vst [vmem:[#allocation58_spill] sm:$0xff] %v4024_v45  ;;  %v1153_v25 = vmul.f32 %v4024_v45, %v4024_v45  ;;  %v4048_v45 = vpop.permute.xlu0 %2224 }
 0x312   :  { %v1238_v47 = vsel %vm44_vm0, %v1099_v48, 0.0  ;;  %1344 = vadd.xlane.f32.xlu1 %v1343_v27  ;;  %1236 = vadd.xlane.f32.xlu0 %v1235_v51  ;;  %v4029_v58 = vpop.f32.mrb[34].mxu0  ;;  %5204 = vst [vmem:[#allocation63_spill] sm:$0xff] %v4048_v45 }
 0x313   :  { %5200 = vst [vmem:[#allocation59_spill] sm:$0xff] %v4029_v58  ;;  %v1346_v5 = vsel %vm44_vm0, %v1153_v25, 0.0  ;;  %v4032_v29 = vpop.f32.mrb[34].mxu1  ;;  %v1100_v6 = vmul.f32 %v4029_v58, %v4029_v58  ;;  %v1239_v4 = vadd.f32 %v1238_v47, %v1098_v2  ;;  %v4036_v13 = vpop.f32.mrb[35].mxu0 }
 0x314   :  { %5201 = vst [vmem:[#allocation60_spill] sm:$0xff] %v4032_v29  ;;  %5202 = vst [vmem:[#allocation61_spill] sm:$0xff] %v4036_v13  ;;  %v1154_v28 = vmul.f32 %v4032_v29, %v4032_v29  ;;  %v4042_v48 = vpop.f32.mrb[35].mxu1  ;;  %v1101_v51 = vmul.f32 %v4036_v13, %v4036_v13  ;;  %v1347_v27 = vadd.f32 %v1346_v5, %v1152_v53 }
 0x315   :  { %5203 = vst [vmem:[#allocation62_spill] sm:$0xff] %v4042_v48  ;;  %v1155_v25 = vmul.f32 %v4042_v48, %v4042_v48 }
 0x316   :  { %1240 = vadd.xlane.f32.xlu1 %v1239_v4  ;;  %v1242_v2 = vsel %vm44_vm0, %v1101_v51, 0.0  ;;  %v4051_v47 = vpop.f32.mrb[36].mxu0  ;;  %1348 = vadd.xlane.f32.xlu0 %v1347_v27 }
 0x317   :  { %5205 = vst [vmem:[#allocation64_spill] sm:$0xff] %v4051_v47  ;;  %v1350_v58 = vsel %vm44_vm0, %v1155_v25, 0.0  ;;  %v1102_v29 = vmul.f32 %v4051_v47, %v4051_v47  ;;  %v4056_v42 = vpop.f32.mrb[37].mxu0  ;;  %v4058_v13 = vpop.f32.mrb[36].mxu1  ;;  %v1243_v53 = vadd.f32 %v1242_v2, %v1100_v6 }
 0x318   :  { %5206 = vst [vmem:[#allocation65_spill] sm:$0xff] %v4056_v42  ;;  %5207 = vst [vmem:[#allocation66_spill] sm:$0xff] %v4058_v13  ;;  %v1103_v5 = vmul.f32 %v4056_v42, %v4056_v42  ;;  %v1156_v4 = vmul.f32 %v4058_v13, %v4058_v13  ;;  %v4064_v51 = vpop.f32.mrb[37].mxu1  ;;  %v1351_v45 = vadd.f32 %v1350_v58, %v1154_v28  ;;  %v4068_v25 = vpop.permute.xlu1 %2239 }
 0x319   :  { %5208 = vst [vmem:[#allocation67_spill] sm:$0xff] %v4064_v51  ;;  %v1157_v27 = vmul.f32 %v4064_v51, %v4064_v51  ;;  %v4080_v28 = vpop.permute.xlu0 %2234 }
 0x31a   :  { %v1246_v47 = vsel %vm44_vm0, %v1103_v5, 0.0  ;;  %1352 = vadd.xlane.f32.xlu1 %v1351_v45  ;;  %1244 = vadd.xlane.f32.xlu0 %v1243_v53  ;;  %v4071_v48 = vpop.f32.mrb[38].mxu0 }
 0x31b   :  { %5209 = vst [vmem:[#allocation68_spill] sm:$0xff] %v4071_v48  ;;  %v1354_v6 = vsel %vm44_vm0, %v1157_v27, 0.0  ;;  %v4074_v2 = vpop.f32.mrb[38].mxu1  ;;  %v1104_v13 = vmul.f32 %v4071_v48, %v4071_v48  ;;  %v1247_v42 = vadd.f32 %v1246_v47, %v1102_v29  ;;  %v4078_v58 = vpop.f32.mrb[39].mxu0 }
 0x31c   :  { %5210 = vst [vmem:[#allocation69_spill] sm:$0xff] %v4074_v2  ;;  %5211 = vst [vmem:[#allocation70_spill] sm:$0xff] %v4078_v58  ;;  %v1158_v51 = vmul.f32 %v4074_v2, %v4074_v2  ;;  %v4084_v5 = vpop.f32.mrb[39].mxu1  ;;  %v1105_v45 = vmul.f32 %v4078_v58, %v4078_v58  ;;  %v1355_v53 = vadd.f32 %v1354_v6, %v1156_v4  ;;  %v4100_v4 = vpop.permute.xlu1 %2249 }
 0x31d   :  { %5212 = vst [vmem:[#allocation71_spill] sm:$0xff] %v4084_v5  ;;  %v1159_v27 = vmul.f32 %v4084_v5, %v4084_v5 }
 0x31e   :  { %1248 = vadd.xlane.f32.xlu1 %v1247_v42  ;;  %v1250_v48 = vsel %vm44_vm0, %v1105_v45, 0.0  ;;  %v4091_v29 = vpop.f32.mrb[40].mxu0  ;;  %1356 = vadd.xlane.f32.xlu0 %v1355_v53 }
 0x31f   :  { %5213 = vst [vmem:[#allocation72_spill] sm:$0xff] %v4091_v29  ;;  %v1358_v47 = vsel %vm44_vm0, %v1159_v27, 0.0  ;;  %v1106_v2 = vmul.f32 %v4091_v29, %v4091_v29  ;;  %v4096_v21 = vpop.f32.mrb[41].mxu0  ;;  %v4098_v57 = vpop.f32.mrb[40].mxu1  ;;  %v1251_v58 = vadd.f32 %v1250_v48, %v1104_v13 }
 0x320   :  { %5214 = vst [vmem:[#allocation73_spill] sm:$0xff] %v4096_v21  ;;  %5215 = vst [vmem:[#allocation74_spill] sm:$0xff] %v4098_v57  ;;  %v1107_v42 = vmul.f32 %v4096_v21, %v4096_v21  ;;  %v1160_v6 = vmul.f32 %v4098_v57, %v4098_v57  ;;  %v4106_v45 = vpop.f32.mrb[41].mxu1  ;;  %v1359_v53 = vadd.f32 %v1358_v47, %v1158_v51  ;;  %v4110_v29 = vpop.permute.xlu0 %2244 }
 0x321   :  { %5216 = vst [vmem:[#allocation75_spill] sm:$0xff] %v4106_v45  ;;  %v1161_v27 = vmul.f32 %v4106_v45, %v4106_v45 }
 0x322   :  { %v1254_v5 = vsel %vm44_vm0, %v1107_v42, 0.0  ;;  %1360 = vadd.xlane.f32.xlu1 %v1359_v53  ;;  %1252 = vadd.xlane.f32.xlu0 %v1251_v58  ;;  %v4113_v13 = vpop.f32.mrb[42].mxu0 }
 0x323   :  { %5217 = vst [vmem:[#allocation76_spill] sm:$0xff] %v4113_v13  ;;  %v1362_v48 = vsel %vm44_vm0, %v1161_v27, 0.0  ;;  %v4116_v21 = vpop.f32.mrb[42].mxu1  ;;  %v1108_v57 = vmul.f32 %v4113_v13, %v4113_v13  ;;  %v1255_v61 = vadd.f32 %v1254_v5, %v1106_v2  ;;  %v4120_v51 = vpop.f32.mrb[43].mxu0 }
 0x324   :  { %5218 = vst [vmem:[#allocation77_spill] sm:$0xff] %v4116_v21  ;;  %5219 = vst [vmem:[#allocation78_spill] sm:$0xff] %v4120_v51  ;;  %v1162_v47 = vmul.f32 %v4116_v21, %v4116_v21  ;;  %v4124_v45 = vpop.f32.mrb[43].mxu1  ;;  %v1109_v58 = vmul.f32 %v4120_v51, %v4120_v51  ;;  %v1363_v42 = vadd.f32 %v1362_v48, %v1160_v6  ;;  %v4130_v27 = vpop.permute.xlu1 %2259 }
 0x325   :  { %5220 = vst [vmem:[#allocation79_spill] sm:$0xff] %v4124_v45  ;;  %v1163_v53 = vmul.f32 %v4124_v45, %v4124_v45  ;;  %v4142_v48 = vpop.permute.xlu0 %2254 }
 0x326   :  { %1256 = vadd.xlane.f32.xlu1 %v1255_v61  ;;  %v1258_v13 = vsel %vm44_vm0, %v1109_v58, 0.0  ;;  %v4133_v2 = vpop.f32.mrb[44].mxu0  ;;  %1364 = vadd.xlane.f32.xlu0 %v1363_v42 }
 0x327   :  { %5221 = vst [vmem:[#allocation80_spill] sm:$0xff] %v4133_v2  ;;  %v1366_v5 = vsel %vm44_vm0, %v1163_v53, 0.0  ;;  %v1110_v21 = vmul.f32 %v4133_v2, %v4133_v2  ;;  %v4138_v0 = vpop.f32.mrb[45].mxu0  ;;  %v4140_v51 = vpop.f32.mrb[44].mxu1  ;;  %v1259_v6 = vadd.f32 %v1258_v13, %v1108_v57 }
 0x328   :  { %5222 = vst [vmem:[#allocation81_spill] sm:$0xff] %v4138_v0  ;;  %5223 = vst [vmem:[#allocation82_spill] sm:$0xff] %v4140_v51  ;;  %v1111_v61 = vmul.f32 %v4138_v0, %v4138_v0  ;;  %v1164_v58 = vmul.f32 %v4140_v51, %v4140_v51  ;;  %v4148_v45 = vpop.f32.mrb[45].mxu1  ;;  %v1367_v42 = vadd.f32 %v1366_v5, %v1162_v47 }
 0x329   :  { %5224 = vst [vmem:[#allocation83_spill] sm:$0xff] %v4148_v45  ;;  %v1165_v53 = vmul.f32 %v4148_v45, %v4148_v45  ;;  %v4172_v45 = vpop.permute.xlu0 %2264 }
 0x32a   :  { %v1262_v2 = vsel %vm44_vm0, %v1111_v61, 0.0  ;;  %1368 = vadd.xlane.f32.xlu1 %v1367_v42  ;;  %1260 = vadd.xlane.f32.xlu0 %v1259_v6  ;;  %v4153_v31 = vpop.f32.mrb[46].mxu0  ;;  %v4168_v42 = vpop.permute.xlu1 %2269 }
 0x32b   :  { %5225 = vst [vmem:[#allocation84_spill] sm:$0xff] %v4153_v31  ;;  %v1370_v57 = vsel %vm44_vm0, %v1165_v53, 0.0  ;;  %v4156_v13 = vpop.f32.mrb[46].mxu1  ;;  %v1112_v0 = vmul.f32 %v4153_v31, %v4153_v31  ;;  %v1263_v51 = vadd.f32 %v1262_v2, %v1110_v21  ;;  %v4160_v19 = vpop.f32.mrb[47].mxu0  ;;  %5229 = vst [vmem:[#allocation88_spill] sm:$0xff] %v4168_v42 }
 0x32c   :  { %5226 = vst [vmem:[#allocation85_spill] sm:$0xff] %v4156_v13  ;;  %5227 = vst [vmem:[#allocation86_spill] sm:$0xff] %v4160_v19  ;;  %v1166_v47 = vmul.f32 %v4156_v13, %v4156_v13  ;;  %v4164_v5 = vpop.f32.mrb[47].mxu1  ;;  %v1113_v6 = vmul.f32 %v4160_v19, %v4160_v19  ;;  %v1371_v61 = vadd.f32 %v1370_v57, %v1164_v58 }
 0x32d   :  { %5228 = vst [vmem:[#allocation87_spill] sm:$0xff] %v4164_v5  ;;  %v1167_v53 = vmul.f32 %v4164_v5, %v4164_v5 }
 0x32e   :  { %1264 = vadd.xlane.f32.xlu1 %v1263_v51  ;;  %v1266_v21 = vsel %vm44_vm0, %v1113_v6, 0.0  ;;  %v4175_v2 = vpop.f32.mrb[48].mxu0  ;;  %1372 = vadd.xlane.f32.xlu0 %v1371_v61 }
 0x32f   :  { %5230 = vst [vmem:[#allocation89_spill] sm:$0xff] %v4175_v2  ;;  %v1374_v31 = vsel %vm44_vm0, %v1167_v53, 0.0  ;;  %v1114_v13 = vmul.f32 %v4175_v2, %v4175_v2  ;;  %v4180_v19 = vpop.f32.mrb[49].mxu0  ;;  %v4182_v58 = vpop.f32.mrb[48].mxu1  ;;  %v1267_v57 = vadd.f32 %v1266_v21, %v1112_v0 }
 0x330   :  { %5231 = vst [vmem:[#allocation90_spill] sm:$0xff] %v4180_v19  ;;  %5232 = vst [vmem:[#allocation91_spill] sm:$0xff] %v4182_v58  ;;  %v1115_v5 = vmul.f32 %v4180_v19, %v4180_v19  ;;  %v1168_v51 = vmul.f32 %v4182_v58, %v4182_v58  ;;  %v4188_v6 = vpop.f32.mrb[49].mxu1  ;;  %v1375_v42 = vadd.f32 %v1374_v31, %v1166_v47  ;;  %v4202_v31 = vpop.permute.xlu1 %2279 }
 0x331   :  { %5233 = vst [vmem:[#allocation92_spill] sm:$0xff] %v4188_v6  ;;  %v1169_v61 = vmul.f32 %v4188_v6, %v4188_v6  ;;  %5237 = vst [vmem:[#allocation96_spill] sm:$0xff] %v4202_v31 }
 0x332   :  { %v1270_v53 = vsel %vm44_vm0, %v1115_v5, 0.0  ;;  %1376 = vadd.xlane.f32.xlu1 %v1375_v42  ;;  %1268 = vadd.xlane.f32.xlu0 %v1267_v57  ;;  %v4193_v2 = vpop.f32.mrb[50].mxu0 }
 0x333   :  { %5234 = vst [vmem:[#allocation93_spill] sm:$0xff] %v4193_v2  ;;  %v1378_v0 = vsel %vm44_vm0, %v1169_v61, 0.0  ;;  %v4196_v21 = vpop.f32.mrb[50].mxu1  ;;  %v1116_v19 = vmul.f32 %v4193_v2, %v4193_v2  ;;  %v1271_v58 = vadd.f32 %v1270_v53, %v1114_v13  ;;  %v4200_v10 = vpop.f32.mrb[51].mxu0 }
 0x334   :  { %5235 = vst [vmem:[#allocation94_spill] sm:$0xff] %v4196_v21  ;;  %5236 = vst [vmem:[#allocation95_spill] sm:$0xff] %v4200_v10  ;;  %v1170_v47 = vmul.f32 %v4196_v21, %v4196_v21  ;;  %v4206_v5 = vpop.f32.mrb[51].mxu1  ;;  %v1117_v42 = vmul.f32 %v4200_v10, %v4200_v10  ;;  %v1379_v57 = vadd.f32 %v1378_v0, %v1168_v51  ;;  %v4210_v61 = vpop.permute.xlu0 %2274 }
 0x335   :  { %5238 = vst [vmem:[#allocation97_spill] sm:$0xff] %v4206_v5  ;;  %5239 = vst [vmem:[#allocation98_spill] sm:$0xff] %v4210_v61  ;;  %v1171_v6 = vmul.f32 %v4206_v5, %v4206_v5 }
 0x336   :  { %1272 = vadd.xlane.f32.xlu1 %v1271_v58  ;;  %v1274_v13 = vsel %vm44_vm0, %v1117_v42, 0.0  ;;  %v4215_v53 = vpop.f32.mrb[52].mxu0  ;;  %1380 = vadd.xlane.f32.xlu0 %v1379_v57  ;;  %v4232_v57 = vpop.permute.xlu1 %2289 }
 0x337   :  { %5240 = vst [vmem:[#allocation99_spill] sm:$0xff] %v4215_v53  ;;  %v1382_v2 = vsel %vm44_vm0, %v1171_v6, 0.0  ;;  %v1118_v21 = vmul.f32 %v4215_v53, %v4215_v53  ;;  %v4220_v31 = vpop.f32.mrb[53].mxu0  ;;  %v4222_v10 = vpop.f32.mrb[52].mxu1  ;;  %v1275_v51 = vadd.f32 %v1274_v13, %v1116_v19  ;;  %5244 = vst [vmem:[#allocation103_spill] sm:$0xff] %v4232_v57 }
 0x338   :  { %5241 = vst [vmem:[#allocation100_spill] sm:$0xff] %v4220_v31  ;;  %5242 = vst [vmem:[#allocation101_spill] sm:$0xff] %v4222_v10  ;;  %v1119_v0 = vmul.f32 %v4220_v31, %v4220_v31  ;;  %v1172_v58 = vmul.f32 %v4222_v10, %v4222_v10  ;;  %v4228_v42 = vpop.f32.mrb[53].mxu1  ;;  %v1383_v5 = vadd.f32 %v1382_v2, %v1170_v47  ;;  %v4235_v61 = vpop.permute.xlu0 %2284 }
 0x339   :  { %5243 = vst [vmem:[#allocation102_spill] sm:$0xff] %v4228_v42  ;;  %v1173_v6 = vmul.f32 %v4228_v42, %v4228_v42  ;;  %5245 = vst [vmem:[#allocation104_spill] sm:$0xff] %v4235_v61 }
 0x33a   :  { %v1278_v53 = vsel %vm44_vm0, %v1119_v0, 0.0  ;;  %1384 = vadd.xlane.f32.xlu1 %v1383_v5  ;;  %1276 = vadd.xlane.f32.xlu0 %v1275_v51  ;;  %v4238_v10 = vpop.permute.xlu1 %2299 }
 0x33b   :  { %v1279_v19 = vadd.f32 %v1278_v53, %v1118_v21  ;;  %v1386_v13 = vsel %vm44_vm0, %v1173_v6, 0.0  ;;  %5246 = vst [vmem:[#allocation105_spill] sm:$0xff] %v4238_v10 }
 0x33c   :  { %v1387_v31 = vadd.f32 %v1386_v13, %v1172_v58  ;;  %v4240_v2 = vpop.permute.xlu0 %2294 }
 0x33d   :  { %5247 = vst [vmem:[#allocation106_spill] sm:$0xff] %v4240_v2 }
 0x33e   :  { %1280 = vadd.xlane.f32.xlu1 %v1279_v19  ;;  %1388 = vadd.xlane.f32.xlu0 %v1387_v31  ;;  %v4242_v47 = vpop.permute.xlu1 %2309 }
 0x33f   :  { %5248 = vst [vmem:[#allocation107_spill] sm:$0xff] %v4242_v47 }
 0x340   :  { %v4244_v42 = vpop.permute.xlu0 %2304 }
 0x341   :  { %5249 = vst [vmem:[#allocation108_spill] sm:$0xff] %v4244_v42 }
 0x342   :  { %v4246_v57 = vpop.permute.xlu1 %2319 }
 0x343   :  { %5250 = vst [vmem:[#allocation109_spill] sm:$0xff] %v4246_v57 }
 0x344   :  { %v4248_v5 = vpop.permute.xlu0 %2314 }
 0x345   :  { %5251 = vst [vmem:[#allocation110_spill] sm:$0xff] %v4248_v5 }
 0x346   :  { %v4250_v51 = vpop.permute.xlu1 %2329 }
 0x347   :  { %5252 = vst [vmem:[#allocation111_spill] sm:$0xff] %v4250_v51 }
 0x348   :  { %v4252_v21 = vpop.permute.xlu0 %2324 }
 0x349   :  { %5253 = vst [vmem:[#allocation112_spill] sm:$0xff] %v4252_v21 }
 0x34a   :  { %v4254_v53 = vpop.permute.xlu1 %2339 }
 0x34b   :  { %5254 = vst [vmem:[#allocation113_spill] sm:$0xff] %v4254_v53 }
 0x34c   :  { %v4256_v0 = vpop.permute.xlu0 %2334 }
 0x34d   :  { %5255 = vst [vmem:[#allocation114_spill] sm:$0xff] %v4256_v0 }
 0x34e   :  { %v4258_v31 = vpop.permute.xlu1 %2349 }
 0x34f   :  { %5256 = vst [vmem:[#allocation115_spill] sm:$0xff] %v4258_v31 }
 0x350   :  { %v4260_v58 = vpop.permute.xlu0 %2344 }
 0x351   :  { %5257 = vst [vmem:[#allocation116_spill] sm:$0xff] %v4260_v58 }
 0x362   :  { %v1177_v6 = vpop.xlane.xlu1 %1176 }
 0x363   :  { %v1390_v19 = vmul.f32 0.0051020407, %v1177_v6  ;;  %v1285_v13 = vpop.xlane.xlu0 %1284 }
 0x364   :  { %v1417_v47 = vmul.f32 0.0051020407, %v1285_v13 }
 0x365   :  { %v1498_v42 = vadd.f32 1e-05, %v1390_v19 }
 0x366   :  { %v1525_v57 = vadd.f32 1e-05, %v1417_v47 }
 0x367   :  { %2684 = vrsqrt.f32 %v1498_v42  ;;  %v1289_v5 = vpop.xlane.xlu1 %1288  ;;  %v1181_v10 = vpop.xlane.xlu0 %1180  ;;  %v1444_v42 = vld [vmem:[%s5026_s5] sm:$0xff] }
 0x368   :  { %v1418_v51 = vmul.f32 0.0051020407, %v1289_v5  ;;  %v1391_v2 = vmul.f32 0.0051020407, %v1181_v10  ;;  %2686 = vrsqrt.f32 %v1525_v57 }
 0x36a   :  { %v1499_v21 = vadd.f32 1e-05, %v1391_v2  ;;  %v1526_v53 = vadd.f32 1e-05, %v1418_v51 }
 0x36b   :  { %v1185_v61 = vpop.xlane.xlu1 %1184  ;;  %v1293_v0 = vpop.xlane.xlu0 %1292 }
 0x36c   :  { %v1392_v33 = vmul.f32 0.0051020407, %v1185_v61  ;;  %v1419_v31 = vmul.f32 0.0051020407, %v1293_v0  ;;  %2688 = vrsqrt.f32 %v1499_v21 }
 0x36d   :  { %2690 = vrsqrt.f32 %v1526_v53 }
 0x36e   :  { %v1500_v58 = vadd.f32 1e-05, %v1392_v33  ;;  %v1527_v35 = vadd.f32 1e-05, %v1419_v31  ;;  %v1471_v33 = vld [vmem:[%s5026_s5 + $0xd8] sm:$0xff] }
 0x36f   :  { %v1297_v6 = vpop.xlane.xlu1 %1296  ;;  %v1189_v13 = vpop.xlane.xlu0 %1188 }
 0x370   :  { %2692 = vrsqrt.f32 %v1500_v58  ;;  %v1420_v47 = vmul.f32 0.0051020407, %v1297_v6  ;;  %v1393_v10 = vmul.f32 0.0051020407, %v1189_v13  ;;  %v1445_v58 = vld [vmem:[%s5026_s5 + $0x8] sm:$0xff] }
 0x371   :  { %v2685_v57 = vpop.eup %2684  ;;  %2694 = vrsqrt.f32 %v1527_v35 }
 0x372   :  { %v1528_v2 = vadd.f32 1e-05, %v1420_v47  ;;  %v1501_v5 = vadd.f32 1e-05, %v1393_v10  ;;  %v1606_v51 = vmul.f32 %v2685_v57, %v1444_v42  ;;  %v2687_v61 = vpop.eup %2686 }
 0x373   :  { %v1193_v0 = vpop.xlane.xlu1 %1192  ;;  %v1301_v21 = vpop.xlane.xlu0 %1300  ;;  %v1633_v6 = vmul.f32 %v2687_v61, %v1471_v33 }
 0x374   :  { %2696 = vrsqrt.f32 %v1528_v2  ;;  %v1394_v53 = vmul.f32 0.0051020407, %v1193_v0  ;;  %1662 = vperm.xlu1 %2665, %v1606_v51   ;;  %v1421_v31 = vmul.f32 0.0051020407, %v1301_v21  ;;  %v1446_v2 = vld [vmem:[%s5026_s5 + $0x10] sm:$0xff] }
 0x375   :  { %2698 = vrsqrt.f32 %v1501_v5  ;;  %v1472_v5 = vld [vmem:[%s5026_s5 + $0xe0] sm:$0xff] }
 0x376   :  { %v1502_v35 = vadd.f32 1e-05, %v1394_v53  ;;  %v1529_v19 = vadd.f32 1e-05, %v1421_v31  ;;  %v2689_v13 = vpop.eup %2688 }
 0x377   :  { %v1305_v42 = vpop.xlane.xlu1 %1304  ;;  %v1197_v47 = vpop.xlane.xlu0 %1196  ;;  %v1607_v57 = vmul.f32 %v2689_v13, %v1445_v58 }
 0x378   :  { %2700 = vrsqrt.f32 %v1502_v35  ;;  %v1422_v10 = vmul.f32 0.0051020407, %v1305_v42  ;;  %1797 = vperm.xlu1 %2665, %v1633_v6   ;;  %v1395_v50 = vmul.f32 0.0051020407, %v1197_v47  ;;  %v2691_v51 = vpop.eup %2690  ;;  %v1474_v42 = vld [vmem:[%s5026_s5 + $0xf0] sm:$0xff]  ;;  %v1473_v47 = vld [vmem:[%s5026_s5 + $0xe8] sm:$0xff] }
 0x379   :  { %2702 = vrsqrt.f32 %v1529_v19  ;;  %1667 = vperm.xlu0 %2664, %v1607_v57   ;;  %v1634_v6 = vmul.f32 %v2691_v51, %v1472_v5 }
 0x37a   :  { %v2693_v0 = vpop.eup %2692  ;;  %v1530_v61 = vadd.f32 1e-05, %v1422_v10  ;;  %v1503_v21 = vadd.f32 1e-05, %v1395_v50 }
 0x37b   :  { %v1201_v33 = vpop.xlane.xlu1 %1200  ;;  %v1608_v53 = vmul.f32 %v2693_v0, %v1446_v2  ;;  %v1309_v31 = vpop.xlane.xlu0 %1308 }
 0x37c   :  { %v2695_v35 = vpop.eup %2694  ;;  %2704 = vrsqrt.f32 %v1530_v61  ;;  %v1396_v58 = vmul.f32 0.0051020407, %v1201_v33  ;;  %v1423_v13 = vmul.f32 0.0051020407, %v1309_v31  ;;  %v1448_v31 = vld [vmem:[%s5026_s5 + $0x20] sm:$0xff] }
 0x37d   :  { %1672 = vperm.xlu1 %2665, %v1608_v53   ;;  %2706 = vrsqrt.f32 %v1503_v21  ;;  %1802 = vperm.xlu0 %2664, %v1634_v6   ;;  %v1635_v0 = vmul.f32 %v2695_v35, %v1473_v47  ;;  %v1447_v53 = vld [vmem:[%s5026_s5 + $0x18] sm:$0xff] }
 0x37e   :  { %v2697_v19 = vpop.eup %2696  ;;  %v1504_v50 = vadd.f32 1e-05, %v1396_v58  ;;  %v1531_v10 = vadd.f32 1e-05, %v1423_v13 }
 0x37f   :  { %v1313_v57 = vpop.xlane.xlu1 %1312  ;;  %v1636_v2 = vmul.f32 %v2697_v19, %v1474_v42  ;;  %v1205_v61 = vpop.xlane.xlu0 %1204 }
 0x380   :  { %v2699_v51 = vpop.eup %2698  ;;  %2708 = vrsqrt.f32 %v1504_v50  ;;  %v1424_v5 = vmul.f32 0.0051020407, %v1313_v57  ;;  %v1397_v33 = vmul.f32 0.0051020407, %v1205_v61  ;;  %v1476_v61 = vld [vmem:[%s5026_s5 + $0x100] sm:$0xff] }
 0x381   :  { %1807 = vperm.xlu1 %2665, %v1635_v0   ;;  %2710 = vrsqrt.f32 %v1531_v10  ;;  %1812 = vperm.xlu0 %2664, %v1636_v2   ;;  %v1609_v42 = vmul.f32 %v2699_v51, %v1447_v53  ;;  %v1475_v0 = vld [vmem:[%s5026_s5 + $0xf8] sm:$0xff] }
 0x382   :  { %v2701_v21 = vpop.eup %2700  ;;  %v1532_v58 = vadd.f32 1e-05, %v1424_v5  ;;  %v1505_v6 = vadd.f32 1e-05, %v1397_v33 }
 0x383   :  { %v1209_v35 = vpop.xlane.xlu1 %1208  ;;  %v1610_v13 = vmul.f32 %v2701_v21, %v1448_v31  ;;  %v1317_v47 = vpop.xlane.xlu0 %1316 }
 0x384   :  { %v2703_v19 = vpop.eup %2702  ;;  %2712 = vrsqrt.f32 %v1532_v58  ;;  %v1398_v50 = vmul.f32 0.0051020407, %v1209_v35  ;;  %v1425_v57 = vmul.f32 0.0051020407, %v1317_v47  ;;  %v1450_v47 = vld [vmem:[%s5026_s5 + $0x30] sm:$0xff] }
 0x385   :  { %1677 = vperm.xlu1 %2665, %v1609_v42   ;;  %2714 = vrsqrt.f32 %v1505_v6  ;;  %1682 = vperm.xlu0 %2664, %v1610_v13   ;;  %v1637_v31 = vmul.f32 %v2703_v19, %v1475_v0  ;;  %v1449_v42 = vld [vmem:[%s5026_s5 + $0x28] sm:$0xff] }
 0x386   :  { %v2705_v10 = vpop.eup %2704  ;;  %v1506_v2 = vadd.f32 1e-05, %v1398_v50  ;;  %v1533_v5 = vadd.f32 1e-05, %v1425_v57 }
 0x387   :  { %v1321_v51 = vpop.xlane.xlu1 %1320  ;;  %v1638_v33 = vmul.f32 %v2705_v10, %v1476_v61  ;;  %v1213_v53 = vpop.xlane.xlu0 %1212 }
 0x388   :  { %v2707_v21 = vpop.eup %2706  ;;  %2716 = vrsqrt.f32 %v1506_v2  ;;  %v1426_v58 = vmul.f32 0.0051020407, %v1321_v51  ;;  %v1399_v35 = vmul.f32 0.0051020407, %v1213_v53  ;;  %v1478_v53 = vld [vmem:[%s5026_s5 + $0x110] sm:$0xff] }
 0x389   :  { %1817 = vperm.xlu1 %2665, %v1637_v31   ;;  %2718 = vrsqrt.f32 %v1533_v5  ;;  %1822 = vperm.xlu0 %2664, %v1638_v33   ;;  %v1611_v61 = vmul.f32 %v2707_v21, %v1449_v42  ;;  %v1477_v31 = vld [vmem:[%s5026_s5 + $0x108] sm:$0xff] }
 0x38a   :  { %v2709_v6 = vpop.eup %2708  ;;  %v1534_v13 = vadd.f32 1e-05, %v1426_v58  ;;  %v1507_v50 = vadd.f32 1e-05, %v1399_v35 }
 0x38b   :  { %v1217_v19 = vpop.xlane.xlu1 %1216  ;;  %v1612_v57 = vmul.f32 %v2709_v6, %v1450_v47  ;;  %v1325_v0 = vpop.xlane.xlu0 %1324 }
 0x38c   :  { %v2711_v10 = vpop.eup %2710  ;;  %2720 = vrsqrt.f32 %v1534_v13  ;;  %v1400_v2 = vmul.f32 0.0051020407, %v1217_v19  ;;  %v1427_v51 = vmul.f32 0.0051020407, %v1325_v0  ;;  %v1452_v0 = vld [vmem:[%s5026_s5 + $0x40] sm:$0xff] }
 0x38d   :  { %1687 = vperm.xlu1 %2665, %v1611_v61   ;;  %2722 = vrsqrt.f32 %v1507_v50  ;;  %1692 = vperm.xlu0 %2664, %v1612_v57   ;;  %v1639_v47 = vmul.f32 %v2711_v10, %v1477_v31  ;;  %v1451_v61 = vld [vmem:[%s5026_s5 + $0x38] sm:$0xff] }
 0x38e   :  { %v2713_v5 = vpop.eup %2712  ;;  %v1508_v33 = vadd.f32 1e-05, %v1400_v2  ;;  %v1535_v58 = vadd.f32 1e-05, %v1427_v51 }
 0x38f   :  { %v1329_v21 = vpop.xlane.xlu1 %1328  ;;  %v1640_v35 = vmul.f32 %v2713_v5, %v1478_v53  ;;  %v1221_v42 = vpop.xlane.xlu0 %1220 }
 0x390   :  { %v2715_v6 = vpop.eup %2714  ;;  %2724 = vrsqrt.f32 %v1508_v33  ;;  %v1428_v13 = vmul.f32 0.0051020407, %v1329_v21  ;;  %v1401_v19 = vmul.f32 0.0051020407, %v1221_v42  ;;  %v1480_v42 = vld [vmem:[%s5026_s5 + $0x120] sm:$0xff] }
 0x391   :  { %1827 = vperm.xlu1 %2665, %v1639_v47   ;;  %2726 = vrsqrt.f32 %v1535_v58  ;;  %1832 = vperm.xlu0 %2664, %v1640_v35   ;;  %v1613_v53 = vmul.f32 %v2715_v6, %v1451_v61  ;;  %v1479_v47 = vld [vmem:[%s5026_s5 + $0x118] sm:$0xff] }
 0x392   :  { %v2717_v50 = vpop.eup %2716  ;;  %v1536_v57 = vadd.f32 1e-05, %v1428_v13  ;;  %v1509_v2 = vadd.f32 1e-05, %v1401_v19 }
 0x393   :  { %v1225_v10 = vpop.xlane.xlu1 %1224  ;;  %v1614_v51 = vmul.f32 %v2717_v50, %v1452_v0  ;;  %v1333_v31 = vpop.xlane.xlu0 %1332 }
 0x394   :  { %v2719_v5 = vpop.eup %2718  ;;  %2728 = vrsqrt.f32 %v1536_v57  ;;  %v1402_v33 = vmul.f32 0.0051020407, %v1225_v10  ;;  %v1429_v21 = vmul.f32 0.0051020407, %v1333_v31  ;;  %v1454_v31 = vld [vmem:[%s5026_s5 + $0x50] sm:$0xff] }
 0x395   :  { %1697 = vperm.xlu1 %2665, %v1613_v53   ;;  %2730 = vrsqrt.f32 %v1509_v2  ;;  %1702 = vperm.xlu0 %2664, %v1614_v51   ;;  %v1641_v0 = vmul.f32 %v2719_v5, %v1479_v47  ;;  %v1453_v53 = vld [vmem:[%s5026_s5 + $0x48] sm:$0xff] }
 0x396   :  { %v2721_v58 = vpop.eup %2720  ;;  %v1510_v35 = vadd.f32 1e-05, %v1402_v33  ;;  %v1537_v13 = vadd.f32 1e-05, %v1429_v21 }
 0x397   :  { %v1337_v6 = vpop.xlane.xlu1 %1336  ;;  %v1642_v19 = vmul.f32 %v2721_v58, %v1480_v42  ;;  %v1229_v61 = vpop.xlane.xlu0 %1228 }
 0x398   :  { %v2723_v50 = vpop.eup %2722  ;;  %2732 = vrsqrt.f32 %v1510_v35  ;;  %v1430_v57 = vmul.f32 0.0051020407, %v1337_v6  ;;  %v1403_v10 = vmul.f32 0.0051020407, %v1229_v61  ;;  %v1482_v61 = vld [vmem:[%s5026_s5 + $0x130] sm:$0xff] }
 0x399   :  { %1837 = vperm.xlu1 %2665, %v1641_v0   ;;  %2734 = vrsqrt.f32 %v1537_v13  ;;  %1842 = vperm.xlu0 %2664, %v1642_v19   ;;  %v1615_v42 = vmul.f32 %v2723_v50, %v1453_v53  ;;  %v1481_v0 = vld [vmem:[%s5026_s5 + $0x128] sm:$0xff] }
 0x39a   :  { %v2725_v2 = vpop.eup %2724  ;;  %v1538_v51 = vadd.f32 1e-05, %v1430_v57  ;;  %v1511_v33 = vadd.f32 1e-05, %v1403_v10 }
 0x39b   :  { %v1233_v5 = vpop.xlane.xlu1 %1232  ;;  %v1616_v21 = vmul.f32 %v2725_v2, %v1454_v31  ;;  %v1341_v47 = vpop.xlane.xlu0 %1340 }
 0x39c   :  { %v2727_v58 = vpop.eup %2726  ;;  %2736 = vrsqrt.f32 %v1538_v51  ;;  %v1404_v35 = vmul.f32 0.0051020407, %v1233_v5  ;;  %v1431_v6 = vmul.f32 0.0051020407, %v1341_v47  ;;  %v1456_v47 = vld [vmem:[%s5026_s5 + $0x60] sm:$0xff] }
 0x39d   :  { %1707 = vperm.xlu1 %2665, %v1615_v42   ;;  %2738 = vrsqrt.f32 %v1511_v33  ;;  %1712 = vperm.xlu0 %2664, %v1616_v21   ;;  %v1643_v31 = vmul.f32 %v2727_v58, %v1481_v0  ;;  %v1455_v42 = vld [vmem:[%s5026_s5 + $0x58] sm:$0xff] }
 0x39e   :  { %v2729_v13 = vpop.eup %2728  ;;  %v1512_v19 = vadd.f32 1e-05, %v1404_v35  ;;  %v1539_v57 = vadd.f32 1e-05, %v1431_v6 }
 0x39f   :  { %v1345_v50 = vpop.xlane.xlu1 %1344  ;;  %v1644_v10 = vmul.f32 %v2729_v13, %v1482_v61  ;;  %v1237_v53 = vpop.xlane.xlu0 %1236 }
 0x3a0   :  { %v2731_v2 = vpop.eup %2730  ;;  %2740 = vrsqrt.f32 %v1512_v19  ;;  %v1432_v51 = vmul.f32 0.0051020407, %v1345_v50  ;;  %v1405_v5 = vmul.f32 0.0051020407, %v1237_v53  ;;  %v1484_v53 = vld [vmem:[%s5026_s5 + $0x140] sm:$0xff] }
 0x3a1   :  { %1847 = vperm.xlu1 %2665, %v1643_v31   ;;  %2742 = vrsqrt.f32 %v1539_v57  ;;  %1852 = vperm.xlu0 %2664, %v1644_v10   ;;  %v1617_v61 = vmul.f32 %v2731_v2, %v1455_v42  ;;  %v1483_v31 = vld [vmem:[%s5026_s5 + $0x138] sm:$0xff] }
 0x3a2   :  { %v2733_v33 = vpop.eup %2732  ;;  %v1540_v21 = vadd.f32 1e-05, %v1432_v51  ;;  %v1513_v35 = vadd.f32 1e-05, %v1405_v5 }
 0x3a3   :  { %v1241_v58 = vpop.xlane.xlu1 %1240  ;;  %v1618_v6 = vmul.f32 %v2733_v33, %v1456_v47  ;;  %v1349_v0 = vpop.xlane.xlu0 %1348 }
 0x3a4   :  { %v2735_v13 = vpop.eup %2734  ;;  %2744 = vrsqrt.f32 %v1540_v21  ;;  %v1406_v19 = vmul.f32 0.0051020407, %v1241_v58  ;;  %v1433_v50 = vmul.f32 0.0051020407, %v1349_v0  ;;  %v1458_v0 = vld [vmem:[%s5026_s5 + $0x70] sm:$0xff] }
 0x3a5   :  { %1717 = vperm.xlu1 %2665, %v1617_v61   ;;  %2746 = vrsqrt.f32 %v1513_v35  ;;  %1722 = vperm.xlu0 %2664, %v1618_v6   ;;  %v1645_v47 = vmul.f32 %v2735_v13, %v1483_v31  ;;  %v1457_v61 = vld [vmem:[%s5026_s5 + $0x68] sm:$0xff] }
 0x3a6   :  { %v2737_v57 = vpop.eup %2736  ;;  %v1514_v10 = vadd.f32 1e-05, %v1406_v19  ;;  %v1541_v51 = vadd.f32 1e-05, %v1433_v50 }
 0x3a7   :  { %v1353_v2 = vpop.xlane.xlu1 %1352  ;;  %v1646_v5 = vmul.f32 %v2737_v57, %v1484_v53  ;;  %v1245_v42 = vpop.xlane.xlu0 %1244 }
 0x3a8   :  { %v2739_v33 = vpop.eup %2738  ;;  %2748 = vrsqrt.f32 %v1514_v10  ;;  %v1434_v21 = vmul.f32 0.0051020407, %v1353_v2  ;;  %v1407_v58 = vmul.f32 0.0051020407, %v1245_v42  ;;  %v1486_v42 = vld [vmem:[%s5026_s5 + $0x150] sm:$0xff] }
 0x3a9   :  { %1857 = vperm.xlu1 %2665, %v1645_v47   ;;  %2750 = vrsqrt.f32 %v1541_v51  ;;  %1862 = vperm.xlu0 %2664, %v1646_v5   ;;  %v1619_v53 = vmul.f32 %v2739_v33, %v1457_v61  ;;  %v1485_v47 = vld [vmem:[%s5026_s5 + $0x148] sm:$0xff] }
 0x3aa   :  { %v2741_v35 = vpop.eup %2740  ;;  %v1542_v6 = vadd.f32 1e-05, %v1434_v21  ;;  %v1515_v19 = vadd.f32 1e-05, %v1407_v58 }
 0x3ab   :  { %v1249_v13 = vpop.xlane.xlu1 %1248  ;;  %v1620_v50 = vmul.f32 %v2741_v35, %v1458_v0  ;;  %v1357_v31 = vpop.xlane.xlu0 %1356 }
 0x3ac   :  { %v2743_v57 = vpop.eup %2742  ;;  %2752 = vrsqrt.f32 %v1542_v6  ;;  %v1408_v10 = vmul.f32 0.0051020407, %v1249_v13  ;;  %v1435_v2 = vmul.f32 0.0051020407, %v1357_v31  ;;  %v1460_v31 = vld [vmem:[%s5026_s5 + $0x80] sm:$0xff] }
 0x3ad   :  { %1727 = vperm.xlu1 %2665, %v1619_v53   ;;  %2754 = vrsqrt.f32 %v1515_v19  ;;  %1732 = vperm.xlu0 %2664, %v1620_v50   ;;  %v1647_v0 = vmul.f32 %v2743_v57, %v1485_v47  ;;  %v1459_v53 = vld [vmem:[%s5026_s5 + $0x78] sm:$0xff] }
 0x3ae   :  { %v2745_v51 = vpop.eup %2744  ;;  %v1516_v5 = vadd.f32 1e-05, %v1408_v10  ;;  %v1543_v21 = vadd.f32 1e-05, %v1435_v2 }
 0x3af   :  { %v1361_v33 = vpop.xlane.xlu1 %1360  ;;  %v1648_v58 = vmul.f32 %v2745_v51, %v1486_v42  ;;  %v1253_v61 = vpop.xlane.xlu0 %1252 }
 0x3b0   :  { %v2747_v35 = vpop.eup %2746  ;;  %2756 = vrsqrt.f32 %v1516_v5  ;;  %v1436_v6 = vmul.f32 0.0051020407, %v1361_v33  ;;  %v1409_v13 = vmul.f32 0.0051020407, %v1253_v61  ;;  %v1488_v61 = vld [vmem:[%s5026_s5 + $0x160] sm:$0xff] }
 0x3b1   :  { %1867 = vperm.xlu1 %2665, %v1647_v0   ;;  %2758 = vrsqrt.f32 %v1543_v21  ;;  %1872 = vperm.xlu0 %2664, %v1648_v58   ;;  %v1621_v42 = vmul.f32 %v2747_v35, %v1459_v53  ;;  %v1487_v0 = vld [vmem:[%s5026_s5 + $0x158] sm:$0xff] }
 0x3b2   :  { %v2749_v19 = vpop.eup %2748  ;;  %v1544_v50 = vadd.f32 1e-05, %v1436_v6  ;;  %v1517_v10 = vadd.f32 1e-05, %v1409_v13 }
 0x3b3   :  { %v1257_v57 = vpop.xlane.xlu1 %1256  ;;  %v1622_v2 = vmul.f32 %v2749_v19, %v1460_v31  ;;  %v1365_v47 = vpop.xlane.xlu0 %1364 }
 0x3b4   :  { %v2751_v51 = vpop.eup %2750  ;;  %2760 = vrsqrt.f32 %v1544_v50  ;;  %v1410_v5 = vmul.f32 0.0051020407, %v1257_v57  ;;  %v1437_v33 = vmul.f32 0.0051020407, %v1365_v47  ;;  %v1462_v47 = vld [vmem:[%s5026_s5 + $0x90] sm:$0xff] }
 0x3b5   :  { %1737 = vperm.xlu1 %2665, %v1621_v42   ;;  %2762 = vrsqrt.f32 %v1517_v10  ;;  %1742 = vperm.xlu0 %2664, %v1622_v2   ;;  %v1649_v31 = vmul.f32 %v2751_v51, %v1487_v0  ;;  %v1461_v42 = vld [vmem:[%s5026_s5 + $0x88] sm:$0xff] }
 0x3b6   :  { %v2753_v21 = vpop.eup %2752  ;;  %v1518_v58 = vadd.f32 1e-05, %v1410_v5  ;;  %v1545_v6 = vadd.f32 1e-05, %v1437_v33 }
 0x3b7   :  { %v1369_v35 = vpop.xlane.xlu1 %1368  ;;  %v1650_v13 = vmul.f32 %v2753_v21, %v1488_v61  ;;  %v1261_v53 = vpop.xlane.xlu0 %1260 }
 0x3b8   :  { %v2755_v19 = vpop.eup %2754  ;;  %2764 = vrsqrt.f32 %v1518_v58  ;;  %v1438_v50 = vmul.f32 0.0051020407, %v1369_v35  ;;  %v1411_v57 = vmul.f32 0.0051020407, %v1261_v53  ;;  %v1490_v53 = vld [vmem:[%s5026_s5 + $0x170] sm:$0xff] }
 0x3b9   :  { %1877 = vperm.xlu1 %2665, %v1649_v31   ;;  %2766 = vrsqrt.f32 %v1545_v6  ;;  %1882 = vperm.xlu0 %2664, %v1650_v13   ;;  %v1623_v61 = vmul.f32 %v2755_v19, %v1461_v42  ;;  %v1489_v31 = vld [vmem:[%s5026_s5 + $0x168] sm:$0xff] }
 0x3ba   :  { %v2757_v10 = vpop.eup %2756  ;;  %v1546_v2 = vadd.f32 1e-05, %v1438_v50  ;;  %v1519_v5 = vadd.f32 1e-05, %v1411_v57 }
 0x3bb   :  { %v1265_v51 = vpop.xlane.xlu1 %1264  ;;  %v1624_v33 = vmul.f32 %v2757_v10, %v1462_v47  ;;  %v1373_v0 = vpop.xlane.xlu0 %1372 }
 0x3bc   :  { %v2759_v21 = vpop.eup %2758  ;;  %2768 = vrsqrt.f32 %v1546_v2  ;;  %v1412_v58 = vmul.f32 0.0051020407, %v1265_v51  ;;  %v1439_v35 = vmul.f32 0.0051020407, %v1373_v0  ;;  %v1464_v0 = vld [vmem:[%s5026_s5 + $0xa0] sm:$0xff] }
 0x3bd   :  { %1747 = vperm.xlu1 %2665, %v1623_v61   ;;  %2770 = vrsqrt.f32 %v1519_v5  ;;  %1752 = vperm.xlu0 %2664, %v1624_v33   ;;  %v1651_v47 = vmul.f32 %v2759_v21, %v1489_v31  ;;  %v1463_v61 = vld [vmem:[%s5026_s5 + $0x98] sm:$0xff] }
 0x3be   :  { %v2761_v6 = vpop.eup %2760  ;;  %v1520_v13 = vadd.f32 1e-05, %v1412_v58  ;;  %v1547_v50 = vadd.f32 1e-05, %v1439_v35 }
 0x3bf   :  { %v1377_v19 = vpop.xlane.xlu1 %1376  ;;  %v1652_v57 = vmul.f32 %v2761_v6, %v1490_v53  ;;  %v1269_v42 = vpop.xlane.xlu0 %1268 }
 0x3c0   :  { %v2763_v10 = vpop.eup %2762  ;;  %2772 = vrsqrt.f32 %v1520_v13  ;;  %v1440_v2 = vmul.f32 0.0051020407, %v1377_v19  ;;  %v1413_v51 = vmul.f32 0.0051020407, %v1269_v42  ;;  %v1492_v42 = vld [vmem:[%s5026_s5 + $0x180] sm:$0xff] }
 0x3c1   :  { %1887 = vperm.xlu1 %2665, %v1651_v47   ;;  %2774 = vrsqrt.f32 %v1547_v50  ;;  %1892 = vperm.xlu0 %2664, %v1652_v57   ;;  %v1625_v53 = vmul.f32 %v2763_v10, %v1463_v61  ;;  %v1491_v47 = vld [vmem:[%s5026_s5 + $0x178] sm:$0xff] }
 0x3c2   :  { %v2765_v5 = vpop.eup %2764  ;;  %v1548_v33 = vadd.f32 1e-05, %v1440_v2  ;;  %v1521_v58 = vadd.f32 1e-05, %v1413_v51 }
 0x3c3   :  { %v1273_v21 = vpop.xlane.xlu1 %1272  ;;  %v1626_v35 = vmul.f32 %v2765_v5, %v1464_v0  ;;  %v1381_v31 = vpop.xlane.xlu0 %1380 }
 0x3c4   :  { %v2767_v6 = vpop.eup %2766  ;;  %2776 = vrsqrt.f32 %v1548_v33  ;;  %v1414_v13 = vmul.f32 0.0051020407, %v1273_v21  ;;  %v1441_v19 = vmul.f32 0.0051020407, %v1381_v31  ;;  %v1466_v31 = vld [vmem:[%s5026_s5 + $0xb0] sm:$0xff] }
 0x3c5   :  { %1757 = vperm.xlu1 %2665, %v1625_v53   ;;  %2778 = vrsqrt.f32 %v1521_v58  ;;  %1762 = vperm.xlu0 %2664, %v1626_v35   ;;  %v1653_v0 = vmul.f32 %v2767_v6, %v1491_v47  ;;  %v1465_v53 = vld [vmem:[%s5026_s5 + $0xa8] sm:$0xff] }
 0x3c6   :  { %v2769_v50 = vpop.eup %2768  ;;  %v1522_v57 = vadd.f32 1e-05, %v1414_v13  ;;  %v1549_v2 = vadd.f32 1e-05, %v1441_v19 }
 0x3c7   :  { %v1385_v10 = vpop.xlane.xlu1 %1384  ;;  %v1654_v51 = vmul.f32 %v2769_v50, %v1492_v42  ;;  %v1277_v61 = vpop.xlane.xlu0 %1276 }
 0x3c8   :  { %v2771_v5 = vpop.eup %2770  ;;  %2780 = vrsqrt.f32 %v1522_v57  ;;  %v1442_v33 = vmul.f32 0.0051020407, %v1385_v10  ;;  %v1415_v21 = vmul.f32 0.0051020407, %v1277_v61  ;;  %v1494_v61 = vld [vmem:[%s5026_s5 + $0x190] sm:$0xff] }
 0x3c9   :  { %1897 = vperm.xlu1 %2665, %v1653_v0   ;;  %2782 = vrsqrt.f32 %v1549_v2  ;;  %1902 = vperm.xlu0 %2664, %v1654_v51   ;;  %v1627_v42 = vmul.f32 %v2771_v5, %v1465_v53  ;;  %v1493_v0 = vld [vmem:[%s5026_s5 + $0x188] sm:$0xff]  ;;  %v1468_v53 = vld [vmem:[%s5026_s5 + $0xc0] sm:$0xff] }
 0x3ca   :  { %v2773_v58 = vpop.eup %2772  ;;  %v1550_v35 = vadd.f32 1e-05, %v1442_v33  ;;  %v1523_v13 = vadd.f32 1e-05, %v1415_v21 }
 0x3cb   :  { %v1281_v6 = vpop.xlane.xlu1 %1280  ;;  %v1628_v19 = vmul.f32 %v2773_v58, %v1466_v31  ;;  %v1389_v47 = vpop.xlane.xlu0 %1388  ;;  %v1467_v58 = vld [vmem:[%s5026_s5 + $0xb8] sm:$0xff] }
 0x3cc   :  { %v2775_v50 = vpop.eup %2774  ;;  %2784 = vrsqrt.f32 %v1550_v35  ;;  %v1416_v57 = vmul.f32 0.0051020407, %v1281_v6  ;;  %v1443_v10 = vmul.f32 0.0051020407, %v1389_v47  ;;  %v1495_v47 = vld [vmem:[%s5026_s5 + $0x198] sm:$0xff] }
 0x3cd   :  { %1767 = vperm.xlu1 %2665, %v1627_v42   ;;  %2786 = vrsqrt.f32 %v1523_v13  ;;  %1772 = vperm.xlu0 %2664, %v1628_v19   ;;  %v1655_v21 = vmul.f32 %v2775_v50, %v1493_v0  ;;  %v1496_v42 = vld [vmem:[%s5026_s5 + $0x1a0] sm:$0xff]  ;;  %v1470_v0 = vld [vmem:[%s5026_s5 + $0xd0] sm:$0xff] }
 0x3ce   :  { %v2777_v2 = vpop.eup %2776  ;;  %v1524_v51 = vadd.f32 1e-05, %v1416_v57  ;;  %v1551_v33 = vadd.f32 1e-05, %v1443_v10 }
 0x3cf   :  { %v1656_v5 = vmul.f32 %v2777_v2, %v1494_v61  ;;  %v2779_v31 = vpop.eup %2778  ;;  %v1469_v2 = vld [vmem:[%s5026_s5 + $0xc8] sm:$0xff] }
 0x3d0   :  { %2788 = vrsqrt.f32 %v1524_v51  ;;  %v1629_v6 = vmul.f32 %v2779_v31, %v1467_v58  ;;  %v1497_v31 = vld [vmem:[%s5026_s5 + $0x1a8] sm:$0xff] }
 0x3d1   :  { %1907 = vperm.xlu1 %2665, %v1655_v21   ;;  %2790 = vrsqrt.f32 %v1551_v33  ;;  %1912 = vperm.xlu0 %2664, %v1656_v5  }
 0x3d2   :  { %v2781_v35 = vpop.eup %2780 }
 0x3d3   :  { %v1630_v13 = vmul.f32 %v2781_v35, %v1468_v53  ;;  %v2783_v19 = vpop.eup %2782  ;;  %v2090_v53 = vld [vmem:[%s5024_s6 + $0x1a0] sm:$0xff]  ;;  %v2091_v35 = vld [vmem:[%s5024_s6 + $0x1a8] sm:$0xff] }
 0x3d4   :  { %v1657_v10 = vmul.f32 %v2783_v19, %v1495_v47 }
 0x3d5   :  { %1777 = vperm.xlu1 %2665, %v1629_v6   ;;  %1782 = vperm.xlu0 %2664, %v1630_v13  }
 0x3d6   :  { %v2785_v50 = vpop.eup %2784 }
 0x3d7   :  { %v1658_v57 = vmul.f32 %v2785_v50, %v1496_v42  ;;  %v2787_v61 = vpop.eup %2786 }
 0x3d8   :  { %v1631_v5 = vmul.f32 %v2787_v61, %v1469_v2 }
 0x3d9   :  { %1917 = vperm.xlu1 %2665, %v1657_v10   ;;  %1922 = vperm.xlu0 %2664, %v1658_v57  }
 0x3da   :  { %v2789_v51 = vpop.eup %2788 }
 0x3db   :  { %v1632_v33 = vmul.f32 %v2789_v51, %v1470_v0  ;;  %v2791_v21 = vpop.eup %2790 }
 0x3dc   :  { %v1659_v58 = vmul.f32 %v2791_v21, %v1497_v31 }
 0x3dd   :  { %1787 = vperm.xlu1 %2665, %v1631_v5   ;;  %1792 = vperm.xlu0 %2664, %v1632_v33  }
 0x3e1   :  { %1927 = vperm.xlu1 %2665, %v1659_v58   ;;  %2354 = vperm.xlu0 %2664, %v2090_v53  }
 0x3e5   :  { %2359 = vperm.xlu1 %2665, %v2091_v35  }
 0x3f3   :  { %v1663_v13 = vpop.permute.xlu1 %1662 }
 0x3f4   :  { %v1930_v6 = vmul.f32 %v1663_v13, %v3680_v11  ;;  %v1931_v19 = vmul.f32 %v1663_v13, %v3684_v56 }
 0x3f6   :  { %v2362_v42 = vadd.f32 %v3674_v7, %v1930_v6  ;;  %v2363_v47 = vadd.f32 %v3674_v7, %v1931_v19 }
 0x3f7   :  { %v1798_v50 = vpop.permute.xlu1 %1797 }
 0x3f8   :  { %2470 = vst [vmem:[%s5027_s7] sm:$0xff] %v2362_v42  ;;  %2471 = vst.msk [vmem:[%s5027_s7 + $0x8] sm:$0xff] %vm44_vm0, %v2363_v47  ;;  %v1984_v57 = vmul.f32 %v1798_v50, %v3682_v32  ;;  %v1985_v11 = vmul.f32 %v1798_v50, %v3688_v43  ;;  %v1668_v10 = vpop.permute.xlu0 %1667 }
 0x3f9   :  { %v1932_v7 = vmul.f32 %v1668_v10, %v3699_v54  ;;  %v1933_v0 = vmul.f32 %v1668_v10, %v3703_v44 }
 0x3fa   :  { %v2416_v56 = vadd.f32 %v4038_v9, %v1984_v57  ;;  %v2417_v61 = vadd.f32 %v4038_v9, %v1985_v11 }
 0x3fb   :  { %v2364_v32 = vadd.f32 %v3672_v22, %v1932_v7  ;;  %v2365_v43 = vadd.f32 %v3672_v22, %v1933_v0 }
 0x3fc   :  { %2524 = vst [vmem:[%s5027_s7 + $0x1b0] sm:$0xff] %v2416_v56  ;;  %2525 = vst.msk [vmem:[%s5027_s7 + $0x1b8] sm:$0xff] %vm44_vm0, %v2417_v61  ;;  %v1673_v2 = vpop.permute.xlu1 %1672  ;;  %v1803_v51 = vpop.permute.xlu0 %1802 }
 0x3fd   :  { %v1934_v9 = vmul.f32 %v1673_v2, %v3718_v38  ;;  %v1935_v54 = vmul.f32 %v1673_v2, %v3722_v60  ;;  %2472 = vst [vmem:[%s5027_s7 + $0x10] sm:$0xff] %v2364_v32  ;;  %2473 = vst.msk [vmem:[%s5027_s7 + $0x18] sm:$0xff] %vm44_vm0, %v2365_v43  ;;  %v1986_v44 = vmul.f32 %v1803_v51, %v3701_v23 }
 0x3fe   :  { %v1987_v33 = vmul.f32 %v1803_v51, %v3710_v16 }
 0x3ff   :  { %v2366_v22 = vadd.f32 %v3678_v26, %v1934_v9  ;;  %v2367_v38 = vadd.f32 %v3678_v26, %v1935_v54  ;;  %v2418_v60 = vadd.f32 %v4080_v28, %v1986_v44  ;;  %v5259_v9 = vld [vmem:[#allocation9_spill] sm:$0xff]  ;;  %v5261_v44 = vld [vmem:[#allocation12_spill] sm:$0xff] }
 0x400   :  { %v2419_v5 = vadd.f32 %v4080_v28, %v1987_v33  ;;  %v1808_v21 = vpop.permute.xlu1 %1807  ;;  %v1813_v31 = vpop.permute.xlu0 %1812 }
 0x401   :  { %2474 = vst [vmem:[%s5027_s7 + $0x20] sm:$0xff] %v2366_v22  ;;  %2475 = vst.msk [vmem:[%s5027_s7 + $0x28] sm:$0xff] %vm44_vm0, %v2367_v38  ;;  %v1988_v23 = vmul.f32 %v1808_v21, %v3724_v62  ;;  %v1989_v16 = vmul.f32 %v1808_v21, %v3732_v3  ;;  %v1990_v26 = vmul.f32 %v1813_v31, %v3743_v20  ;;  %v5262_v22 = vld [vmem:[#allocation2_spill] sm:$0xff] }
 0x402   :  { %2526 = vst [vmem:[%s5027_s7 + $0x1c0] sm:$0xff] %v2418_v60  ;;  %2527 = vst.msk [vmem:[%s5027_s7 + $0x1c8] sm:$0xff] %vm44_vm0, %v2419_v5  ;;  %v1991_v28 = vmul.f32 %v1813_v31, %v3752_v59  ;;  %v5263_v5 = vld [vmem:[#allocation4_spill] sm:$0xff]  ;;  %v5264_v31 = vld [vmem:[#allocation13_spill] sm:$0xff] }
 0x403   :  { %v2420_v53 = vadd.f32 %v4068_v25, %v1988_v23  ;;  %v2421_v62 = vadd.f32 %v4068_v25, %v1989_v16  ;;  %v2422_v3 = vadd.f32 %v4110_v29, %v1990_v26 }
 0x404   :  { %v2423_v58 = vadd.f32 %v4110_v29, %v1991_v28  ;;  %v1678_v35 = vpop.permute.xlu1 %1677  ;;  %v1683_v13 = vpop.permute.xlu0 %1682  ;;  %v5265_v28 = vld [vmem:[#allocation15_spill] sm:$0xff] }
 0x405   :  { %2528 = vst [vmem:[%s5027_s7 + $0x1d0] sm:$0xff] %v2420_v53  ;;  %2529 = vst.msk [vmem:[%s5027_s7 + $0x1d8] sm:$0xff] %vm44_vm0, %v2421_v62  ;;  %v1936_v20 = vmul.f32 %v1678_v35, %v3741_v18  ;;  %v1937_v59 = vmul.f32 %v1678_v35, %v3747_v39  ;;  %v1938_v25 = vmul.f32 %v1683_v13, %v3761_v15  ;;  %v5267_v35 = vld [vmem:[#allocation20_spill] sm:$0xff] }
 0x406   :  { %2530 = vst [vmem:[%s5027_s7 + $0x1e0] sm:$0xff] %v2422_v3  ;;  %2531 = vst.msk [vmem:[%s5027_s7 + $0x1e8] sm:$0xff] %vm44_vm0, %v2423_v58  ;;  %v1939_v29 = vmul.f32 %v1683_v13, %v3766_v34  ;;  %v5266_v3 = vld [vmem:[#allocation18_spill] sm:$0xff] }
 0x407   :  { %v2368_v6 = vadd.f32 %v3676_v1, %v1936_v20  ;;  %v2369_v18 = vadd.f32 %v3676_v1, %v1937_v59  ;;  %v2370_v39 = vadd.f32 %v3706_v63, %v1938_v25  ;;  %v5268_v59 = vld [vmem:[#allocation88_spill] sm:$0xff] }
 0x408   :  { %v2371_v19 = vadd.f32 %v3706_v63, %v1939_v29  ;;  %v1818_v42 = vpop.permute.xlu1 %1817  ;;  %v1823_v47 = vpop.permute.xlu0 %1822  ;;  %v5269_v29 = vld [vmem:[#allocation98_spill] sm:$0xff] }
 0x409   :  { %2476 = vst [vmem:[%s5027_s7 + $0x30] sm:$0xff] %v2368_v6  ;;  %2477 = vst.msk [vmem:[%s5027_s7 + $0x38] sm:$0xff] %vm44_vm0, %v2369_v18  ;;  %v1992_v15 = vmul.f32 %v1818_v42, %v3768_v52  ;;  %v1993_v34 = vmul.f32 %v1818_v42, %v3776_v24  ;;  %v1994_v1 = vmul.f32 %v1823_v47, %v3784_v46 }
 0x40a   :  { %2478 = vst [vmem:[%s5027_s7 + $0x40] sm:$0xff] %v2370_v39  ;;  %2479 = vst.msk [vmem:[%s5027_s7 + $0x48] sm:$0xff] %vm44_vm0, %v2371_v19  ;;  %v1995_v63 = vmul.f32 %v1823_v47, %v3794_v55  ;;  %v5270_v19 = vld [vmem:[#allocation17_spill] sm:$0xff] }
 0x40b   :  { %v2424_v50 = vadd.f32 %v4100_v4, %v1992_v15  ;;  %v2425_v52 = vadd.f32 %v4100_v4, %v1993_v34  ;;  %v2426_v24 = vadd.f32 %v4142_v48, %v1994_v1  ;;  %v5271_v15 = vld [vmem:[#allocation19_spill] sm:$0xff]  ;;  %v5272_v1 = vld [vmem:[#allocation22_spill] sm:$0xff] }
 0x40c   :  { %v2427_v57 = vadd.f32 %v4142_v48, %v1995_v63  ;;  %v1688_v11 = vpop.permute.xlu1 %1687  ;;  %v1693_v10 = vpop.permute.xlu0 %1692 }
 0x40d   :  { %2532 = vst [vmem:[%s5027_s7 + $0x1f0] sm:$0xff] %v2424_v50  ;;  %2533 = vst.msk [vmem:[%s5027_s7 + $0x1f8] sm:$0xff] %vm44_vm0, %v2425_v52  ;;  %v1940_v46 = vmul.f32 %v1688_v11, %v3781_v41  ;;  %v1941_v55 = vmul.f32 %v1688_v11, %v3788_v37  ;;  %v1942_v4 = vmul.f32 %v1693_v10, %v3803_v8  ;;  %v5273_v50 = vld [vmem:[#allocation23_spill] sm:$0xff] }
 0x40e   :  { %2534 = vst [vmem:[%s5027_s7 + $0x200] sm:$0xff] %v2426_v24  ;;  %2535 = vst.msk [vmem:[%s5027_s7 + $0x208] sm:$0xff] %vm44_vm0, %v2427_v57  ;;  %v1943_v48 = vmul.f32 %v1693_v10, %v3808_v14  ;;  %v5274_v24 = vld [vmem:[#allocation3_spill] sm:$0xff] }
 0x40f   :  { %v2372_v56 = vadd.f32 %v3694_v40, %v1940_v46  ;;  %v2373_v41 = vadd.f32 %v3694_v40, %v1941_v55  ;;  %v2374_v37 = vadd.f32 %v3738_v12, %v1942_v4  ;;  %v5275_v46 = vld [vmem:[#allocation6_spill] sm:$0xff] }
 0x410   :  { %v2375_v61 = vadd.f32 %v3738_v12, %v1943_v48  ;;  %v1828_v7 = vpop.permute.xlu1 %1827  ;;  %v1833_v0 = vpop.permute.xlu0 %1832  ;;  %v5276_v48 = vld [vmem:[#allocation24_spill] sm:$0xff] }
 0x411   :  { %2480 = vst [vmem:[%s5027_s7 + $0x50] sm:$0xff] %v2372_v56  ;;  %2481 = vst.msk [vmem:[%s5027_s7 + $0x58] sm:$0xff] %vm44_vm0, %v2373_v41  ;;  %v1996_v8 = vmul.f32 %v1828_v7, %v3810_v49  ;;  %v1997_v14 = vmul.f32 %v1828_v7, %v3816_v30  ;;  %v1998_v40 = vmul.f32 %v1833_v0, %v3826_v17  ;;  %v5258_v17 = vld [vmem:[#allocation8_spill] sm:$0xff]  ;;  %v5277_v41 = vld [vmem:[#allocation26_spill] sm:$0xff] }
 0x412   :  { %2482 = vst [vmem:[%s5027_s7 + $0x60] sm:$0xff] %v2374_v37  ;;  %2483 = vst.msk [vmem:[%s5027_s7 + $0x68] sm:$0xff] %vm44_vm0, %v2375_v61  ;;  %v1999_v12 = vmul.f32 %v1833_v0, %v3836_v36  ;;  %v5278_v7 = vld [vmem:[#allocation28_spill] sm:$0xff] }
 0x413   :  { %v2428_v32 = vadd.f32 %v4130_v27, %v1996_v8  ;;  %v2429_v49 = vadd.f32 %v4130_v27, %v1997_v14  ;;  %v2430_v30 = vadd.f32 %v4172_v45, %v1998_v40  ;;  %v5279_v14 = vld [vmem:[#allocation31_spill] sm:$0xff]  ;;  %v5280_v40 = vld [vmem:[#allocation96_spill] sm:$0xff] }
 0x414   :  { %v2431_v43 = vadd.f32 %v4172_v45, %v1999_v12  ;;  %v1698_v2 = vpop.permute.xlu1 %1697  ;;  %v1703_v51 = vpop.permute.xlu0 %1702  ;;  %v5260_v45 = vld [vmem:[#allocation11_spill] sm:$0xff] }
 0x415   :  { %2536 = vst [vmem:[%s5027_s7 + $0x210] sm:$0xff] %v2428_v32  ;;  %2537 = vst.msk [vmem:[%s5027_s7 + $0x218] sm:$0xff] %vm44_vm0, %v2429_v49  ;;  %v1944_v36 = vmul.f32 %v1698_v2, %v5258_v17  ;;  %v1945_v54 = vmul.f32 %v1698_v2, %v5259_v9  ;;  %v1946_v27 = vmul.f32 %v1703_v51, %v5260_v45  ;;  %v5281_v49 = vld [vmem:[#allocation104_spill] sm:$0xff]  ;;  %v5282_v17 = vld [vmem:[#allocation27_spill] sm:$0xff] }
 0x416   :  { %2538 = vst [vmem:[%s5027_s7 + $0x220] sm:$0xff] %v2430_v30  ;;  %2539 = vst.msk [vmem:[%s5027_s7 + $0x228] sm:$0xff] %vm44_vm0, %v2431_v43  ;;  %v1947_v33 = vmul.f32 %v1703_v51, %v5261_v44  ;;  %v5283_v9 = vld [vmem:[#allocation29_spill] sm:$0xff]  ;;  %v5285_v44 = vld [vmem:[#allocation34_spill] sm:$0xff] }
 0x417   :  { %v2376_v38 = vadd.f32 %v5262_v22, %v1944_v36  ;;  %v2377_v60 = vadd.f32 %v5262_v22, %v1945_v54  ;;  %v2378_v21 = vadd.f32 %v5263_v5, %v1946_v27  ;;  %v5284_v45 = vld [vmem:[#allocation33_spill] sm:$0xff] }
 0x418   :  { %v2379_v23 = vadd.f32 %v5263_v5, %v1947_v33  ;;  %v1838_v16 = vpop.permute.xlu1 %1837  ;;  %v1843_v62 = vpop.permute.xlu0 %1842  ;;  %v5286_v22 = vld [vmem:[#allocation5_spill] sm:$0xff]  ;;  %v5287_v5 = vld [vmem:[#allocation10_spill] sm:$0xff] }
 0x419   :  { %2484 = vst [vmem:[%s5027_s7 + $0x70] sm:$0xff] %v2376_v38  ;;  %2485 = vst.msk [vmem:[%s5027_s7 + $0x78] sm:$0xff] %vm44_vm0, %v2377_v60  ;;  %v2000_v26 = vmul.f32 %v1838_v16, %v5264_v31  ;;  %v2001_v53 = vmul.f32 %v1838_v16, %v5265_v28  ;;  %v2002_v58 = vmul.f32 %v1843_v62, %v5266_v3  ;;  %v5288_v31 = vld [vmem:[#allocation35_spill] sm:$0xff]  ;;  %v5289_v28 = vld [vmem:[#allocation36_spill] sm:$0xff] }
 0x41a   :  { %2486 = vst [vmem:[%s5027_s7 + $0x80] sm:$0xff] %v2378_v21  ;;  %2487 = vst.msk [vmem:[%s5027_s7 + $0x88] sm:$0xff] %vm44_vm0, %v2379_v23  ;;  %v2003_v20 = vmul.f32 %v1843_v62, %v5267_v35  ;;  %v5290_v3 = vld [vmem:[#allocation39_spill] sm:$0xff]  ;;  %v5291_v35 = vld [vmem:[#allocation42_spill] sm:$0xff] }
 0x41b   :  { %v2432_v13 = vadd.f32 %v5268_v59, %v2000_v26  ;;  %v2433_v25 = vadd.f32 %v5268_v59, %v2001_v53  ;;  %v2434_v6 = vadd.f32 %v5269_v29, %v2002_v58  ;;  %v5292_v59 = vld [vmem:[#allocation103_spill] sm:$0xff] }
 0x41c   :  { %v2435_v18 = vadd.f32 %v5269_v29, %v2003_v20  ;;  %v1708_v39 = vpop.permute.xlu1 %1707  ;;  %v1713_v47 = vpop.permute.xlu0 %1712  ;;  %v5293_v29 = vld [vmem:[#allocation106_spill] sm:$0xff] }
 0x41d   :  { %2540 = vst [vmem:[%s5027_s7 + $0x230] sm:$0xff] %v2432_v13  ;;  %2541 = vst.msk [vmem:[%s5027_s7 + $0x238] sm:$0xff] %vm44_vm0, %v2433_v25  ;;  %v1948_v42 = vmul.f32 %v1708_v39, %v5270_v19  ;;  %v1949_v34 = vmul.f32 %v1708_v39, %v5271_v15  ;;  %v1950_v63 = vmul.f32 %v1713_v47, %v5272_v1  ;;  %v5294_v19 = vld [vmem:[#allocation38_spill] sm:$0xff]  ;;  %v5295_v15 = vld [vmem:[#allocation40_spill] sm:$0xff] }
 0x41e   :  { %2542 = vst [vmem:[%s5027_s7 + $0x240] sm:$0xff] %v2434_v6  ;;  %2543 = vst.msk [vmem:[%s5027_s7 + $0x248] sm:$0xff] %vm44_vm0, %v2435_v18  ;;  %v1951_v52 = vmul.f32 %v1713_v47, %v5273_v50  ;;  %v5296_v1 = vld [vmem:[#allocation43_spill] sm:$0xff]  ;;  %v5297_v50 = vld [vmem:[#allocation44_spill] sm:$0xff] }
 0x41f   :  { %v2380_v57 = vadd.f32 %v5274_v24, %v1948_v42  ;;  %v2381_v11 = vadd.f32 %v5274_v24, %v1949_v34  ;;  %v2382_v55 = vadd.f32 %v5275_v46, %v1950_v63  ;;  %v5298_v24 = vld [vmem:[#allocation7_spill] sm:$0xff] }
 0x420   :  { %v2383_v10 = vadd.f32 %v5275_v46, %v1951_v52  ;;  %v1848_v4 = vpop.permute.xlu1 %1847  ;;  %v1853_v61 = vpop.permute.xlu0 %1852  ;;  %v5299_v46 = vld [vmem:[#allocation16_spill] sm:$0xff] }
 0x421   :  { %2488 = vst [vmem:[%s5027_s7 + $0x90] sm:$0xff] %v2380_v57  ;;  %2489 = vst.msk [vmem:[%s5027_s7 + $0x98] sm:$0xff] %vm44_vm0, %v2381_v11  ;;  %v2004_v56 = vmul.f32 %v1848_v4, %v5276_v48  ;;  %v2005_v37 = vmul.f32 %v1848_v4, %v5277_v41  ;;  %v2006_v8 = vmul.f32 %v1853_v61, %v5278_v7  ;;  %v5300_v48 = vld [vmem:[#allocation45_spill] sm:$0xff]  ;;  %v5301_v41 = vld [vmem:[#allocation47_spill] sm:$0xff] }
 0x422   :  { %2490 = vst [vmem:[%s5027_s7 + $0xa0] sm:$0xff] %v2382_v55  ;;  %2491 = vst.msk [vmem:[%s5027_s7 + $0xa8] sm:$0xff] %vm44_vm0, %v2383_v10  ;;  %v2007_v0 = vmul.f32 %v1853_v61, %v5279_v14  ;;  %v5302_v7 = vld [vmem:[#allocation50_spill] sm:$0xff]  ;;  %v5303_v14 = vld [vmem:[#allocation52_spill] sm:$0xff] }
 0x423   :  { %v2436_v12 = vadd.f32 %v5280_v40, %v2004_v56  ;;  %v2437_v32 = vadd.f32 %v5280_v40, %v2005_v37  ;;  %v2438_v30 = vadd.f32 %v5281_v49, %v2006_v8  ;;  %v5304_v40 = vld [vmem:[#allocation105_spill] sm:$0xff] }
 0x424   :  { %v2439_v43 = vadd.f32 %v5281_v49, %v2007_v0  ;;  %v1718_v2 = vpop.permute.xlu1 %1717  ;;  %v1723_v51 = vpop.permute.xlu0 %1722  ;;  %v5305_v49 = vld [vmem:[#allocation108_spill] sm:$0xff] }
 0x425   :  { %2544 = vst [vmem:[%s5027_s7 + $0x250] sm:$0xff] %v2436_v12  ;;  %2545 = vst.msk [vmem:[%s5027_s7 + $0x258] sm:$0xff] %vm44_vm0, %v2437_v32  ;;  %v1952_v36 = vmul.f32 %v1718_v2, %v5282_v17  ;;  %v1953_v54 = vmul.f32 %v1718_v2, %v5283_v9  ;;  %v1954_v27 = vmul.f32 %v1723_v51, %v5284_v45  ;;  %v5306_v17 = vld [vmem:[#allocation49_spill] sm:$0xff]  ;;  %v5307_v9 = vld [vmem:[#allocation51_spill] sm:$0xff] }
 0x426   :  { %2546 = vst [vmem:[%s5027_s7 + $0x260] sm:$0xff] %v2438_v30  ;;  %2547 = vst.msk [vmem:[%s5027_s7 + $0x268] sm:$0xff] %vm44_vm0, %v2439_v43  ;;  %v1955_v33 = vmul.f32 %v1723_v51, %v5285_v44  ;;  %v5308_v45 = vld [vmem:[#allocation54_spill] sm:$0xff]  ;;  %v5309_v44 = vld [vmem:[#allocation55_spill] sm:$0xff] }
 0x427   :  { %v2384_v38 = vadd.f32 %v5286_v22, %v1952_v36  ;;  %v2385_v60 = vadd.f32 %v5286_v22, %v1953_v54  ;;  %v2386_v21 = vadd.f32 %v5287_v5, %v1954_v27  ;;  %v5310_v22 = vld [vmem:[#allocation14_spill] sm:$0xff] }
 0x428   :  { %v2387_v23 = vadd.f32 %v5287_v5, %v1955_v33  ;;  %v1858_v16 = vpop.permute.xlu1 %1857  ;;  %v1863_v62 = vpop.permute.xlu0 %1862  ;;  %v5311_v5 = vld [vmem:[#allocation25_spill] sm:$0xff] }
 0x429   :  { %2492 = vst [vmem:[%s5027_s7 + $0xb0] sm:$0xff] %v2384_v38  ;;  %2493 = vst.msk [vmem:[%s5027_s7 + $0xb8] sm:$0xff] %vm44_vm0, %v2385_v60  ;;  %v2008_v26 = vmul.f32 %v1858_v16, %v5288_v31  ;;  %v2009_v53 = vmul.f32 %v1858_v16, %v5289_v28  ;;  %v2010_v58 = vmul.f32 %v1863_v62, %v5290_v3  ;;  %v5312_v31 = vld [vmem:[#allocation56_spill] sm:$0xff]  ;;  %v5313_v28 = vld [vmem:[#allocation58_spill] sm:$0xff] }
 0x42a   :  { %2494 = vst [vmem:[%s5027_s7 + $0xc0] sm:$0xff] %v2386_v21  ;;  %2495 = vst.msk [vmem:[%s5027_s7 + $0xc8] sm:$0xff] %vm44_vm0, %v2387_v23  ;;  %v2011_v20 = vmul.f32 %v1863_v62, %v5291_v35  ;;  %v5314_v3 = vld [vmem:[#allocation60_spill] sm:$0xff]  ;;  %v5315_v35 = vld [vmem:[#allocation62_spill] sm:$0xff] }
 0x42b   :  { %v2440_v13 = vadd.f32 %v5292_v59, %v2008_v26  ;;  %v2441_v25 = vadd.f32 %v5292_v59, %v2009_v53  ;;  %v2442_v6 = vadd.f32 %v5293_v29, %v2010_v58  ;;  %v5316_v59 = vld [vmem:[#allocation107_spill] sm:$0xff] }
 0x42c   :  { %v2443_v18 = vadd.f32 %v5293_v29, %v2011_v20  ;;  %v1728_v39 = vpop.permute.xlu1 %1727  ;;  %v1733_v47 = vpop.permute.xlu0 %1732  ;;  %v5317_v29 = vld [vmem:[#allocation110_spill] sm:$0xff] }
 0x42d   :  { %2548 = vst [vmem:[%s5027_s7 + $0x270] sm:$0xff] %v2440_v13  ;;  %2549 = vst.msk [vmem:[%s5027_s7 + $0x278] sm:$0xff] %vm44_vm0, %v2441_v25  ;;  %v1956_v42 = vmul.f32 %v1728_v39, %v5294_v19  ;;  %v1957_v34 = vmul.f32 %v1728_v39, %v5295_v15  ;;  %v1958_v63 = vmul.f32 %v1733_v47, %v5296_v1  ;;  %v5318_v19 = vld [vmem:[#allocation59_spill] sm:$0xff]  ;;  %v5319_v15 = vld [vmem:[#allocation61_spill] sm:$0xff] }
 0x42e   :  { %2550 = vst [vmem:[%s5027_s7 + $0x280] sm:$0xff] %v2442_v6  ;;  %2551 = vst.msk [vmem:[%s5027_s7 + $0x288] sm:$0xff] %vm44_vm0, %v2443_v18  ;;  %v1959_v52 = vmul.f32 %v1733_v47, %v5297_v50  ;;  %v5320_v1 = vld [vmem:[#allocation64_spill] sm:$0xff]  ;;  %v5321_v50 = vld [vmem:[#allocation65_spill] sm:$0xff] }
 0x42f   :  { %v2388_v57 = vadd.f32 %v5298_v24, %v1956_v42  ;;  %v2389_v11 = vadd.f32 %v5298_v24, %v1957_v34  ;;  %v2390_v55 = vadd.f32 %v5299_v46, %v1958_v63  ;;  %v5322_v24 = vld [vmem:[#allocation21_spill] sm:$0xff] }
 0x430   :  { %v2391_v10 = vadd.f32 %v5299_v46, %v1959_v52  ;;  %v1868_v4 = vpop.permute.xlu1 %1867  ;;  %v1873_v61 = vpop.permute.xlu0 %1872  ;;  %v5323_v46 = vld [vmem:[#allocation32_spill] sm:$0xff] }
 0x431   :  { %2496 = vst [vmem:[%s5027_s7 + $0xd0] sm:$0xff] %v2388_v57  ;;  %2497 = vst.msk [vmem:[%s5027_s7 + $0xd8] sm:$0xff] %vm44_vm0, %v2389_v11  ;;  %v2012_v56 = vmul.f32 %v1868_v4, %v5300_v48  ;;  %v2013_v37 = vmul.f32 %v1868_v4, %v5301_v41  ;;  %v2014_v8 = vmul.f32 %v1873_v61, %v5302_v7  ;;  %v5324_v48 = vld [vmem:[#allocation66_spill] sm:$0xff]  ;;  %v5325_v41 = vld [vmem:[#allocation67_spill] sm:$0xff] }
 0x432   :  { %2498 = vst [vmem:[%s5027_s7 + $0xe0] sm:$0xff] %v2390_v55  ;;  %2499 = vst.msk [vmem:[%s5027_s7 + $0xe8] sm:$0xff] %vm44_vm0, %v2391_v10  ;;  %v2015_v0 = vmul.f32 %v1873_v61, %v5303_v14  ;;  %v5326_v7 = vld [vmem:[#allocation69_spill] sm:$0xff]  ;;  %v5327_v14 = vld [vmem:[#allocation71_spill] sm:$0xff] }
 0x433   :  { %v2444_v12 = vadd.f32 %v5304_v40, %v2012_v56  ;;  %v2445_v32 = vadd.f32 %v5304_v40, %v2013_v37  ;;  %v2446_v30 = vadd.f32 %v5305_v49, %v2014_v8  ;;  %v5328_v40 = vld [vmem:[#allocation109_spill] sm:$0xff] }
 0x434   :  { %v2447_v43 = vadd.f32 %v5305_v49, %v2015_v0  ;;  %v1738_v2 = vpop.permute.xlu1 %1737  ;;  %v1743_v51 = vpop.permute.xlu0 %1742  ;;  %v5329_v49 = vld [vmem:[#allocation112_spill] sm:$0xff] }
 0x435   :  { %2552 = vst [vmem:[%s5027_s7 + $0x290] sm:$0xff] %v2444_v12  ;;  %2553 = vst.msk [vmem:[%s5027_s7 + $0x298] sm:$0xff] %vm44_vm0, %v2445_v32  ;;  %v1960_v36 = vmul.f32 %v1738_v2, %v5306_v17  ;;  %v1961_v54 = vmul.f32 %v1738_v2, %v5307_v9  ;;  %v1962_v27 = vmul.f32 %v1743_v51, %v5308_v45  ;;  %v5330_v17 = vld [vmem:[#allocation68_spill] sm:$0xff]  ;;  %v5331_v9 = vld [vmem:[#allocation70_spill] sm:$0xff] }
 0x436   :  { %2554 = vst [vmem:[%s5027_s7 + $0x2a0] sm:$0xff] %v2446_v30  ;;  %2555 = vst.msk [vmem:[%s5027_s7 + $0x2a8] sm:$0xff] %vm44_vm0, %v2447_v43  ;;  %v1963_v33 = vmul.f32 %v1743_v51, %v5309_v44  ;;  %v5332_v45 = vld [vmem:[#allocation72_spill] sm:$0xff]  ;;  %v5333_v44 = vld [vmem:[#allocation73_spill] sm:$0xff] }
 0x437   :  { %v2392_v38 = vadd.f32 %v5310_v22, %v1960_v36  ;;  %v2393_v60 = vadd.f32 %v5310_v22, %v1961_v54  ;;  %v2394_v21 = vadd.f32 %v5311_v5, %v1962_v27  ;;  %v5334_v22 = vld [vmem:[#allocation30_spill] sm:$0xff] }
 0x438   :  { %v2395_v23 = vadd.f32 %v5311_v5, %v1963_v33  ;;  %v1878_v16 = vpop.permute.xlu1 %1877  ;;  %v1883_v62 = vpop.permute.xlu0 %1882  ;;  %v5335_v5 = vld [vmem:[#allocation41_spill] sm:$0xff] }
 0x439   :  { %2500 = vst [vmem:[%s5027_s7 + $0xf0] sm:$0xff] %v2392_v38  ;;  %2501 = vst.msk [vmem:[%s5027_s7 + $0xf8] sm:$0xff] %vm44_vm0, %v2393_v60  ;;  %v2016_v26 = vmul.f32 %v1878_v16, %v5312_v31  ;;  %v2017_v53 = vmul.f32 %v1878_v16, %v5313_v28  ;;  %v2018_v58 = vmul.f32 %v1883_v62, %v5314_v3  ;;  %v5336_v31 = vld [vmem:[#allocation74_spill] sm:$0xff]  ;;  %v5337_v28 = vld [vmem:[#allocation75_spill] sm:$0xff] }
 0x43a   :  { %2502 = vst [vmem:[%s5027_s7 + $0x100] sm:$0xff] %v2394_v21  ;;  %2503 = vst.msk [vmem:[%s5027_s7 + $0x108] sm:$0xff] %vm44_vm0, %v2395_v23  ;;  %v2019_v20 = vmul.f32 %v1883_v62, %v5315_v35  ;;  %v5338_v3 = vld [vmem:[#allocation77_spill] sm:$0xff]  ;;  %v5339_v35 = vld [vmem:[#allocation79_spill] sm:$0xff] }
 0x43b   :  { %v2448_v13 = vadd.f32 %v5316_v59, %v2016_v26  ;;  %v2449_v25 = vadd.f32 %v5316_v59, %v2017_v53  ;;  %v2450_v6 = vadd.f32 %v5317_v29, %v2018_v58  ;;  %v5340_v59 = vld [vmem:[#allocation111_spill] sm:$0xff] }
 0x43c   :  { %v2451_v18 = vadd.f32 %v5317_v29, %v2019_v20  ;;  %v1748_v39 = vpop.permute.xlu1 %1747  ;;  %v1753_v47 = vpop.permute.xlu0 %1752  ;;  %v5341_v29 = vld [vmem:[#allocation114_spill] sm:$0xff] }
 0x43d   :  { %2556 = vst [vmem:[%s5027_s7 + $0x2b0] sm:$0xff] %v2448_v13  ;;  %2557 = vst.msk [vmem:[%s5027_s7 + $0x2b8] sm:$0xff] %vm44_vm0, %v2449_v25  ;;  %v1964_v42 = vmul.f32 %v1748_v39, %v5318_v19  ;;  %v1965_v34 = vmul.f32 %v1748_v39, %v5319_v15  ;;  %v1966_v63 = vmul.f32 %v1753_v47, %v5320_v1  ;;  %v5342_v19 = vld [vmem:[#allocation76_spill] sm:$0xff]  ;;  %v5343_v15 = vld [vmem:[#allocation78_spill] sm:$0xff] }
 0x43e   :  { %2558 = vst [vmem:[%s5027_s7 + $0x2c0] sm:$0xff] %v2450_v6  ;;  %2559 = vst.msk [vmem:[%s5027_s7 + $0x2c8] sm:$0xff] %vm44_vm0, %v2451_v18  ;;  %v1967_v52 = vmul.f32 %v1753_v47, %v5321_v50  ;;  %v5344_v1 = vld [vmem:[#allocation80_spill] sm:$0xff]  ;;  %v5345_v50 = vld [vmem:[#allocation81_spill] sm:$0xff] }
 0x43f   :  { %v2396_v57 = vadd.f32 %v5322_v24, %v1964_v42  ;;  %v2397_v11 = vadd.f32 %v5322_v24, %v1965_v34  ;;  %v2398_v55 = vadd.f32 %v5323_v46, %v1966_v63  ;;  %v5346_v24 = vld [vmem:[#allocation37_spill] sm:$0xff] }
 0x440   :  { %v2399_v10 = vadd.f32 %v5323_v46, %v1967_v52  ;;  %v1888_v4 = vpop.permute.xlu1 %1887  ;;  %v1893_v61 = vpop.permute.xlu0 %1892  ;;  %v5347_v46 = vld [vmem:[#allocation48_spill] sm:$0xff] }
 0x441   :  { %2504 = vst [vmem:[%s5027_s7 + $0x110] sm:$0xff] %v2396_v57  ;;  %2505 = vst.msk [vmem:[%s5027_s7 + $0x118] sm:$0xff] %vm44_vm0, %v2397_v11  ;;  %v2020_v56 = vmul.f32 %v1888_v4, %v5324_v48  ;;  %v2021_v37 = vmul.f32 %v1888_v4, %v5325_v41  ;;  %v2022_v8 = vmul.f32 %v1893_v61, %v5326_v7  ;;  %v5348_v48 = vld [vmem:[#allocation82_spill] sm:$0xff]  ;;  %v5349_v41 = vld [vmem:[#allocation83_spill] sm:$0xff] }
 0x442   :  { %2506 = vst [vmem:[%s5027_s7 + $0x120] sm:$0xff] %v2398_v55  ;;  %2507 = vst.msk [vmem:[%s5027_s7 + $0x128] sm:$0xff] %vm44_vm0, %v2399_v10  ;;  %v2023_v0 = vmul.f32 %v1893_v61, %v5327_v14  ;;  %v5350_v7 = vld [vmem:[#allocation85_spill] sm:$0xff]  ;;  %v5351_v14 = vld [vmem:[#allocation87_spill] sm:$0xff] }
 0x443   :  { %v2452_v12 = vadd.f32 %v5328_v40, %v2020_v56  ;;  %v2453_v32 = vadd.f32 %v5328_v40, %v2021_v37  ;;  %v2454_v30 = vadd.f32 %v5329_v49, %v2022_v8  ;;  %v5352_v40 = vld [vmem:[#allocation113_spill] sm:$0xff] }
 0x444   :  { %v2455_v43 = vadd.f32 %v5329_v49, %v2023_v0  ;;  %v1758_v2 = vpop.permute.xlu1 %1757  ;;  %v1763_v51 = vpop.permute.xlu0 %1762  ;;  %v5353_v49 = vld [vmem:[#allocation116_spill] sm:$0xff] }
 0x445   :  { %2560 = vst [vmem:[%s5027_s7 + $0x2d0] sm:$0xff] %v2452_v12  ;;  %2561 = vst.msk [vmem:[%s5027_s7 + $0x2d8] sm:$0xff] %vm44_vm0, %v2453_v32  ;;  %v1968_v36 = vmul.f32 %v1758_v2, %v5330_v17  ;;  %v1969_v54 = vmul.f32 %v1758_v2, %v5331_v9  ;;  %v1970_v27 = vmul.f32 %v1763_v51, %v5332_v45  ;;  %v5354_v17 = vld [vmem:[#allocation84_spill] sm:$0xff]  ;;  %v5355_v9 = vld [vmem:[#allocation86_spill] sm:$0xff] }
 0x446   :  { %2562 = vst [vmem:[%s5027_s7 + $0x2e0] sm:$0xff] %v2454_v30  ;;  %2563 = vst.msk [vmem:[%s5027_s7 + $0x2e8] sm:$0xff] %vm44_vm0, %v2455_v43  ;;  %v1971_v33 = vmul.f32 %v1763_v51, %v5333_v44  ;;  %v5356_v45 = vld [vmem:[#allocation89_spill] sm:$0xff]  ;;  %v5357_v44 = vld [vmem:[#allocation90_spill] sm:$0xff] }
 0x447   :  { %v2400_v38 = vadd.f32 %v5334_v22, %v1968_v36  ;;  %v2401_v60 = vadd.f32 %v5334_v22, %v1969_v54  ;;  %v2402_v21 = vadd.f32 %v5335_v5, %v1970_v27  ;;  %v5358_v22 = vld [vmem:[#allocation46_spill] sm:$0xff] }
 0x448   :  { %v2403_v23 = vadd.f32 %v5335_v5, %v1971_v33  ;;  %v1898_v16 = vpop.permute.xlu1 %1897  ;;  %v1903_v62 = vpop.permute.xlu0 %1902  ;;  %v5359_v5 = vld [vmem:[#allocation57_spill] sm:$0xff] }
 0x449   :  { %2508 = vst [vmem:[%s5027_s7 + $0x130] sm:$0xff] %v2400_v38  ;;  %2509 = vst.msk [vmem:[%s5027_s7 + $0x138] sm:$0xff] %vm44_vm0, %v2401_v60  ;;  %v2024_v26 = vmul.f32 %v1898_v16, %v5336_v31  ;;  %v2025_v53 = vmul.f32 %v1898_v16, %v5337_v28  ;;  %v2026_v58 = vmul.f32 %v1903_v62, %v5338_v3  ;;  %v5360_v31 = vld [vmem:[#allocation91_spill] sm:$0xff]  ;;  %v5361_v28 = vld [vmem:[#allocation92_spill] sm:$0xff] }
 0x44a   :  { %2510 = vst [vmem:[%s5027_s7 + $0x140] sm:$0xff] %v2402_v21  ;;  %2511 = vst.msk [vmem:[%s5027_s7 + $0x148] sm:$0xff] %vm44_vm0, %v2403_v23  ;;  %v2027_v20 = vmul.f32 %v1903_v62, %v5339_v35  ;;  %v5362_v3 = vld [vmem:[#allocation115_spill] sm:$0xff] }
 0x44b   :  { %v2456_v13 = vadd.f32 %v5340_v59, %v2024_v26  ;;  %v2457_v25 = vadd.f32 %v5340_v59, %v2025_v53  ;;  %v2458_v6 = vadd.f32 %v5341_v29, %v2026_v58  ;;  %v5363_v59 = vld [vmem:[#allocation93_spill] sm:$0xff] }
 0x44c   :  { %v2459_v18 = vadd.f32 %v5341_v29, %v2027_v20  ;;  %v1768_v39 = vpop.permute.xlu1 %1767  ;;  %v1773_v47 = vpop.permute.xlu0 %1772 }
 0x44d   :  { %2564 = vst [vmem:[%s5027_s7 + $0x2f0] sm:$0xff] %v2456_v13  ;;  %2565 = vst.msk [vmem:[%s5027_s7 + $0x2f8] sm:$0xff] %vm44_vm0, %v2457_v25  ;;  %v1972_v42 = vmul.f32 %v1768_v39, %v5342_v19  ;;  %v1973_v34 = vmul.f32 %v1768_v39, %v5343_v15  ;;  %v1974_v63 = vmul.f32 %v1773_v47, %v5344_v1  ;;  %v5364_v25 = vld [vmem:[#allocation95_spill] sm:$0xff]  ;;  %v5366_v19 = vld [vmem:[#allocation100_spill] sm:$0xff] }
 0x44e   :  { %2566 = vst [vmem:[%s5027_s7 + $0x300] sm:$0xff] %v2458_v6  ;;  %2567 = vst.msk [vmem:[%s5027_s7 + $0x308] sm:$0xff] %vm44_vm0, %v2459_v18  ;;  %v1975_v52 = vmul.f32 %v1773_v47, %v5345_v50  ;;  %v5365_v18 = vld [vmem:[#allocation99_spill] sm:$0xff]  ;;  %v5367_v15 = vld [vmem:[#allocation53_spill] sm:$0xff] }
 0x44f   :  { %v2404_v57 = vadd.f32 %v5346_v24, %v1972_v42  ;;  %v2405_v11 = vadd.f32 %v5346_v24, %v1973_v34  ;;  %v2406_v55 = vadd.f32 %v5347_v46, %v1974_v63  ;;  %v5368_v1 = vld [vmem:[#allocation94_spill] sm:$0xff]  ;;  %v5369_v50 = vld [vmem:[#allocation97_spill] sm:$0xff]  ;;  %v5370_v24 = vld [vmem:[#allocation63_spill] sm:$0xff] }
 0x450   :  { %v2407_v10 = vadd.f32 %v5347_v46, %v1975_v52  ;;  %v1908_v4 = vpop.permute.xlu1 %1907  ;;  %v1913_v61 = vpop.permute.xlu0 %1912 }
 0x451   :  { %2512 = vst [vmem:[%s5027_s7 + $0x150] sm:$0xff] %v2404_v57  ;;  %2513 = vst.msk [vmem:[%s5027_s7 + $0x158] sm:$0xff] %vm44_vm0, %v2405_v11  ;;  %v2028_v56 = vmul.f32 %v1908_v4, %v5348_v48  ;;  %v2029_v37 = vmul.f32 %v1908_v4, %v5349_v41  ;;  %v2030_v8 = vmul.f32 %v1913_v61, %v5350_v7  ;;  %v5371_v48 = vld [vmem:[#allocation101_spill] sm:$0xff]  ;;  %v5372_v41 = vld [vmem:[#allocation102_spill] sm:$0xff] }
 0x452   :  { %2514 = vst [vmem:[%s5027_s7 + $0x160] sm:$0xff] %v2406_v55  ;;  %2515 = vst.msk [vmem:[%s5027_s7 + $0x168] sm:$0xff] %vm44_vm0, %v2407_v10  ;;  %v2031_v0 = vmul.f32 %v1913_v61, %v5351_v14 }
 0x453   :  { %v2460_v12 = vadd.f32 %v5352_v40, %v2028_v56  ;;  %v2461_v32 = vadd.f32 %v5352_v40, %v2029_v37  ;;  %v2462_v30 = vadd.f32 %v5353_v49, %v2030_v8 }
 0x454   :  { %v2463_v43 = vadd.f32 %v5353_v49, %v2031_v0  ;;  %v1778_v2 = vpop.permute.xlu1 %1777  ;;  %v1783_v51 = vpop.permute.xlu0 %1782 }
 0x455   :  { %2568 = vst [vmem:[%s5027_s7 + $0x310] sm:$0xff] %v2460_v12  ;;  %2569 = vst.msk [vmem:[%s5027_s7 + $0x318] sm:$0xff] %vm44_vm0, %v2461_v32  ;;  %v1976_v36 = vmul.f32 %v1778_v2, %v5354_v17  ;;  %v1977_v54 = vmul.f32 %v1778_v2, %v5355_v9  ;;  %v1978_v27 = vmul.f32 %v1783_v51, %v5356_v45 }
 0x456   :  { %2570 = vst [vmem:[%s5027_s7 + $0x320] sm:$0xff] %v2462_v30  ;;  %2571 = vst.msk [vmem:[%s5027_s7 + $0x328] sm:$0xff] %vm44_vm0, %v2463_v43  ;;  %v1979_v33 = vmul.f32 %v1783_v51, %v5357_v44 }
 0x457   :  { %v2408_v38 = vadd.f32 %v5358_v22, %v1976_v36  ;;  %v2409_v60 = vadd.f32 %v5358_v22, %v1977_v54  ;;  %v2410_v21 = vadd.f32 %v5359_v5, %v1978_v27 }
 0x458   :  { %v2411_v23 = vadd.f32 %v5359_v5, %v1979_v33  ;;  %v1918_v16 = vpop.permute.xlu1 %1917  ;;  %v1923_v62 = vpop.permute.xlu0 %1922 }
 0x459   :  { %2516 = vst [vmem:[%s5027_s7 + $0x170] sm:$0xff] %v2408_v38  ;;  %2517 = vst.msk [vmem:[%s5027_s7 + $0x178] sm:$0xff] %vm44_vm0, %v2409_v60  ;;  %v2032_v26 = vmul.f32 %v1918_v16, %v5360_v31  ;;  %v2033_v53 = vmul.f32 %v1918_v16, %v5361_v28  ;;  %v2034_v63 = vmul.f32 %v1923_v62, %v5368_v1 }
 0x45a   :  { %2518 = vst [vmem:[%s5027_s7 + $0x180] sm:$0xff] %v2410_v21  ;;  %2519 = vst.msk [vmem:[%s5027_s7 + $0x188] sm:$0xff] %vm44_vm0, %v2411_v23  ;;  %v2035_v52 = vmul.f32 %v1923_v62, %v5369_v50 }
 0x45b   :  { %v2464_v58 = vadd.f32 %v5362_v3, %v2032_v26  ;;  %v2465_v35 = vadd.f32 %v5362_v3, %v2033_v53 }
 0x45c   :  { %v1788_v20 = vpop.permute.xlu1 %1787  ;;  %v1793_v6 = vpop.permute.xlu0 %1792 }
 0x45d   :  { %2572 = vst [vmem:[%s5027_s7 + $0x330] sm:$0xff] %v2464_v58  ;;  %2573 = vst.msk [vmem:[%s5027_s7 + $0x338] sm:$0xff] %vm44_vm0, %v2465_v35  ;;  %v1980_v13 = vmul.f32 %v1788_v20, %v5363_v59  ;;  %v1981_v29 = vmul.f32 %v1788_v20, %v5364_v25  ;;  %v1982_v39 = vmul.f32 %v1793_v6, %v5365_v18 }
 0x45e   :  { %v1983_v42 = vmul.f32 %v1793_v6, %v5366_v19 }
 0x45f   :  { %v2412_v34 = vadd.f32 %v5367_v15, %v1980_v13  ;;  %v2413_v47 = vadd.f32 %v5367_v15, %v1981_v29  ;;  %v2414_v57 = vadd.f32 %v5370_v24, %v1982_v39 }
 0x460   :  { %v2415_v11 = vadd.f32 %v5370_v24, %v1983_v42  ;;  %v1928_v46 = vpop.permute.xlu1 %1927  ;;  %v2355_v55 = vpop.permute.xlu0 %2354 }
 0x461   :  { %2520 = vst [vmem:[%s5027_s7 + $0x190] sm:$0xff] %v2412_v34  ;;  %2521 = vst.msk [vmem:[%s5027_s7 + $0x198] sm:$0xff] %vm44_vm0, %v2413_v47  ;;  %v2466_v10 = vadd.f32 %v2355_v55, %v2034_v63  ;;  %v2467_v4 = vadd.f32 %v2355_v55, %v2035_v52  ;;  %v2036_v56 = vmul.f32 %v1928_v46, %v5371_v48 }
 0x462   :  { %2522 = vst [vmem:[%s5027_s7 + $0x1a0] sm:$0xff] %v2414_v57  ;;  %2523 = vst.msk [vmem:[%s5027_s7 + $0x1a8] sm:$0xff] %vm44_vm0, %v2415_v11  ;;  %v2037_v37 = vmul.f32 %v1928_v46, %v5372_v41 }
 0x463   :  { %2574 = vst [vmem:[%s5027_s7 + $0x340] sm:$0xff] %v2466_v10  ;;  %2575 = vst.msk [vmem:[%s5027_s7 + $0x348] sm:$0xff] %vm44_vm0, %v2467_v4 }
 0x464   :  { %v2360_v61 = vpop.permute.xlu1 %2359 }
 0x465   :  { %v2468_v7 = vadd.f32 %v2360_v61, %v2036_v56  ;;  %v2469_v8 = vadd.f32 %v2360_v61, %v2037_v37 }
 0x467   :  { %2576 = vst [vmem:[%s5027_s7 + $0x350] sm:$0xff] %v2468_v7  ;;  %2577 = vst.msk [vmem:[%s5027_s7 + $0x358] sm:$0xff] %vm44_vm0, %v2469_v8 }

</bundles_post_ra>
